<compile_context>
chip_gen: v5e
topology: v5e:2x2
jax: 0.10.0
libtpu: 0.0.40
codegen_flags: <defaults>
</compile_context>

<pallas_src>
import functools

import jax
import jax.numpy as jnp
from jax.experimental import pallas as pl
from jax.experimental.pallas import tpu as pltpu


# ----------------------------------------------------------------------------
# Kernel 1: frozen "stem" conv as a tiled bf16 matmul + bias + ReLU, with the
# global-average-pool fused into the final K step.
#   patches [M, K] @ W [K, N] + b -> relu -> mean over the Np rows of each
#   batch element -> pooled [B, N]
# Grid = (B//tb, N//tn, K//tk); reduction (K) axis last / "arbitrary".
# ----------------------------------------------------------------------------
def _stem_fused_kernel(x_ref, w_ref, b_ref, pool_ref, o_ref, acc_ref):
    k = pl.program_id(2)

    @pl.when(k == 0)
    def _():
        acc_ref[...] = jnp.zeros_like(acc_ref)

    # bf16 x bf16 -> f32 accumulation on the MXU
    acc_ref[...] += jnp.dot(x_ref[...], w_ref[...],
                            preferred_element_type=jnp.float32)

    @pl.when(k == pl.num_programs(2) - 1)
    def _():
        y = jnp.maximum(acc_ref[...] + b_ref[...], 0.0)          # (tm, tn) f32
        # Fused global average pool: block-diagonal averaging matmul
        #   (tb, tm) @ (tm, tn) -> (tb, tn)
        o_ref[...] = jnp.dot(pool_ref[...], y,
                             preferred_element_type=jnp.float32).astype(o_ref.dtype)


def stem_matmul_fused(patches, w, b, *, batch, n_patches,
                      tn=1024, tk=1024, tb=None):
    """patches [B*Np, K] (bf16) @ w [K, N] (bf16) + b -> relu -> mean over Np.

    Returns pooled features [B, N] in f32.
    """
    M, K = patches.shape
    _, N = w.shape
    assert M == batch * n_patches

    tn = min(tn, N)
    tk = min(tk, K)
    if tb is None:
        tb = batch
        # Keep the M tile (tb * Np rows) modest so acc / x / out blocks stay
        # VMEM-friendly at large batch (v7x has only 64 MiB VMEM).
        while tb * n_patches > 512 and tb % 2 == 0:
            tb //= 2
    tm = tb * n_patches

    assert batch % tb == 0, (batch, tb)
    assert N % tn == 0 and K % tk == 0, (N, tn, K, tk)
    assert tm % 8 == 0 or tm == M, tm

    # Block-diagonal averaging matrix: pooled[b] = mean of the Np rows of batch b.
    pool = jnp.repeat(jnp.eye(tb, dtype=jnp.float32), n_patches, axis=1) \
        / float(n_patches)                                        # (tb, tb*Np)

    return pl.pallas_call(
        _stem_fused_kernel,
        out_shape=jax.ShapeDtypeStruct((batch, N), jnp.float32),
        grid_spec=pltpu.PrefetchScalarGridSpec(
            num_scalar_prefetch=0,
            grid=(batch // tb, N // tn, K // tk),
            in_specs=[
                pl.BlockSpec((tm, tk), lambda i, j, k: (i, k)),   # patches
                pl.BlockSpec((tk, tn), lambda i, j, k: (k, j)),   # weights
                pl.BlockSpec((1, tn), lambda i, j, k: (0, j)),    # bias
                pl.BlockSpec((tb, tm), lambda i, j, k: (0, 0)),   # pool matrix
            ],
            out_specs=pl.BlockSpec((tb, tn), lambda i, j, k: (i, j)),
            scratch_shapes=[pltpu.VMEM((tm, tn), jnp.float32)],
        ),
        compiler_params=pltpu.CompilerParams(
            dimension_semantics=("parallel", "parallel", "arbitrary")),
    )(patches, w, b, pool)


# ----------------------------------------------------------------------------
# Kernel 2: bridge Linear(2048 -> out) fused with BatchNorm1d (training-mode
# batch statistics, eps=1e-5, biased variance — PyTorch default forward).
# Single grid step: the whole (B, 2048) activation and padded (2048, 128)
# weight fit trivially in VMEM. Output is lane-dense (padded to 128) and
# sliced back to `out` outside the kernel.
# ----------------------------------------------------------------------------
def _bridge_bn_kernel(f_ref, w_ref, b_ref, g_ref, be_ref, o_ref):
    y = jnp.dot(f_ref[...], w_ref[...],
                preferred_element_type=jnp.float32) + b_ref[...]
    mean = jnp.mean(y, axis=0, keepdims=True)
    var = jnp.mean((y - mean) ** 2, axis=0, keepdims=True)   # biased, as in BN fwd
    y_hat = (y - mean) * jax.lax.rsqrt(var + 1e-5)
    o_ref[...] = (y_hat * g_ref[...] + be_ref[...]).astype(o_ref.dtype)


def bridge_bn(f, w, b, gamma, beta):
    B, K = f.shape
    _, O = w.shape
    O_pad = ((O + 127) // 128) * 128          # lane-dense output slab
    if O_pad != O:
        pad = ((0, 0), (0, O_pad - O))
        w = jnp.pad(w, pad)
        b = jnp.pad(b, pad)
        gamma = jnp.pad(gamma, pad)
        beta = jnp.pad(beta, pad)

    out = pl.pallas_call(
        _bridge_bn_kernel,
        out_shape=jax.ShapeDtypeStruct((B, O_pad), jnp.float32),
        grid_spec=pltpu.PrefetchScalarGridSpec(
            num_scalar_prefetch=0,
            grid=(1,),
            in_specs=[
                pl.BlockSpec((B, K), lambda i: (0, 0)),
                pl.BlockSpec((K, O_pad), lambda i: (0, 0)),
                pl.BlockSpec((1, O_pad), lambda i: (0, 0)),
                pl.BlockSpec((1, O_pad), lambda i: (0, 0)),
                pl.BlockSpec((1, O_pad), lambda i: (0, 0)),
            ],
            out_specs=pl.BlockSpec((B, O_pad), lambda i: (0, 0)),
        ),
    )(f, w, b, gamma, beta)
    return out[:, :O]


# ----------------------------------------------------------------------------
# Glue: NCHW patch extraction (conv-as-matmul im2col for a stride=patch conv)
# ----------------------------------------------------------------------------
def extract_patches_nchw(x, patch):
    B, C, H, W = x.shape
    gh, gw = H // patch, W // patch
    x = x.reshape(B, C, gh, patch, gw, patch)
    x = jnp.transpose(x, (0, 2, 4, 1, 3, 5))          # [B, gh, gw, C, p, p]
    return x.reshape(B * gh * gw, C * patch * patch), gh * gw


# ----------------------------------------------------------------------------
# Encoder forward
# ----------------------------------------------------------------------------
def encoder_forward(x, params, *, patch=32):
    B = x.shape[0]
    patches, n_patches = extract_patches_nchw(x, patch)            # [B*Np, C*p*p]
    patches = patches.astype(jnp.bfloat16)                         # MXU dtype
    pooled = stem_matmul_fused(patches, params["w_stem"], params["b_stem"],
                               batch=B, n_patches=n_patches)       # [B, 2048]
    out = bridge_bn(pooled, params["w_bridge"], params["b_bridge"],
                    params["bn_gamma"], params["bn_beta"])         # [B, out_size]
    return out


def init_params(key, *, in_ch=3, patch=32, feat=2048, out_size=32):
    k1, k2, k3 = jax.random.split(key, 3)
    k_stem = in_ch * patch * patch
    return {
        # frozen patchify-conv stand-in for the ResNet-50 body, stored bf16
        "w_stem": (jax.random.normal(k1, (k_stem, feat), jnp.float32) * 0.02
                   ).astype(jnp.bfloat16),
        "b_stem": jnp.zeros((1, feat), jnp.float32),
        # bridge = nn.Linear(2048, out_size)
        "w_bridge": jax.random.normal(k2, (feat, out_size), jnp.float32) * 0.02,
        "b_bridge": jax.random.normal(k3, (1, out_size), jnp.float32) * 0.01,
        # bn = nn.BatchNorm1d(out_size)  (default init: gamma=1, beta=0)
        "bn_gamma": jnp.ones((1, out_size), jnp.float32),
        "bn_beta": jnp.zeros((1, out_size), jnp.float32),
    }


def encoder_reference(x, params, *, patch=32):
    """Plain-JAX reference (same bf16 stem path) for correctness checking."""
    B = x.shape[0]
    patches, n_patches = extract_patches_nchw(x, patch)
    feats = jnp.maximum(
        jnp.dot(patches.astype(jnp.bfloat16), params["w_stem"],
                preferred_element_type=jnp.float32) + params["b_stem"], 0.0)
    pooled = feats.reshape(B, n_patches, -1).mean(axis=1)
    y = jnp.dot(pooled, params["w_bridge"],
                precision=jax.lax.Precision.HIGHEST) + params["b_bridge"]
    mean = y.mean(axis=0, keepdims=True)
    var = ((y - mean) ** 2).mean(axis=0, keepdims=True)
    return (y - mean) / jnp.sqrt(var + 1e-5) * params["bn_gamma"] + params["bn_beta"]


if __name__ == "__main__":
    key = jax.random.PRNGKey(0)
    kx, kp = jax.random.split(key)

    B, C, H, W = 2, 3, 64, 64          # small stand-in for [batch, 3, 256, 256]
    out_size = 32

    x = jax.random.normal(kx, (B, C, H, W), jnp.float32)
    params = init_params(kp, in_ch=C, patch=32, feat=2048, out_size=out_size)

    fwd = jax.jit(functools.partial(encoder_forward, patch=32))
    out = jax.block_until_ready(fwd(x, params))

    ref = encoder_reference(x, params, patch=32)
    assert out.shape == (B, out_size), out.shape
    assert jnp.allclose(out, ref, atol=1e-2, rtol=1e-2), (
        f"mismatch vs reference: max abs diff {jnp.max(jnp.abs(out - ref))}")

    print("KERNEL_OK")
</pallas_src>

<mosaic_0001>
module attributes {stable_mosaic.version = 11 : i64} {
  func.func @_stem_fused_kernel(%arg0: i32, %arg1: i32, %arg2: i32, %arg3: memref<8x1024xbf16, #tpu.memory_space<vmem>>, %arg4: memref<1024x1024xbf16, #tpu.memory_space<vmem>>, %arg5: memref<1x1024xf32, #tpu.memory_space<vmem>>, %arg6: memref<2x8xf32, #tpu.memory_space<vmem>>, %arg7: memref<2x1024xf32, #tpu.memory_space<vmem>>, %arg8: memref<8x1024xf32, #tpu.memory_space<vmem>>) attributes {dimension_semantics = [#tpu.dimension_semantics<parallel>, #tpu.dimension_semantics<parallel>, #tpu.dimension_semantics<arbitrary>], iteration_bounds = array<i64: 1, 2, 3>, scalar_prefetch = 0 : i64, scratch_operands = 1 : i64, tpu.core_type = #tpu.core_type<tc>, window_params = [{transform_indices = @transform_0, window_bounds = array<i64: 8, 1024>}, {transform_indices = @transform_1, window_bounds = array<i64: 1024, 1024>}, {transform_indices = @transform_2, window_bounds = array<i64: 1, 1024>}, {pipeline_mode = #tpu.pipeline_mode<synchronous>, transform_indices = @transform_3, window_bounds = array<i64: 2, 8>}, {transform_indices = @transform_4, window_bounds = array<i64: 2, 1024>}]} {
    %c0_i32 = arith.constant 0 : i32
    %0 = arith.cmpi eq, %arg2, %c0_i32 : i32
    %1 = arith.extui %0 : i1 to i32
    %c0_i32_0 = arith.constant 0 : i32
    %2 = arith.cmpi ne, %1, %c0_i32_0 : i32
    scf.if %2 {
      %cst_9 = arith.constant 0.000000e+00 : f32
      %12 = vector.broadcast %cst_9 : f32 to vector<8x1024xf32>
      %c0_10 = arith.constant 0 : index
      %c0_11 = arith.constant 0 : index
      %13 = vector.load %arg8[%c0_10, %c0_11] : memref<8x1024xf32, #tpu.memory_space<vmem>>, vector<8x1024xf32>
      tpu.vector_store %arg8[%c0_10, %c0_11], %12 {strides = array<i32>} : memref<8x1024xf32, #tpu.memory_space<vmem>>, vector<8x1024xf32>,
    } else {
    }
    %c0 = arith.constant 0 : index
    %c0_1 = arith.constant 0 : index
    %3 = vector.load %arg8[%c0, %c0_1] : memref<8x1024xf32, #tpu.memory_space<vmem>>, vector<8x1024xf32>
    %c0_2 = arith.constant 0 : index
    %c0_3 = arith.constant 0 : index
    %4 = vector.load %arg3[%c0_2, %c0_3] : memref<8x1024xbf16, #tpu.memory_space<vmem>>, vector<8x1024xbf16>
    %c0_4 = arith.constant 0 : index
    %c0_5 = arith.constant 0 : index
    %5 = vector.load %arg4[%c0_4, %c0_5] : memref<1024x1024xbf16, #tpu.memory_space<vmem>>, vector<1024x1024xbf16>
    %cst = arith.constant dense<0.000000e+00> : vector<8x1024xf32>
    %6 = tpu.matmul %4, %5, %cst {dimension_numbers = #tpu.dot_dimension_numbers<[1], [0], [0], [1], [0, 0, 1, 1], [], []>} : vector<8x1024xbf16>, vector<1024x1024xbf16>, vector<8x1024xf32> -> vector<8x1024xf32>
    %7 = arith.addf %3, %6 : vector<8x1024xf32>
    %c0_6 = arith.constant 0 : index
    %c0_7 = arith.constant 0 : index
    %8 = vector.load %arg8[%c0_6, %c0_7] : memref<8x1024xf32, #tpu.memory_space<vmem>>, vector<8x1024xf32>
    tpu.vector_store %arg8[%c0_6, %c0_7], %7 {strides = array<i32>} : memref<8x1024xf32, #tpu.memory_space<vmem>>, vector<8x1024xf32>,
    %c2_i32 = arith.constant 2 : i32
    %9 = arith.cmpi eq, %arg2, %c2_i32 : i32
    %10 = arith.extui %9 : i1 to i32
    %c0_i32_8 = arith.constant 0 : i32
    %11 = arith.cmpi ne, %10, %c0_i32_8 : i32
    scf.if %11 {
      %c0_9 = arith.constant 0 : index
      %c0_10 = arith.constant 0 : index
      %12 = vector.load %arg8[%c0_9, %c0_10] : memref<8x1024xf32, #tpu.memory_space<vmem>>, vector<8x1024xf32>
      %c0_11 = arith.constant 0 : index
      %c0_12 = arith.constant 0 : index
      %13 = vector.load %arg5[%c0_11, %c0_12] : memref<1x1024xf32, #tpu.memory_space<vmem>>, vector<1x1024xf32>
      %14 = vector.broadcast %13 : vector<1x1024xf32> to vector<8x1024xf32>
      %15 = arith.addf %12, %14 : vector<8x1024xf32>
      %cst_13 = arith.constant 0.000000e+00 : f32
      %16 = vector.broadcast %cst_13 : f32 to vector<8x1024xf32>
      %17 = arith.maximumf %15, %16 : vector<8x1024xf32>
      %c0_14 = arith.constant 0 : index
      %c0_15 = arith.constant 0 : index
      %18 = vector.load %arg6[%c0_14, %c0_15] : memref<2x8xf32, #tpu.memory_space<vmem>>, vector<2x8xf32>
      %cst_16 = arith.constant dense<0.000000e+00> : vector<2x1024xf32>
      %19 = tpu.matmul %18, %17, %cst_16 {dimension_numbers = #tpu.dot_dimension_numbers<[1], [0], [0], [1], [0, 0, 1, 1], [], []>} : vector<2x8xf32>, vector<8x1024xf32>, vector<2x1024xf32> -> vector<2x1024xf32>
      %c0_17 = arith.constant 0 : index
      %c0_18 = arith.constant 0 : index
      %20 = vector.load %arg7[%c0_17, %c0_18] : memref<2x1024xf32, #tpu.memory_space<vmem>>, vector<2x1024xf32>
      tpu.vector_store %arg7[%c0_17, %c0_18], %19 {strides = array<i32>} : memref<2x1024xf32, #tpu.memory_space<vmem>>, vector<2x1024xf32>,
    } else {
    }
    return
  }
  func.func @transform_0(%arg0: i32, %arg1: i32, %arg2: i32) -> (i32, i32) {
    %c0_i32 = arith.constant 0 : i32
    return %arg0, %arg2 : i32, i32
  }
  func.func @transform_1(%arg0: i32, %arg1: i32, %arg2: i32) -> (i32, i32) {
    %c0_i32 = arith.constant 0 : i32
    return %arg2, %arg1 : i32, i32
  }
  func.func @transform_2(%arg0: i32, %arg1: i32, %arg2: i32) -> (i32, i32) {
    %c0_i32 = arith.constant 0 : i32
    %c0_i32_0 = arith.constant 0 : i32
    return %c0_i32, %arg1 : i32, i32
  }
  func.func @transform_3(%arg0: i32, %arg1: i32, %arg2: i32) -> (i32, i32) {
    %c0_i32 = arith.constant 0 : i32
    %c0_i32_0 = arith.constant 0 : i32
    %c0_i32_1 = arith.constant 0 : i32
    return %c0_i32, %c0_i32_0 : i32, i32
  }
  func.func @transform_4(%arg0: i32, %arg1: i32, %arg2: i32) -> (i32, i32) {
    %c0_i32 = arith.constant 0 : i32
    return %arg0, %arg1 : i32, i32
  }
}

module attributes {stable_mosaic.version = 11 : i64} {
  func.func @_bridge_bn_kernel(%arg0: i32, %arg1: memref<2x2048xf32, #tpu.memory_space<vmem>>, %arg2: memref<2048x128xf32, #tpu.memory_space<vmem>>, %arg3: memref<1x128xf32, #tpu.memory_space<vmem>>, %arg4: memref<1x128xf32, #tpu.memory_space<vmem>>, %arg5: memref<1x128xf32, #tpu.memory_space<vmem>>, %arg6: memref<2x128xf32, #tpu.memory_space<vmem>>) attributes {dimension_semantics = [#tpu.dimension_semantics<arbitrary>], iteration_bounds = array<i64: 1>, scalar_prefetch = 0 : i64, scratch_operands = 0 : i64, tpu.core_type = #tpu.core_type<tc>, window_params = [{pipeline_mode = #tpu.pipeline_mode<synchronous>, transform_indices = @transform_0, window_bounds = array<i64: 2, 2048>}, {pipeline_mode = #tpu.pipeline_mode<synchronous>, transform_indices = @transform_1, window_bounds = array<i64: 2048, 128>}, {pipeline_mode = #tpu.pipeline_mode<synchronous>, transform_indices = @transform_2, window_bounds = array<i64: 1, 128>}, {pipeline_mode = #tpu.pipeline_mode<synchronous>, transform_indices = @transform_3, window_bounds = array<i64: 1, 128>}, {pipeline_mode = #tpu.pipeline_mode<synchronous>, transform_indices = @transform_4, window_bounds = array<i64: 1, 128>}, {pipeline_mode = #tpu.pipeline_mode<synchronous>, transform_indices = @transform_5, window_bounds = array<i64: 2, 128>}]} {
    %c0 = arith.constant 0 : index
    %c0_0 = arith.constant 0 : index
    %0 = vector.load %arg1[%c0, %c0_0] : memref<2x2048xf32, #tpu.memory_space<vmem>>, vector<2x2048xf32>
    %c0_1 = arith.constant 0 : index
    %c0_2 = arith.constant 0 : index
    %1 = vector.load %arg2[%c0_1, %c0_2] : memref<2048x128xf32, #tpu.memory_space<vmem>>, vector<2048x128xf32>
    %cst = arith.constant dense<0.000000e+00> : vector<2x128xf32>
    %2 = tpu.matmul %0, %1, %cst {dimension_numbers = #tpu.dot_dimension_numbers<[1], [0], [0], [1], [0, 0, 1, 1], [], []>} : vector<2x2048xf32>, vector<2048x128xf32>, vector<2x128xf32> -> vector<2x128xf32>
    %c0_3 = arith.constant 0 : index
    %c0_4 = arith.constant 0 : index
    %3 = vector.load %arg3[%c0_3, %c0_4] : memref<1x128xf32, #tpu.memory_space<vmem>>, vector<1x128xf32>
    %4 = vector.broadcast %3 : vector<1x128xf32> to vector<2x128xf32>
    %5 = arith.addf %2, %4 : vector<2x128xf32>
    %cst_5 = arith.constant dense<0.000000e+00> : vector<128xf32>
    %6 = vector.multi_reduction <add>, %5, %cst_5 [0] : vector<2x128xf32> to vector<128xf32>
    %7 = vector.shape_cast %6 : vector<128xf32> to vector<1x128xf32>
    %cst_6 = arith.constant 2.000000e+00 : f32
    %8 = vector.broadcast %cst_6 : f32 to vector<1x128xf32>
    %9 = arith.divf %7, %8 : vector<1x128xf32>
    %10 = vector.broadcast %9 : vector<1x128xf32> to vector<2x128xf32>
    %11 = arith.subf %5, %10 : vector<2x128xf32>
    %12 = arith.mulf %11, %11 : vector<2x128xf32>
    %cst_7 = arith.constant dense<0.000000e+00> : vector<128xf32>
    %13 = vector.multi_reduction <add>, %12, %cst_7 [0] : vector<2x128xf32> to vector<128xf32>
    %14 = vector.shape_cast %13 : vector<128xf32> to vector<1x128xf32>
    %cst_8 = arith.constant 2.000000e+00 : f32
    %15 = vector.broadcast %cst_8 : f32 to vector<1x128xf32>
    %16 = arith.divf %14, %15 : vector<1x128xf32>
    %17 = vector.broadcast %9 : vector<1x128xf32> to vector<2x128xf32>
    %18 = arith.subf %5, %17 : vector<2x128xf32>
    %cst_9 = arith.constant 9.99999974E-6 : f32
    %19 = vector.broadcast %cst_9 : f32 to vector<1x128xf32>
    %20 = arith.addf %16, %19 : vector<1x128xf32>
    %21 = math.rsqrt %20 : vector<1x128xf32>
    %22 = vector.broadcast %21 : vector<1x128xf32> to vector<2x128xf32>
    %23 = arith.mulf %18, %22 : vector<2x128xf32>
    %c0_10 = arith.constant 0 : index
    %c0_11 = arith.constant 0 : index
    %24 = vector.load %arg4[%c0_10, %c0_11] : memref<1x128xf32, #tpu.memory_space<vmem>>, vector<1x128xf32>
    %25 = vector.broadcast %24 : vector<1x128xf32> to vector<2x128xf32>
    %26 = arith.mulf %23, %25 : vector<2x128xf32>
    %c0_12 = arith.constant 0 : index
    %c0_13 = arith.constant 0 : index
    %27 = vector.load %arg5[%c0_12, %c0_13] : memref<1x128xf32, #tpu.memory_space<vmem>>, vector<1x128xf32>
    %28 = vector.broadcast %27 : vector<1x128xf32> to vector<2x128xf32>
    %29 = arith.addf %26, %28 : vector<2x128xf32>
    %c0_14 = arith.constant 0 : index
    %c0_15 = arith.constant 0 : index
    %30 = vector.load %arg6[%c0_14, %c0_15] : memref<2x128xf32, #tpu.memory_space<vmem>>, vector<2x128xf32>
    tpu.vector_store %arg6[%c0_14, %c0_15], %29 {strides = array<i32>} : memref<2x128xf32, #tpu.memory_space<vmem>>, vector<2x128xf32>,
    return
  }
  func.func @transform_0(%arg0: i32) -> (i32, i32) {
    %c0_i32 = arith.constant 0 : i32
    %c0_i32_0 = arith.constant 0 : i32
    %c0_i32_1 = arith.constant 0 : i32
    return %c0_i32, %c0_i32_0 : i32, i32
  }
  func.func @transform_1(%arg0: i32) -> (i32, i32) {
    %c0_i32 = arith.constant 0 : i32
    %c0_i32_0 = arith.constant 0 : i32
    %c0_i32_1 = arith.constant 0 : i32
    return %c0_i32, %c0_i32_0 : i32, i32
  }
  func.func @transform_2(%arg0: i32) -> (i32, i32) {
    %c0_i32 = arith.constant 0 : i32
    %c0_i32_0 = arith.constant 0 : i32
    %c0_i32_1 = arith.constant 0 : i32
    return %c0_i32, %c0_i32_0 : i32, i32
  }
  func.func @transform_3(%arg0: i32) -> (i32, i32) {
    %c0_i32 = arith.constant 0 : i32
    %c0_i32_0 = arith.constant 0 : i32
    %c0_i32_1 = arith.constant 0 : i32
    return %c0_i32, %c0_i32_0 : i32, i32
  }
  func.func @transform_4(%arg0: i32) -> (i32, i32) {
    %c0_i32 = arith.constant 0 : i32
    %c0_i32_0 = arith.constant 0 : i32
    %c0_i32_1 = arith.constant 0 : i32
    return %c0_i32, %c0_i32_0 : i32, i32
  }
  func.func @transform_5(%arg0: i32) -> (i32, i32) {
    %c0_i32 = arith.constant 0 : i32
    %c0_i32_0 = arith.constant 0 : i32
    %c0_i32_1 = arith.constant 0 : i32
    return %c0_i32, %c0_i32_0 : i32, i32
  }
}

</mosaic_0001>

<bundles_post_ra>
// kernel: encoder_forward.3
= control target key start
LH: loop header
LB: loop body
LE: loop exit
PB: predicated region body
PF: predicated region fallthrough
CT: control target
= control target key end

     0   :  { %s1590_s0 = inlined_call_operand.vmem [shape: f32[2,2048], index: 0, kind: input, shape index: {}]   ;;  %s1591_s1 = inlined_call_operand.vmem [shape: f32[2048,128], index: 1, kind: input, shape index: {}]   ;;  %s1592_s2 = inlined_call_operand.vmem [shape: f32[1,128], index: 2, kind: input, shape index: {}]   ;;  %s1593_s3 = inlined_call_operand.vmem [shape: f32[1,128], index: 3, kind: input, shape index: {}]   ;;  %s1594_s4 = inlined_call_operand.vmem [shape: f32[1,128], index: 4, kind: input, shape index: {}]   ;;  %s1595_s5 = inlined_call_operand.hbm [shape: f32[2,128], index: 5, kind: output, shape index: {}]  }
   0x1   :  { %v40_v0 = vld [vmem:[%s1591_s1 + $0x78] sm:$0xff]  ;;  %v39_v2 = vld [vmem:[%s1591_s1 + $0x70] sm:$0xff]  ;;  %v38_v6 = vld [vmem:[%s1591_s1 + $0x68] sm:$0xff] }
   0x2   :  { %v72_v1 = vld [vmem:[%s1591_s1 + $0x178] sm:$0xff]  ;;  %326 = vmatpush.msra.mxu0 %v40_v0  ;;  %v71_v4 = vld [vmem:[%s1591_s1 + $0x170] sm:$0xff]  ;;  %v70_v8 = vld [vmem:[%s1591_s1 + $0x168] sm:$0xff] }
   0x3   :  { %366 = vmatpush.msra.mxu2 %v72_v1  ;;  %v56_v3 = vld [vmem:[%s1591_s1 + $0xf8] sm:$0xff]  ;;  %v55_v7 = vld [vmem:[%s1591_s1 + $0xf0] sm:$0xff]  ;;  %v54_v10 = vld [vmem:[%s1591_s1 + $0xe8] sm:$0xff] }
   0x4   :  { %v88_v5 = vld [vmem:[%s1591_s1 + $0x1f8] sm:$0xff]  ;;  %346 = vmatpush.msra.mxu1 %v56_v3  ;;  %327 = vmatpush.msra.mxu0 %v39_v2  ;;  %v87_v9 = vld [vmem:[%s1591_s1 + $0x1f0] sm:$0xff]  ;;  %v37_v11 = vld [vmem:[%s1591_s1 + $0x60] sm:$0xff] }
   0x5   :  { %386 = vmatpush.msra.mxu3 %v88_v5  ;;  %367 = vmatpush.msra.mxu2 %v71_v4  ;;  %v69_v12 = vld [vmem:[%s1591_s1 + $0x160] sm:$0xff]  ;;  %v86_v13 = vld [vmem:[%s1591_s1 + $0x1e8] sm:$0xff]  ;;  %v36_v16 = vld [vmem:[%s1591_s1 + $0x58] sm:$0xff] }
   0x6   :  { %347 = vmatpush.msra.mxu1 %v55_v7  ;;  %328 = vmatpush.msra.mxu0 %v38_v6  ;;  %v53_v14 = vld [vmem:[%s1591_s1 + $0xe0] sm:$0xff]  ;;  %v68_v17 = vld [vmem:[%s1591_s1 + $0x158] sm:$0xff]  ;;  %v35_v20 = vld [vmem:[%s1591_s1 + $0x50] sm:$0xff] }
   0x7   :  { %387 = vmatpush.msra.mxu3 %v87_v9  ;;  %368 = vmatpush.msra.mxu2 %v70_v8  ;;  %v85_v15 = vld [vmem:[%s1591_s1 + $0x1e0] sm:$0xff]  ;;  %v52_v18 = vld [vmem:[%s1591_s1 + $0xd8] sm:$0xff]  ;;  %v67_v21 = vld [vmem:[%s1591_s1 + $0x150] sm:$0xff] }
   0x8   :  { %348 = vmatpush.msra.mxu1 %v54_v10  ;;  %329 = vmatpush.msra.mxu0 %v37_v11  ;;  %v84_v19 = vld [vmem:[%s1591_s1 + $0x1d8] sm:$0xff]  ;;  %v51_v22 = vld [vmem:[%s1591_s1 + $0xd0] sm:$0xff]  ;;  %v34_v24 = vld [vmem:[%s1591_s1 + $0x48] sm:$0xff] }
   0x9   :  { %388 = vmatpush.msra.mxu3 %v86_v13  ;;  %369 = vmatpush.msra.mxu2 %v69_v12  ;;  %v83_v23 = vld [vmem:[%s1591_s1 + $0x1d0] sm:$0xff]  ;;  %v66_v25 = vld [vmem:[%s1591_s1 + $0x148] sm:$0xff]  ;;  %v33_v28 = vld [vmem:[%s1591_s1 + $0x40] sm:$0xff] }
   0xa   :  { %349 = vmatpush.msra.mxu1 %v53_v14  ;;  %330 = vmatpush.msra.mxu0 %v36_v16  ;;  %v50_v26 = vld [vmem:[%s1591_s1 + $0xc8] sm:$0xff]  ;;  %v65_v29 = vld [vmem:[%s1591_s1 + $0x140] sm:$0xff]  ;;  %v32_v32 = vld [vmem:[%s1591_s1 + $0x38] sm:$0xff] }
   0xb   :  { %389 = vmatpush.msra.mxu3 %v85_v15  ;;  %370 = vmatpush.msra.mxu2 %v68_v17  ;;  %v82_v27 = vld [vmem:[%s1591_s1 + $0x1c8] sm:$0xff]  ;;  %v49_v30 = vld [vmem:[%s1591_s1 + $0xc0] sm:$0xff]  ;;  %v64_v33 = vld [vmem:[%s1591_s1 + $0x138] sm:$0xff] }
   0xc   :  { %350 = vmatpush.msra.mxu1 %v52_v18  ;;  %331 = vmatpush.msra.mxu0 %v35_v20  ;;  %v81_v31 = vld [vmem:[%s1591_s1 + $0x1c0] sm:$0xff]  ;;  %v48_v34 = vld [vmem:[%s1591_s1 + $0xb8] sm:$0xff]  ;;  %v31_v36 = vld [vmem:[%s1591_s1 + $0x30] sm:$0xff] }
   0xd   :  { %390 = vmatpush.msra.mxu3 %v84_v19  ;;  %371 = vmatpush.msra.mxu2 %v67_v21  ;;  %v80_v35 = vld [vmem:[%s1591_s1 + $0x1b8] sm:$0xff]  ;;  %v63_v37 = vld [vmem:[%s1591_s1 + $0x130] sm:$0xff]  ;;  %v30_v40 = vld [vmem:[%s1591_s1 + $0x28] sm:$0xff] }
   0xe   :  { %351 = vmatpush.msra.mxu1 %v51_v22  ;;  %332 = vmatpush.msra.mxu0 %v34_v24  ;;  %v47_v38 = vld [vmem:[%s1591_s1 + $0xb0] sm:$0xff]  ;;  %v62_v41 = vld [vmem:[%s1591_s1 + $0x128] sm:$0xff]  ;;  %v29_v44 = vld [vmem:[%s1591_s1 + $0x20] sm:$0xff] }
   0xf   :  { %391 = vmatpush.msra.mxu3 %v83_v23  ;;  %372 = vmatpush.msra.mxu2 %v66_v25  ;;  %v79_v39 = vld [vmem:[%s1591_s1 + $0x1b0] sm:$0xff]  ;;  %v46_v42 = vld [vmem:[%s1591_s1 + $0xa8] sm:$0xff]  ;;  %v61_v45 = vld [vmem:[%s1591_s1 + $0x120] sm:$0xff] }
  0x10   :  { %352 = vmatpush.msra.mxu1 %v50_v26  ;;  %333 = vmatpush.msra.mxu0 %v33_v28  ;;  %v78_v43 = vld [vmem:[%s1591_s1 + $0x1a8] sm:$0xff]  ;;  %v45_v46 = vld [vmem:[%s1591_s1 + $0xa0] sm:$0xff]  ;;  %v28_v48 = vld [vmem:[%s1591_s1 + $0x18] sm:$0xff] }
  0x11   :  { %392 = vmatpush.msra.mxu3 %v82_v27  ;;  %373 = vmatpush.msra.mxu2 %v65_v29  ;;  %v77_v47 = vld [vmem:[%s1591_s1 + $0x1a0] sm:$0xff]  ;;  %v60_v49 = vld [vmem:[%s1591_s1 + $0x118] sm:$0xff]  ;;  %v27_v52 = vld [vmem:[%s1591_s1 + $0x10] sm:$0xff] }
  0x12   :  { %353 = vmatpush.msra.mxu1 %v49_v30  ;;  %334 = vmatpush.msra.mxu0 %v32_v32  ;;  %v44_v50 = vld [vmem:[%s1591_s1 + $0x98] sm:$0xff]  ;;  %v59_v53 = vld [vmem:[%s1591_s1 + $0x110] sm:$0xff]  ;;  %v26_v56 = vld [vmem:[%s1591_s1 + $0x8] sm:$0xff] }
  0x13   :  { %393 = vmatpush.msra.mxu3 %v81_v31  ;;  %374 = vmatpush.msra.mxu2 %v64_v33  ;;  %v76_v51 = vld [vmem:[%s1591_s1 + $0x198] sm:$0xff]  ;;  %v43_v54 = vld [vmem:[%s1591_s1 + $0x90] sm:$0xff]  ;;  %v58_v57 = vld [vmem:[%s1591_s1 + $0x108] sm:$0xff] }
  0x14   :  { %354 = vmatpush.msra.mxu1 %v48_v34  ;;  %335 = vmatpush.msra.mxu0 %v31_v36  ;;  %v75_v55 = vld [vmem:[%s1591_s1 + $0x190] sm:$0xff]  ;;  %v42_v58 = vld [vmem:[%s1591_s1 + $0x88] sm:$0xff]  ;;  %v25_v60 = vld [vmem:[%s1591_s1] sm:$0xff] }
  0x15   :  { %394 = vmatpush.msra.mxu3 %v80_v35  ;;  %375 = vmatpush.msra.mxu2 %v63_v37  ;;  %v74_v59 = vld [vmem:[%s1591_s1 + $0x188] sm:$0xff]  ;;  %v57_v61 = vld [vmem:[%s1591_s1 + $0x100] sm:$0xff]  ;;  %v104_v62 = vld [vmem:[%s1591_s1 + $0x278] sm:$0xff] }
  0x16   :  { %355 = vmatpush.msra.mxu1 %v47_v38  ;;  %336 = vmatpush.msra.mxu0 %v30_v40  ;;  %v136_v63 = vld [vmem:[%s1591_s1 + $0x378] sm:$0xff]  ;;  %v41_v0 = vld [vmem:[%s1591_s1 + $0x80] sm:$0xff]  ;;  %v103_v2 = vld [vmem:[%s1591_s1 + $0x270] sm:$0xff] }
  0x17   :  { %395 = vmatpush.msra.mxu3 %v79_v39  ;;  %376 = vmatpush.msra.mxu2 %v62_v41  ;;  %v73_v1 = vld [vmem:[%s1591_s1 + $0x180] sm:$0xff]  ;;  %v120_v3 = vld [vmem:[%s1591_s1 + $0x2f8] sm:$0xff]  ;;  %v135_v4 = vld [vmem:[%s1591_s1 + $0x370] sm:$0xff] }
  0x18   :  { %356 = vmatpush.msra.mxu1 %v46_v42  ;;  %337 = vmatpush.msra.mxu0 %v29_v44  ;;  %v152_v5 = vld [vmem:[%s1591_s1 + $0x3f8] sm:$0xff]  ;;  %v102_v6 = vld [vmem:[%s1591_s1 + $0x268] sm:$0xff]  ;;  %v119_v7 = vld [vmem:[%s1591_s1 + $0x2f0] sm:$0xff] }
  0x19   :  { %396 = vmatpush.msra.mxu3 %v78_v43  ;;  %377 = vmatpush.msra.mxu2 %v61_v45  ;;  %v134_v8 = vld [vmem:[%s1591_s1 + $0x368] sm:$0xff]  ;;  %v151_v9 = vld [vmem:[%s1591_s1 + $0x3f0] sm:$0xff]  ;;  %v101_v10 = vld [vmem:[%s1591_s1 + $0x260] sm:$0xff] }
  0x1a   :  { %357 = vmatpush.msra.mxu1 %v45_v46  ;;  %338 = vmatpush.msra.mxu0 %v28_v48  ;;  %v118_v11 = vld [vmem:[%s1591_s1 + $0x2e8] sm:$0xff]  ;;  %v133_v12 = vld [vmem:[%s1591_s1 + $0x360] sm:$0xff]  ;;  %v100_v14 = vld [vmem:[%s1591_s1 + $0x258] sm:$0xff] }
  0x1b   :  { %397 = vmatpush.msra.mxu3 %v77_v47  ;;  %378 = vmatpush.msra.mxu2 %v60_v49  ;;  %v150_v13 = vld [vmem:[%s1591_s1 + $0x3e8] sm:$0xff]  ;;  %v117_v15 = vld [vmem:[%s1591_s1 + $0x2e0] sm:$0xff]  ;;  %v132_v16 = vld [vmem:[%s1591_s1 + $0x358] sm:$0xff] }
  0x1c   :  { %358 = vmatpush.msra.mxu1 %v44_v50  ;;  %339 = vmatpush.msra.mxu0 %v27_v52  ;;  %v149_v17 = vld [vmem:[%s1591_s1 + $0x3e0] sm:$0xff]  ;;  %v99_v18 = vld [vmem:[%s1591_s1 + $0x250] sm:$0xff]  ;;  %v116_v19 = vld [vmem:[%s1591_s1 + $0x2d8] sm:$0xff] }
  0x1d   :  { %398 = vmatpush.msra.mxu3 %v76_v51  ;;  %379 = vmatpush.msra.mxu2 %v59_v53  ;;  %v131_v20 = vld [vmem:[%s1591_s1 + $0x350] sm:$0xff]  ;;  %v148_v21 = vld [vmem:[%s1591_s1 + $0x3d8] sm:$0xff]  ;;  %v98_v22 = vld [vmem:[%s1591_s1 + $0x248] sm:$0xff] }
  0x1e   :  { %359 = vmatpush.msra.mxu1 %v43_v54  ;;  %340 = vmatpush.msra.mxu0 %v26_v56  ;;  %v115_v23 = vld [vmem:[%s1591_s1 + $0x2d0] sm:$0xff]  ;;  %v130_v24 = vld [vmem:[%s1591_s1 + $0x348] sm:$0xff]  ;;  %v21_v26 = vld [vmem:[%s1590_s0] sm:$0xff] }
  0x1f   :  { %399 = vmatpush.msra.mxu3 %v75_v55  ;;  %380 = vmatpush.msra.mxu2 %v58_v57  ;;  %v147_v25 = vld [vmem:[%s1591_s1 + $0x3d0] sm:$0xff]  ;;  %v97_v27 = vld [vmem:[%s1591_s1 + $0x240] sm:$0xff]  ;;  %v114_v28 = vld [vmem:[%s1591_s1 + $0x2c8] sm:$0xff]  ;;  %289 = vst [vmem:[#allocation1] ss:$4 sm:$0xff] %v21_v26 }
  0x20   :  { %360 = vmatpush.msra.mxu1 %v42_v58  ;;  %341 = vmatpush.msra.mxu0 %v25_v60  ;;  %v129_v29 = vld [vmem:[%s1591_s1 + $0x340] sm:$0xff]  ;;  %v146_v30 = vld [vmem:[%s1591_s1 + $0x3c8] sm:$0xff]  ;;  %v96_v31 = vld [vmem:[%s1591_s1 + $0x238] sm:$0xff] }
  0x21   :  { %400 = vmatpush.msra.mxu3 %v74_v59  ;;  %381 = vmatpush.msra.mxu2 %v57_v61  ;;  %v113_v32 = vld [vmem:[%s1591_s1 + $0x2c0] sm:$0xff]  ;;  %v128_v33 = vld [vmem:[%s1591_s1 + $0x338] sm:$0xff]  ;;  %v95_v35 = vld [vmem:[%s1591_s1 + $0x230] sm:$0xff] }
  0x22   :  { %406 = vmatpush.msrb.mxu0 %v104_v62  ;;  %361 = vmatpush.msra.mxu1 %v41_v0  ;;  %v145_v34 = vld [vmem:[%s1591_s1 + $0x3c0] sm:$0xff]  ;;  %v112_v36 = vld [vmem:[%s1591_s1 + $0x2b8] sm:$0xff]  ;;  %v127_v37 = vld [vmem:[%s1591_s1 + $0x330] sm:$0xff] }
  0x23   :  { %446 = vmatpush.msrb.mxu2 %v136_v63  ;;  %401 = vmatpush.msra.mxu3 %v73_v1  ;;  %v144_v38 = vld [vmem:[%s1591_s1 + $0x3b8] sm:$0xff]  ;;  %v94_v39 = vld [vmem:[%s1591_s1 + $0x228] sm:$0xff]  ;;  %v111_v40 = vld [vmem:[%s1591_s1 + $0x2b0] sm:$0xff] }
  0x24   :  { %407 = vmatpush.msrb.mxu0 %v103_v2  ;;  %426 = vmatpush.msrb.mxu1 %v120_v3  ;;  %v126_v41 = vld [vmem:[%s1591_s1 + $0x328] sm:$0xff]  ;;  %v143_v42 = vld [vmem:[%s1591_s1 + $0x3b0] sm:$0xff]  ;;  %v93_v44 = vld [vmem:[%s1591_s1 + $0x220] sm:$0xff] }
  0x25   :  { %447 = vmatpush.msrb.mxu2 %v135_v4  ;;  %466 = vmatpush.msrb.mxu3 %v152_v5  ;;  %v22_v43 = vld [vmem:[%s1590_s0 + $0x8] sm:$0xff]  ;;  %v23_v46 = vld [vmem:[%s1590_s0 + $0x10] sm:$0xff]  ;;  %v125_v47 = vld [vmem:[%s1591_s1 + $0x320] sm:$0xff] }
  0x26   :  { %408 = vmatpush.msrb.mxu0 %v102_v6  ;;  %427 = vmatpush.msrb.mxu1 %v119_v7  ;;  %v110_v45 = vld [vmem:[%s1591_s1 + $0x2a8] sm:$0xff]  ;;  %291 = vst [vmem:[#allocation1 + $0x20] ss:$4 sm:$0xff] %v22_v43  ;;  %v292_v48 = vld.sshfl [vmem:[#allocation1] sm:$0xff pattern:$0x73625140] }
  0x27   :  { %448 = vmatpush.msrb.mxu2 %v134_v8  ;;  %467 = vmatpush.msrb.mxu3 %v151_v9  ;;  %v294_v49 = vld.sshfl [vmem:[#allocation1 + $0x10] sm:$0xff pattern:$0x73625140]  ;;  %v1114_v50 = vld.sshfl [vmem:[#allocation1 + $0x8] sm:$0xff pattern:$0x73625140] }
  0x28   :  { %409 = vmatpush.msrb.mxu0 %v101_v10  ;;  %428 = vmatpush.msrb.mxu1 %v118_v11  ;;  %v1116_v51 = vld.sshfl [vmem:[#allocation1 + $0x18] sm:$0xff pattern:$0x73625140]  ;;  %v142_v52 = vld [vmem:[%s1591_s1 + $0x3a8] sm:$0xff]  ;;  %v109_v54 = vld [vmem:[%s1591_s1 + $0x2a0] sm:$0xff] }
  0x29   :  { %449 = vmatpush.msrb.mxu2 %v133_v12  ;;  %468 = vmatpush.msrb.mxu3 %v150_v13  ;;  %v92_v53 = vld [vmem:[%s1591_s1 + $0x218] sm:$0xff]  ;;  %300 = vst [vmem:[#allocation1] ss:$4 sm:$0xff] %v23_v46  ;;  %v141_v56 = vld [vmem:[%s1591_s1 + $0x3a0] sm:$0xff]  ;;  %v91_v57 = vld [vmem:[%s1591_s1 + $0x210] sm:$0xff] }
  0x2a   :  { %410 = vmatpush.msrb.mxu0 %v100_v14  ;;  %429 = vmatpush.msrb.mxu1 %v117_v15  ;;  %v124_v55 = vld [vmem:[%s1591_s1 + $0x318] sm:$0xff]  ;;  %v123_v59 = vld [vmem:[%s1591_s1 + $0x310] sm:$0xff]  ;;  %v90_v61 = vld [vmem:[%s1591_s1 + $0x208] sm:$0xff] }
  0x2b   :  { %450 = vmatpush.msrb.mxu2 %v132_v16  ;;  %469 = vmatpush.msrb.mxu3 %v149_v17  ;;  %v108_v58 = vld [vmem:[%s1591_s1 + $0x298] sm:$0xff]  ;;  %v107_v62 = vld [vmem:[%s1591_s1 + $0x290] sm:$0xff]  ;;  %v122_v4 = vld [vmem:[%s1591_s1 + $0x308] sm:$0xff] }
  0x2c   :  { %411 = vmatpush.msrb.mxu0 %v99_v18  ;;  %430 = vmatpush.msrb.mxu1 %v116_v19  ;;  %v140_v60 = vld [vmem:[%s1591_s1 + $0x398] sm:$0xff]  ;;  %v139_v5 = vld [vmem:[%s1591_s1 + $0x390] sm:$0xff]  ;;  %v89_v6 = vld [vmem:[%s1591_s1 + $0x200] sm:$0xff] }
  0x2d   :  { %451 = vmatpush.msrb.mxu2 %v131_v20  ;;  %470 = vmatpush.msrb.mxu3 %v148_v21  ;;  %v24_v63 = vld [vmem:[%s1590_s0 + $0x18] sm:$0xff]  ;;  %v1154_v0 = vld.sshfl [vmem:[#allocation1 + $0x30] sm:$0xff pattern:$0x73625140]  ;;  %v106_v7 = vld [vmem:[%s1591_s1 + $0x288] sm:$0xff] }
  0x2e   :  { %412 = vmatpush.msrb.mxu0 %v98_v22  ;;  %431 = vmatpush.msrb.mxu1 %v115_v23  ;;  %v1156_v1 = vld.sshfl [vmem:[#allocation1 + $0x20] sm:$0xff pattern:$0x73625140]  ;;  %v1158_v2 = vld.sshfl [vmem:[#allocation1 + $0x38] sm:$0xff pattern:$0x73625140] }
  0x2f   :  { %452 = vmatpush.msrb.mxu2 %v130_v24  ;;  %471 = vmatpush.msrb.mxu3 %v147_v25  ;;  %v1160_v3 = vld.sshfl [vmem:[#allocation1 + $0x28] sm:$0xff pattern:$0x73625140]  ;;  %v121_v8 = vld [vmem:[%s1591_s1 + $0x300] sm:$0xff]  ;;  %v168_v10 = vld [vmem:[%s1591_s1 + $0x478] sm:$0xff] }
  0x30   :  { %413 = vmatpush.msrb.mxu0 %v97_v27  ;;  %432 = vmatpush.msrb.mxu1 %v114_v28  ;;  %301 = vst [vmem:[#allocation1 + $0x20] ss:$4 sm:$0xff] %v24_v63  ;;  %v138_v9 = vld [vmem:[%s1591_s1 + $0x388] sm:$0xff]  ;;  %v200_v11 = vld [vmem:[%s1591_s1 + $0x578] sm:$0xff]  ;;  %v105_v12 = vld [vmem:[%s1591_s1 + $0x280] sm:$0xff] }
  0x31   :  { %453 = vmatpush.msrb.mxu2 %v129_v29  ;;  %472 = vmatpush.msrb.mxu3 %v146_v30  ;;  %v137_v13 = vld [vmem:[%s1591_s1 + $0x380] sm:$0xff]  ;;  %v167_v14 = vld [vmem:[%s1591_s1 + $0x470] sm:$0xff]  ;;  %v184_v15 = vld [vmem:[%s1591_s1 + $0x4f8] sm:$0xff] }
  0x32   :  { %414 = vmatpush.msrb.mxu0 %v96_v31  ;;  %433 = vmatpush.msrb.mxu1 %v113_v32  ;;  %v199_v16 = vld [vmem:[%s1591_s1 + $0x570] sm:$0xff]  ;;  %v216_v17 = vld [vmem:[%s1591_s1 + $0x5f8] sm:$0xff]  ;;  %v166_v18 = vld [vmem:[%s1591_s1 + $0x468] sm:$0xff] }
  0x33   :  { %454 = vmatpush.msrb.mxu2 %v128_v33  ;;  %473 = vmatpush.msrb.mxu3 %v145_v34  ;;  %v183_v19 = vld [vmem:[%s1591_s1 + $0x4f0] sm:$0xff]  ;;  %v198_v20 = vld [vmem:[%s1591_s1 + $0x568] sm:$0xff]  ;;  %v165_v22 = vld [vmem:[%s1591_s1 + $0x460] sm:$0xff] }
  0x34   :  { %415 = vmatpush.msrb.mxu0 %v95_v35  ;;  %434 = vmatpush.msrb.mxu1 %v112_v36  ;;  %v215_v21 = vld [vmem:[%s1591_s1 + $0x5f0] sm:$0xff]  ;;  %v182_v23 = vld [vmem:[%s1591_s1 + $0x4e8] sm:$0xff]  ;;  %v197_v24 = vld [vmem:[%s1591_s1 + $0x560] sm:$0xff] }
  0x35   :  { %455 = vmatpush.msrb.mxu2 %v127_v37  ;;  %474 = vmatpush.msrb.mxu3 %v144_v38  ;;  %v214_v25 = vld [vmem:[%s1591_s1 + $0x5e8] sm:$0xff]  ;;  %v164_v26 = vld [vmem:[%s1591_s1 + $0x458] sm:$0xff]  ;;  %v181_v27 = vld [vmem:[%s1591_s1 + $0x4e0] sm:$0xff] }
  0x36   :  { %416 = vmatpush.msrb.mxu0 %v94_v39  ;;  %435 = vmatpush.msrb.mxu1 %v111_v40  ;;  %v196_v28 = vld [vmem:[%s1591_s1 + $0x558] sm:$0xff]  ;;  %v213_v29 = vld [vmem:[%s1591_s1 + $0x5e0] sm:$0xff] }
  0x37   :  { %456 = vmatpush.msrb.mxu2 %v126_v41  ;;  %475 = vmatpush.msrb.mxu3 %v143_v42 }
  0x38   :  { %417 = vmatpush.msrb.mxu0 %v93_v44  ;;  %436 = vmatpush.msrb.mxu1 %v110_v45 }
  0x39   :  { %457 = vmatpush.msrb.mxu2 %v125_v47  ;;  %476 = vmatpush.msrb.mxu3 %v142_v52 }
  0x3a   :  { %418 = vmatpush.msrb.mxu0 %v92_v53  ;;  %437 = vmatpush.msrb.mxu1 %v109_v54 }
  0x3b   :  { %458 = vmatpush.msrb.mxu2 %v124_v55  ;;  %477 = vmatpush.msrb.mxu3 %v141_v56 }
  0x3c   :  { %419 = vmatpush.msrb.mxu0 %v91_v57  ;;  %438 = vmatpush.msrb.mxu1 %v108_v58 }
  0x3d   :  { %459 = vmatpush.msrb.mxu2 %v123_v59  ;;  %478 = vmatpush.msrb.mxu3 %v140_v60 }
  0x3e   :  { %420 = vmatpush.msrb.mxu0 %v90_v61  ;;  %439 = vmatpush.msrb.mxu1 %v107_v62 }
  0x3f   :  { %460 = vmatpush.msrb.mxu2 %v122_v4  ;;  %479 = vmatpush.msrb.mxu3 %v139_v5 }
  0x40   :  { %421 = vmatpush.msrb.mxu0 %v89_v6  ;;  %440 = vmatpush.msrb.mxu1 %v106_v7 }
  0x41   :  { %461 = vmatpush.msrb.mxu2 %v121_v8  ;;  %480 = vmatpush.msrb.mxu3 %v138_v9 }
  0x42   :  { %342 = vmatmul.f32.vlgmr.msra.gmra.mxu0 %v292_v48  ;;  %382 = vmatmul.f32.vlgmr.msra.gmra.mxu2 %v294_v49 }
  0x43   :  { %486 = vmatpush.msra.mxu0 %v168_v10  ;;  %526 = vmatpush.msra.mxu2 %v200_v11 }
  0x44   :  { %441 = vmatpush.msrb.mxu1 %v105_v12  ;;  %481 = vmatpush.msrb.mxu3 %v137_v13 }
  0x45   :  { %362 = vmatmul.f32.vlgmr.msra.gmra.mxu1 %v1114_v50  ;;  %402 = vmatmul.f32.vlgmr.msra.gmra.mxu3 %v1116_v51 }
  0x46   :  { %487 = vmatpush.msra.mxu0 %v167_v14  ;;  %506 = vmatpush.msra.mxu1 %v184_v15 }
  0x47   :  { %527 = vmatpush.msra.mxu2 %v199_v16  ;;  %546 = vmatpush.msra.mxu3 %v216_v17 }
  0x48   :  { %488 = vmatpush.msra.mxu0 %v166_v18  ;;  %507 = vmatpush.msra.mxu1 %v183_v19 }
  0x49   :  { %528 = vmatpush.msra.mxu2 %v198_v20  ;;  %547 = vmatpush.msra.mxu3 %v215_v21 }
  0x4a   :  { %489 = vmatpush.msra.mxu0 %v165_v22  ;;  %508 = vmatpush.msra.mxu1 %v182_v23 }
  0x4b   :  { %529 = vmatpush.msra.mxu2 %v197_v24  ;;  %548 = vmatpush.msra.mxu3 %v214_v25 }
  0x4c   :  { %10 = vsyncpa [#allocation3], 0  ;;  %462 = vmatmul.f32.vlgmr.msrb.gmra.mxu2 %v1154_v0  ;;  %490 = vmatpush.msra.mxu0 %v164_v26  ;;  %v163_v30 = vld [vmem:[%s1591_s1 + $0x450] sm:$0xff]  ;;  %v180_v31 = vld [vmem:[%s1591_s1 + $0x4d8] sm:$0xff]  ;;  %vm646_vm0 = vcmask 1041408   ;;  %s747_s6 = smov [#allocation2]  }
  0x4d   :  { %509 = vmatpush.msra.mxu1 %v181_v27  ;;  %530 = vmatpush.msra.mxu2 %v196_v28  ;;  %v195_v32 = vld [vmem:[%s1591_s1 + $0x550] sm:$0xff]  ;;  %v212_v33 = vld [vmem:[%s1591_s1 + $0x5d8] sm:$0xff]  ;;  %v162_v34 = vld [vmem:[%s1591_s1 + $0x448] sm:$0xff]  ;;  %s700_s7 = sshll.u32 %s747_s6, 4  ;;  %s702_s10 = sshll.u32 %s1595_s5, 4  ;;  %s701_s7 = int_to_ptr.vmem [resolvable:$true] %s700_s7  ;;  %s703_s10 = int_to_ptr.hbm [resolvable:$true] %s702_s10 }
  0x4e   :  { %549 = vmatpush.msra.mxu3 %v213_v29  ;;  %422 = vmatmul.f32.vlgmr.msrb.gmra.mxu0 %v1156_v1  ;;  %v179_v35 = vld [vmem:[%s1591_s1 + $0x4d0] sm:$0xff]  ;;  %v194_v36 = vld [vmem:[%s1591_s1 + $0x548] sm:$0xff]  ;;  %v161_v38 = vld [vmem:[%s1591_s1 + $0x440] sm:$0xff] }
  0x4f   :  { %482 = vmatmul.f32.vlgmr.msrb.gmra.mxu3 %v1158_v2  ;;  %491 = vmatpush.msra.mxu0 %v163_v30  ;;  %v211_v37 = vld [vmem:[%s1591_s1 + $0x5d0] sm:$0xff]  ;;  %v178_v39 = vld [vmem:[%s1591_s1 + $0x4c8] sm:$0xff]  ;;  %v193_v40 = vld [vmem:[%s1591_s1 + $0x540] sm:$0xff] }
  0x50   :  { %510 = vmatpush.msra.mxu1 %v180_v31  ;;  %531 = vmatpush.msra.mxu2 %v195_v32  ;;  %v210_v41 = vld [vmem:[%s1591_s1 + $0x5c8] sm:$0xff]  ;;  %v160_v42 = vld [vmem:[%s1591_s1 + $0x438] sm:$0xff]  ;;  %v177_v43 = vld [vmem:[%s1591_s1 + $0x4c0] sm:$0xff] }
  0x51   :  { %550 = vmatpush.msra.mxu3 %v212_v33  ;;  %442 = vmatmul.f32.vlgmr.msrb.gmra.mxu1 %v1160_v3  ;;  %v192_v44 = vld [vmem:[%s1591_s1 + $0x538] sm:$0xff]  ;;  %v209_v45 = vld [vmem:[%s1591_s1 + $0x5c0] sm:$0xff]  ;;  %v159_v46 = vld [vmem:[%s1591_s1 + $0x430] sm:$0xff] }
  0x52   :  { %492 = vmatpush.msra.mxu0 %v162_v34  ;;  %511 = vmatpush.msra.mxu1 %v179_v35  ;;  %v176_v47 = vld [vmem:[%s1591_s1 + $0x4b8] sm:$0xff]  ;;  %v191_v48 = vld [vmem:[%s1591_s1 + $0x530] sm:$0xff]  ;;  %v158_v50 = vld [vmem:[%s1591_s1 + $0x428] sm:$0xff] }
  0x53   :  { %532 = vmatpush.msra.mxu2 %v194_v36  ;;  %551 = vmatpush.msra.mxu3 %v211_v37  ;;  %v208_v49 = vld [vmem:[%s1591_s1 + $0x5b8] sm:$0xff]  ;;  %v175_v51 = vld [vmem:[%s1591_s1 + $0x4b0] sm:$0xff]  ;;  %v190_v52 = vld [vmem:[%s1591_s1 + $0x528] sm:$0xff] }
  0x54   :  { %493 = vmatpush.msra.mxu0 %v161_v38  ;;  %512 = vmatpush.msra.mxu1 %v178_v39  ;;  %v207_v53 = vld [vmem:[%s1591_s1 + $0x5b0] sm:$0xff]  ;;  %v157_v54 = vld [vmem:[%s1591_s1 + $0x420] sm:$0xff]  ;;  %v174_v55 = vld [vmem:[%s1591_s1 + $0x4a8] sm:$0xff] }
  0x55   :  { %533 = vmatpush.msra.mxu2 %v193_v40  ;;  %552 = vmatpush.msra.mxu3 %v210_v41  ;;  %v189_v56 = vld [vmem:[%s1591_s1 + $0x520] sm:$0xff]  ;;  %v206_v57 = vld [vmem:[%s1591_s1 + $0x5a8] sm:$0xff]  ;;  %v156_v58 = vld [vmem:[%s1591_s1 + $0x418] sm:$0xff] }
  0x56   :  { %494 = vmatpush.msra.mxu0 %v160_v42  ;;  %513 = vmatpush.msra.mxu1 %v177_v43  ;;  %v173_v59 = vld [vmem:[%s1591_s1 + $0x4a0] sm:$0xff]  ;;  %v188_v60 = vld [vmem:[%s1591_s1 + $0x518] sm:$0xff]  ;;  %v155_v62 = vld [vmem:[%s1591_s1 + $0x410] sm:$0xff] }
  0x57   :  { %534 = vmatpush.msra.mxu2 %v192_v44  ;;  %553 = vmatpush.msra.mxu3 %v209_v45  ;;  %v205_v61 = vld [vmem:[%s1591_s1 + $0x5a0] sm:$0xff]  ;;  %v172_v63 = vld [vmem:[%s1591_s1 + $0x498] sm:$0xff]  ;;  %v187_v0 = vld [vmem:[%s1591_s1 + $0x510] sm:$0xff] }
  0x58   :  { %495 = vmatpush.msra.mxu0 %v159_v46  ;;  %514 = vmatpush.msra.mxu1 %v176_v47  ;;  %v204_v1 = vld [vmem:[%s1591_s1 + $0x598] sm:$0xff]  ;;  %v154_v2 = vld [vmem:[%s1591_s1 + $0x408] sm:$0xff]  ;;  %v171_v3 = vld [vmem:[%s1591_s1 + $0x490] sm:$0xff] }
  0x59   :  { %535 = vmatpush.msra.mxu2 %v191_v48  ;;  %554 = vmatpush.msra.mxu3 %v208_v49  ;;  %v186_v4 = vld [vmem:[%s1591_s1 + $0x508] sm:$0xff]  ;;  %v203_v5 = vld [vmem:[%s1591_s1 + $0x590] sm:$0xff]  ;;  %v153_v6 = vld [vmem:[%s1591_s1 + $0x400] sm:$0xff] }
  0x5a   :  { %496 = vmatpush.msra.mxu0 %v158_v50  ;;  %515 = vmatpush.msra.mxu1 %v175_v51  ;;  %v170_v7 = vld [vmem:[%s1591_s1 + $0x488] sm:$0xff]  ;;  %v185_v8 = vld [vmem:[%s1591_s1 + $0x500] sm:$0xff]  ;;  %v304_v11 = vld.sshfl [vmem:[#allocation1 + $0x10] sm:$0xff pattern:$0x73625140] }
  0x5b   :  { %536 = vmatpush.msra.mxu2 %v190_v52  ;;  %555 = vmatpush.msra.mxu3 %v207_v53  ;;  %v202_v9 = vld [vmem:[%s1591_s1 + $0x588] sm:$0xff]  ;;  %v302_v10 = vld.sshfl [vmem:[#allocation1] sm:$0xff pattern:$0x73625140]  ;;  %v232_v12 = vld [vmem:[%s1591_s1 + $0x678] sm:$0xff] }
  0x5c   :  { %497 = vmatpush.msra.mxu0 %v157_v54  ;;  %516 = vmatpush.msra.mxu1 %v174_v55  ;;  %v264_v13 = vld [vmem:[%s1591_s1 + $0x778] sm:$0xff]  ;;  %v169_v14 = vld [vmem:[%s1591_s1 + $0x480] sm:$0xff]  ;;  %v303_v16 = vld.sshfl [vmem:[#allocation1 + $0x8] sm:$0xff pattern:$0x73625140] }
  0x5d   :  { %537 = vmatpush.msra.mxu2 %v189_v56  ;;  %556 = vmatpush.msra.mxu3 %v206_v57  ;;  %v201_v15 = vld [vmem:[%s1591_s1 + $0x580] sm:$0xff]  ;;  %v305_v17 = vld.sshfl [vmem:[#allocation1 + $0x18] sm:$0xff pattern:$0x73625140]  ;;  %v231_v18 = vld [vmem:[%s1591_s1 + $0x670] sm:$0xff] }
  0x5e   :  { %498 = vmatpush.msra.mxu0 %v156_v58  ;;  %517 = vmatpush.msra.mxu1 %v173_v59  ;;  %v248_v19 = vld [vmem:[%s1591_s1 + $0x6f8] sm:$0xff]  ;;  %v263_v20 = vld [vmem:[%s1591_s1 + $0x770] sm:$0xff]  ;;  %v230_v22 = vld [vmem:[%s1591_s1 + $0x668] sm:$0xff] }
  0x5f   :  { %538 = vmatpush.msra.mxu2 %v188_v60  ;;  %557 = vmatpush.msra.mxu3 %v205_v61  ;;  %v280_v21 = vld [vmem:[%s1591_s1 + $0x7f8] sm:$0xff]  ;;  %v247_v23 = vld [vmem:[%s1591_s1 + $0x6f0] sm:$0xff]  ;;  %v262_v24 = vld [vmem:[%s1591_s1 + $0x768] sm:$0xff] }
  0x60   :  { %499 = vmatpush.msra.mxu0 %v155_v62  ;;  %518 = vmatpush.msra.mxu1 %v172_v63  ;;  %v279_v25 = vld [vmem:[%s1591_s1 + $0x7f0] sm:$0xff]  ;;  %v229_v26 = vld [vmem:[%s1591_s1 + $0x660] sm:$0xff]  ;;  %v246_v27 = vld [vmem:[%s1591_s1 + $0x6e8] sm:$0xff] }
  0x61   :  { %539 = vmatpush.msra.mxu2 %v187_v0  ;;  %558 = vmatpush.msra.mxu3 %v204_v1  ;;  %v261_v28 = vld [vmem:[%s1591_s1 + $0x760] sm:$0xff]  ;;  %v278_v29 = vld [vmem:[%s1591_s1 + $0x7e8] sm:$0xff]  ;;  %v228_v30 = vld [vmem:[%s1591_s1 + $0x658] sm:$0xff] }
  0x62   :  { %500 = vmatpush.msra.mxu0 %v154_v2  ;;  %519 = vmatpush.msra.mxu1 %v171_v3  ;;  %v245_v31 = vld [vmem:[%s1591_s1 + $0x6e0] sm:$0xff]  ;;  %v260_v32 = vld [vmem:[%s1591_s1 + $0x758] sm:$0xff]  ;;  %v227_v34 = vld [vmem:[%s1591_s1 + $0x650] sm:$0xff] }
  0x63   :  { %540 = vmatpush.msra.mxu2 %v186_v4  ;;  %559 = vmatpush.msra.mxu3 %v203_v5  ;;  %v277_v33 = vld [vmem:[%s1591_s1 + $0x7e0] sm:$0xff]  ;;  %v244_v35 = vld [vmem:[%s1591_s1 + $0x6d8] sm:$0xff]  ;;  %v259_v36 = vld [vmem:[%s1591_s1 + $0x750] sm:$0xff] }
  0x64   :  { %501 = vmatpush.msra.mxu0 %v153_v6  ;;  %520 = vmatpush.msra.mxu1 %v170_v7  ;;  %v276_v37 = vld [vmem:[%s1591_s1 + $0x7d8] sm:$0xff]  ;;  %v226_v38 = vld [vmem:[%s1591_s1 + $0x648] sm:$0xff]  ;;  %v243_v39 = vld [vmem:[%s1591_s1 + $0x6d0] sm:$0xff] }
  0x65   :  { %541 = vmatpush.msra.mxu2 %v185_v8  ;;  %560 = vmatpush.msra.mxu3 %v202_v9  ;;  %v258_v40 = vld [vmem:[%s1591_s1 + $0x748] sm:$0xff]  ;;  %v275_v41 = vld [vmem:[%s1591_s1 + $0x7d0] sm:$0xff]  ;;  %v225_v42 = vld [vmem:[%s1591_s1 + $0x640] sm:$0xff] }
  0x66   :  { %502 = vmatmul.f32.vlgmr.msra.gmra.mxu0 %v302_v10  ;;  %542 = vmatmul.f32.vlgmr.msra.gmra.mxu2 %v304_v11  ;;  %v242_v43 = vld [vmem:[%s1591_s1 + $0x6c8] sm:$0xff]  ;;  %v257_v44 = vld [vmem:[%s1591_s1 + $0x740] sm:$0xff]  ;;  %v224_v46 = vld [vmem:[%s1591_s1 + $0x638] sm:$0xff] }
  0x67   :  { %566 = vmatpush.msrb.mxu0 %v232_v12  ;;  %606 = vmatpush.msrb.mxu2 %v264_v13  ;;  %v274_v45 = vld [vmem:[%s1591_s1 + $0x7c8] sm:$0xff]  ;;  %v241_v47 = vld [vmem:[%s1591_s1 + $0x6c0] sm:$0xff]  ;;  %v256_v48 = vld [vmem:[%s1591_s1 + $0x738] sm:$0xff] }
  0x68   :  { %521 = vmatpush.msra.mxu1 %v169_v14  ;;  %561 = vmatpush.msra.mxu3 %v201_v15  ;;  %v273_v49 = vld [vmem:[%s1591_s1 + $0x7c0] sm:$0xff]  ;;  %v223_v50 = vld [vmem:[%s1591_s1 + $0x630] sm:$0xff]  ;;  %v240_v51 = vld [vmem:[%s1591_s1 + $0x6b8] sm:$0xff] }
  0x69   :  { %522 = vmatmul.f32.vlgmr.msra.gmra.mxu1 %v303_v16  ;;  %562 = vmatmul.f32.vlgmr.msra.gmra.mxu3 %v305_v17  ;;  %v255_v52 = vld [vmem:[%s1591_s1 + $0x730] sm:$0xff]  ;;  %v272_v53 = vld [vmem:[%s1591_s1 + $0x7b8] sm:$0xff]  ;;  %v222_v54 = vld [vmem:[%s1591_s1 + $0x628] sm:$0xff] }
  0x6a   :  { %567 = vmatpush.msrb.mxu0 %v231_v18  ;;  %586 = vmatpush.msrb.mxu1 %v248_v19  ;;  %v239_v55 = vld [vmem:[%s1591_s1 + $0x6b0] sm:$0xff]  ;;  %v254_v56 = vld [vmem:[%s1591_s1 + $0x728] sm:$0xff]  ;;  %v221_v58 = vld [vmem:[%s1591_s1 + $0x620] sm:$0xff] }
  0x6b   :  { %607 = vmatpush.msrb.mxu2 %v263_v20  ;;  %626 = vmatpush.msrb.mxu3 %v280_v21  ;;  %v271_v57 = vld [vmem:[%s1591_s1 + $0x7b0] sm:$0xff]  ;;  %v238_v59 = vld [vmem:[%s1591_s1 + $0x6a8] sm:$0xff]  ;;  %v253_v60 = vld [vmem:[%s1591_s1 + $0x720] sm:$0xff] }
  0x6c   :  { %568 = vmatpush.msrb.mxu0 %v230_v22  ;;  %587 = vmatpush.msrb.mxu1 %v247_v23  ;;  %v270_v61 = vld [vmem:[%s1591_s1 + $0x7a8] sm:$0xff]  ;;  %v220_v62 = vld [vmem:[%s1591_s1 + $0x618] sm:$0xff]  ;;  %v237_v63 = vld [vmem:[%s1591_s1 + $0x6a0] sm:$0xff] }
  0x6d   :  { %608 = vmatpush.msrb.mxu2 %v262_v24  ;;  %627 = vmatpush.msrb.mxu3 %v279_v25  ;;  %v252_v0 = vld [vmem:[%s1591_s1 + $0x718] sm:$0xff]  ;;  %v269_v1 = vld [vmem:[%s1591_s1 + $0x7a0] sm:$0xff]  ;;  %v219_v2 = vld [vmem:[%s1591_s1 + $0x610] sm:$0xff] }
  0x6e   :  { %569 = vmatpush.msrb.mxu0 %v229_v26  ;;  %588 = vmatpush.msrb.mxu1 %v246_v27  ;;  %v236_v3 = vld [vmem:[%s1591_s1 + $0x698] sm:$0xff]  ;;  %v251_v4 = vld [vmem:[%s1591_s1 + $0x710] sm:$0xff]  ;;  %v218_v6 = vld [vmem:[%s1591_s1 + $0x608] sm:$0xff] }
  0x6f   :  { %609 = vmatpush.msrb.mxu2 %v261_v28  ;;  %628 = vmatpush.msrb.mxu3 %v278_v29  ;;  %v268_v5 = vld [vmem:[%s1591_s1 + $0x798] sm:$0xff]  ;;  %v235_v7 = vld [vmem:[%s1591_s1 + $0x690] sm:$0xff]  ;;  %v250_v8 = vld [vmem:[%s1591_s1 + $0x708] sm:$0xff] }
  0x70   :  { %570 = vmatpush.msrb.mxu0 %v228_v30  ;;  %589 = vmatpush.msrb.mxu1 %v245_v31  ;;  %v267_v9 = vld [vmem:[%s1591_s1 + $0x790] sm:$0xff]  ;;  %v217_v10 = vld [vmem:[%s1591_s1 + $0x600] sm:$0xff]  ;;  %v234_v11 = vld [vmem:[%s1591_s1 + $0x688] sm:$0xff] }
  0x71   :  { %610 = vmatpush.msrb.mxu2 %v260_v32  ;;  %629 = vmatpush.msrb.mxu3 %v277_v33  ;;  %v249_v12 = vld [vmem:[%s1591_s1 + $0x700] sm:$0xff]  ;;  %v266_v13 = vld [vmem:[%s1591_s1 + $0x788] sm:$0xff]  ;;  %v308_v15 = vld.sshfl [vmem:[#allocation1 + $0x30] sm:$0xff pattern:$0x73625140] }
  0x72   :  { %571 = vmatpush.msrb.mxu0 %v227_v34  ;;  %590 = vmatpush.msrb.mxu1 %v244_v35  ;;  %v306_v14 = vld.sshfl [vmem:[#allocation1 + $0x20] sm:$0xff pattern:$0x73625140]  ;;  %v307_v18 = vld.sshfl [vmem:[#allocation1 + $0x28] sm:$0xff pattern:$0x73625140] }
  0x73   :  { %611 = vmatpush.msrb.mxu2 %v259_v36  ;;  %630 = vmatpush.msrb.mxu3 %v276_v37  ;;  %v233_v16 = vld [vmem:[%s1591_s1 + $0x680] sm:$0xff]  ;;  %v309_v19 = vld.sshfl [vmem:[#allocation1 + $0x38] sm:$0xff pattern:$0x73625140] }
  0x74   :  { %572 = vmatpush.msrb.mxu0 %v226_v38  ;;  %591 = vmatpush.msrb.mxu1 %v243_v39  ;;  %v265_v17 = vld [vmem:[%s1591_s1 + $0x780] sm:$0xff] }
  0x75   :  { %612 = vmatpush.msrb.mxu2 %v258_v40  ;;  %631 = vmatpush.msrb.mxu3 %v275_v41  ;;  %v713_v20 = vld [vmem:[%s1592_s2] ss:$0 sm:$0xff] }
  0x76   :  { %573 = vmatpush.msrb.mxu0 %v225_v42  ;;  %592 = vmatpush.msrb.mxu1 %v242_v43 }
  0x77   :  { %613 = vmatpush.msrb.mxu2 %v257_v44  ;;  %632 = vmatpush.msrb.mxu3 %v274_v45  ;;  %v746_v44 = vmov 2.0  }
  0x78   :  { %574 = vmatpush.msrb.mxu0 %v224_v46  ;;  %593 = vmatpush.msrb.mxu1 %v241_v47  ;;  %716 = vrcp.f32 %v746_v44 }
  0x79   :  { %614 = vmatpush.msrb.mxu2 %v256_v48  ;;  %633 = vmatpush.msrb.mxu3 %v273_v49 }
  0x7a   :  { %575 = vmatpush.msrb.mxu0 %v223_v50  ;;  %594 = vmatpush.msrb.mxu1 %v240_v51 }
  0x7b   :  { %615 = vmatpush.msrb.mxu2 %v255_v52  ;;  %634 = vmatpush.msrb.mxu3 %v272_v53 }
  0x7c   :  { %576 = vmatpush.msrb.mxu0 %v222_v54  ;;  %595 = vmatpush.msrb.mxu1 %v239_v55 }
  0x7d   :  { %616 = vmatpush.msrb.mxu2 %v254_v56  ;;  %635 = vmatpush.msrb.mxu3 %v271_v57 }
  0x7e   :  { %577 = vmatpush.msrb.mxu0 %v221_v58  ;;  %596 = vmatpush.msrb.mxu1 %v238_v59  ;;  %v717_v48 = vpop.eup %716 }
  0x7f   :  { %617 = vmatpush.msrb.mxu2 %v253_v60  ;;  %636 = vmatpush.msrb.mxu3 %v270_v61  ;;  %v655_v51 = vmul.f32 2.0, %v717_v48  ;;  %vm659_vm1 = vweird.f32 %v717_v48 }
  0x80   :  { %578 = vmatpush.msrb.mxu0 %v220_v62  ;;  %597 = vmatpush.msrb.mxu1 %v237_v63 }
  0x81   :  { %618 = vmatpush.msrb.mxu2 %v252_v0  ;;  %637 = vmatpush.msrb.mxu3 %v269_v1  ;;  %v656_v56 = vsub.f32 1.0, %v655_v51 }
  0x82   :  { %579 = vmatpush.msrb.mxu0 %v219_v2  ;;  %598 = vmatpush.msrb.mxu1 %v236_v3 }
  0x83   :  { %619 = vmatpush.msrb.mxu2 %v251_v4  ;;  %638 = vmatpush.msrb.mxu3 %v268_v5  ;;  %v657_v59 = vmul.f32 %v717_v48, %v656_v56 }
  0x84   :  { %580 = vmatpush.msrb.mxu0 %v218_v6  ;;  %599 = vmatpush.msrb.mxu1 %v235_v7 }
  0x85   :  { %620 = vmatpush.msrb.mxu2 %v250_v8  ;;  %639 = vmatpush.msrb.mxu3 %v267_v9  ;;  %v658_v62 = vadd.f32 %v717_v48, %v657_v59 }
  0x86   :  { %581 = vmatpush.msrb.mxu0 %v217_v10  ;;  %600 = vmatpush.msrb.mxu1 %v234_v11 }
  0x87   :  { %621 = vmatpush.msrb.mxu2 %v249_v12  ;;  %640 = vmatpush.msrb.mxu3 %v266_v13  ;;  %v660_v1 = vsel %vm659_vm1, %v717_v48, %v658_v62 }
  0x88   :  { %582 = vmatmul.f32.vlgmr.msrb.gmra.mxu0 %v306_v14  ;;  %622 = vmatmul.f32.vlgmr.msrb.gmra.mxu2 %v308_v15 }
  0x89   :  { %601 = vmatpush.msrb.mxu1 %v233_v16  ;;  %641 = vmatpush.msrb.mxu3 %v265_v17 }
  0x8a   :  { %602 = vmatmul.f32.vlgmr.msrb.gmra.mxu1 %v307_v18  ;;  %642 = vmatmul.f32.vlgmr.msrb.gmra.mxu3 %v309_v19 }
  0xbf   :  { %v343_v21 = vpop.f32.mrf.mxu0 }
  0xc0   :  { %v344_v22 = vadd.f32 %v713_v20, %v343_v21  ;;  %v714_v21 = vld [vmem:[%s1593_s3] ss:$0 sm:$0xff] }
  0xc2   :  { %v363_v23 = vpop.f32.mrf.mxu1 }
  0xc3   :  { %v364_v24 = vadd.f32 %v363_v23, %v344_v22 }
  0xc5   :  { %v383_v25 = vpop.f32.mrf.mxu2 }
  0xc6   :  { %v384_v26 = vadd.f32 %v383_v25, %v364_v24  ;;  %v715_v24 = vld [vmem:[%s1594_s4] ss:$0 sm:$0xff] }
  0xc8   :  { %v403_v27 = vpop.f32.mrf.mxu3 }
  0xc9   :  { %v404_v28 = vadd.f32 %v403_v27, %v384_v26 }
  0xcb   :  { %v423_v29 = vpop.f32.mrf.mxu0 }
  0xcc   :  { %v424_v30 = vadd.f32 %v423_v29, %v404_v28 }
  0xce   :  { %v443_v31 = vpop.f32.mrf.mxu1 }
  0xcf   :  { %v444_v32 = vadd.f32 %v443_v31, %v424_v30  ;;  %v463_v33 = vpop.f32.mrf.mxu2 }
  0xd1   :  { %v464_v34 = vadd.f32 %v463_v33, %v444_v32 }
  0xd2   :  { %v483_v35 = vpop.f32.mrf.mxu3 }
  0xd3   :  { %v484_v37 = vadd.f32 %v483_v35, %v464_v34 }
  0xe3   :  { %v503_v36 = vpop.f32.mrf.mxu0 }
  0xe4   :  { %v504_v38 = vadd.f32 %v503_v36, %v484_v37 }
  0xe6   :  { %v523_v39 = vpop.f32.mrf.mxu1 }
  0xe7   :  { %v524_v41 = vadd.f32 %v523_v39, %v504_v38 }
  0xe9   :  { %v543_v40 = vpop.f32.mrf.mxu2 }
  0xea   :  { %v544_v42 = vadd.f32 %v543_v40, %v524_v41 }
  0xec   :  { %v563_v43 = vpop.f32.mrf.mxu3 }
  0xed   :  { %v564_v45 = vadd.f32 %v563_v43, %v544_v42 }
 0x105   :  { %v583_v46 = vpop.f32.mrf.mxu0 }
 0x106   :  { %v584_v47 = vadd.f32 %v583_v46, %v564_v45 }
 0x107   :  { %v603_v49 = vpop.f32.mrf.mxu1 }
 0x108   :  { %v604_v50 = vadd.f32 %v603_v49, %v584_v47 }
 0x10b   :  { %v623_v52 = vpop.f32.mrf.mxu2 }
 0x10c   :  { %v624_v53 = vadd.f32 %v623_v52, %v604_v50 }
 0x10d   :  { %v643_v54 = vpop.f32.mrf.mxu3 }
 0x10e   :  { %v644_v55 = vadd.f32 %v643_v54, %v624_v53 }
 0x110   :  { %v647_v57 = vsel %vm646_vm0, %v644_v55, 0.0 }
 0x111   :  { %v648_v58 = vrot.slane %v647_v57, 4 }
 0x113   :  { %v649_v60 = vadd.f32 %v648_v58, %v647_v57 }
 0x115   :  { %v650_v61 = vrot.slane %v649_v60, 2 }
 0x117   :  { %v651_v63 = vadd.f32 %v650_v61, %v649_v60 }
 0x119   :  { %v652_v0 = vrot.slane %v651_v63, 1 }
 0x11b   :  { %v653_v2 = vadd.f32 %v652_v0, %v651_v63 }
 0x11d   :  { %v661_v3 = vmul.f32 %v660_v1, %v653_v2 }
 0x11f   :  { %v662_v4 = vsub.f32 %v644_v55, %v661_v3 }
 0x121   :  { %v663_v5 = vmul.f32 %v662_v4, %v662_v4 }
 0x123   :  { %v664_v6 = vsel %vm646_vm0, %v663_v5, 0.0 }
 0x124   :  { %v665_v7 = vrot.slane %v664_v6, 4 }
 0x126   :  { %v666_v8 = vadd.f32 %v665_v7, %v664_v6 }
 0x128   :  { %v667_v9 = vrot.slane %v666_v8, 2 }
 0x12a   :  { %v668_v10 = vadd.f32 %v667_v9, %v666_v8 }
 0x12c   :  { %v669_v11 = vrot.slane %v668_v10, 1 }
 0x12e   :  { %v670_v12 = vadd.f32 %v669_v11, %v668_v10 }
 0x130   :  { %v671_v13 = vmul.f32 %v670_v12, %v660_v1 }
 0x132   :  { %v672_v14 = vadd.f32 1e-05, %v671_v13 }
 0x134   :  { %718 = vrsqrt.f32 %v672_v14  ;;  %vm679_vm3 = vweird.f32 %v672_v14 }
 0x13a   :  { %v719_v15 = vpop.eup %718 }
 0x13b   :  { %v674_v16 = vmul.f32 %v719_v15, %v672_v14  ;;  %vm680_vm2 = vweird.f32 %v719_v15 }
 0x13c   :  { %vm681_vm4 = vmor %vm679_vm3, %vm680_vm2 }
 0x13d   :  { %v675_v17 = vmul.f32 %v719_v15, %v674_v16 }
 0x13f   :  { %v676_v18 = vmul.f32 0.5, %v675_v17 }
 0x141   :  { %v677_v19 = vsub.f32 1.5, %v676_v18 }
 0x143   :  { %v678_v20 = vmul.f32 %v719_v15, %v677_v19 }
 0x145   :  { %v682_v22 = vsel %vm681_vm4, %v719_v15, %v678_v20 }
 0x146   :  { %v683_v23 = vmul.f32 %v682_v22, %v662_v4 }
 0x148   :  { %v688_v25 = vmul.f32 %v714_v21, %v683_v23 }
 0x14a   :  { %v693_v26 = vadd.f32 %v715_v24, %v688_v25 }
 0x14c   :  { %694 = vst [vmem:[#allocation2] sm:$0x3] %v693_v26 }
 0x14d   :  { %705 = dma.vmem_to_hbm [thread:$0]  %s701_s7, 32, %s703_s10, [#allocation3]  }
 0x14e   :  { %744 = dma.done.wait [#allocation3], 32  }
 0x14f   :  { %745 = vsyncadd [#allocation3], 4294967264 }
 0x150   :  { %710 = vsyncpa [#allocation3], 1 }

// kernel: encoder_forward.2
= control target key start
LH: loop header
LB: loop body
LE: loop exit
PB: predicated region body
PF: predicated region fallthrough
CT: control target
= control target key end

     0   :  { %s8943_s0 = inlined_call_operand.vmem [shape: bf16[8,3072], index: 0, kind: input, shape index: {}]   ;;  %s8944_s1 = inlined_call_operand.hbm [shape: bf16[3072,2048], index: 1, kind: input, shape index: {}]   ;;  %s8945_s2 = inlined_call_operand.hbm [shape: f32[1,2048], index: 2, kind: input, shape index: {}]   ;;  %s8946_s3 = inlined_call_operand.vmem [shape: f32[2,8], index: 3, kind: input, shape index: {}]   ;;  %s8947_s4 = inlined_call_operand.vmem [shape: f32[2,2048], index: 4, kind: output, shape index: {}]  }
   0x1   :  { %8951 = sst [smem:[#allocation12_spill]] %s8944_s1 }
   0x2   :  { %9 = vsyncpa [#allocation4], 0 }
   0x3   :  { %11 = vsyncpa [#allocation4 + $0x1], 0 }
   0x4   :  { %12 = vsyncpa [#allocation6], 0 }
   0x5   :  { %14 = vsyncpa [#allocation6 + $0x1], 0  ;;  %s7565_s15 = smov 0   ;;  %s7567_s16 = smov 0  }
   0x6   :  { %s7569_s17 = smov 0   ;;  %s7571_s18 = smov 0  }
   0x7   :  { %s7573_s19 = smov 0   ;;  %s7575_s20 = smov 0  }
   0x8   :  { %s7577_s21 = smov 0   ;;  %s7579_s22 = smov 0  }
   0x9   :  { %s7581_s23 = smov 0   ;;  %s7583_s24 = smov 0  }
   0xa   :  { %s7585_s25 = smov 0  }
   0xb LB: > { %8952 = sst [smem:[#allocation9_spill]] %s7530_s24  ;;  %s32_s26 = sadd.s32 1, %s7526_s23  ;;  %s7534_s25 = sphi %s7585_s25, %s20_s25   ;;  %s7530_s24 = sphi %s7583_s24, %s8971_s24   ;;  %s7526_s23 = sphi %s7581_s23, %s8970_s23   ;;  %s7522_s22 = sphi %s7579_s22, %s8960_s22   ;;  %s7518_s21 = sphi %s7577_s21, %s8969_s21   ;;  %s7514_s20 = sphi %s7575_s20, %s8968_s20   ;;  %s7510_s19 = sphi %s7573_s19, %s8967_s19   ;;  %s7506_s18 = sphi %s7571_s18, %s8966_s18   ;;  %s7502_s17 = sphi %s7569_s17, %s8965_s17   ;;  %s7498_s16 = sphi %s7567_s16, %s8964_s16   ;;  %s7494_s15 = sphi %s7565_s15, %s8963_s15  }
   0xc   : > { %p33_p0 = scmp.ge.s32.totalorder %s32_s26, 3  ;;  %s35_s27 = sadd.s32 1, %s7530_s24 }
   0xd   : > { %p83_p1 = scmp.ne.s32.totalorder %s7514_s20, %s7510_s19  ;;  %p84_p2 = scmp.eq.s32.totalorder %s7534_s25, 0 }
   0xe   : > { %s8973_s26 = smov (%p33_p0, %s32_s26), 0  ;;  %s8975_s27 = smov (!%p33_p0, %s35_s27), %s7530_s24 }
   0xf   : > { %8953 = sst [smem:[#allocation10_spill]] %s8973_s26  ;;  %s76_s28 = sadd.s32 1, %s7514_s20 }
  0x10   : > { %p85_p3 = por %p84_p2, %p83_p1  ;;  %p7287_p4 = scmp.lt.s32.totalorder %s7534_s25, 6 }
  0x11   : > { %s204_s29 = sand.u32 1, %s7514_s20   ;;  %s4691_s30 = sshll.u32 %s7530_s24, 3 }
  0x12   : > { %s4689_s5 = sshll.u32 %s204_s29, 12  ;;  %s6763_s6 = sshll.u32 %s7526_s23, 11 }
  0x13   : > { %s214_s7 = sadd.s32 %s6763_s6, %s4691_s30  ;;  %s208_s8 = scalar_lea.vmem [#allocation3], %s4689_s5 }
  0x14   : > { %s219_s9 = sshll.u32 %s208_s8, 4  ;;  %s4693_s10 = sshll.u32 %s214_s7, 2  ;;  %s220_s9 = int_to_ptr.vmem [resolvable:$true] %s219_s9 }
  0x15   : > { %s8954_s1 = sld [smem:[#allocation12_spill]]  ;;  %p7281_p5 = pnand %p7287_p4, %p85_p3 }
  0x16   : > { %s205_s6 = scalar_lea.sflag [#allocation4], %s204_s29  ;;  %s7536_s5 = smov 1024  }
  0x17   : > { %s7537_s7 = smov 512   ;;  %s7538_s8 = smov 32  }
  0x18   : > { %p4696_p6 = scmp.ge.s32.totalorder %s7534_s25, 1  ;;  %p246_p7 = scmp.lt.s32.totalorder %s7534_s25, 7 }
  0x19   : > { %s4685_s29 = sadd.s32 4294967295, %s7534_s25   ;;  %p37_p9 = scmp.ge.s32.totalorder %s8975_s27, 2 }
  0x1a   : > { %p7648_p8 = pnand %p4696_p6, %p246_p7  ;;  %p89_p10 = scmp.ne.s32.totalorder %s7510_s19, %s7506_s18 }
  0x1b   : > { %s216_s13 = scalar_lea.hbm %s8954_s1, %s4693_s10  ;;  %s71_s10 = ssub.s32 %s7526_s23, %s8973_s26 }
  0x1c   : > { %s217_s14 = sshll.u32 %s216_s13, 4  ;;  %p90_p11 = scmp.eq.s32.totalorder %s4685_s29, 0  ;;  %s218_s14 = int_to_ptr.hbm [resolvable:$true] %s217_s14 }
  0x1d   : > { %7283 = dma.hbm_to_vmem [thread:$0]  (!%p7281_p5), %s218_s14, 65536, %s220_s9, %s205_s6, %s7536_s5, %s7537_s7, %s7538_s8  }
  0x1e   : > { %s8977_s27 = smov (%p37_p9, %s8975_s27), 0  ;;  %p7659_p12 = por %p90_p11, %p89_p10 }
  0x1f   : > { %8956 = sst [smem:[#allocation11_spill]] %s8977_s27  ;;  %s102_s12 = sadd.s32 1, %s7502_s17 }
  0x20   : > { %s72_s13 = ssub.s32 %s7530_s24, %s8977_s27  ;;  %p115_p13 = scmp.ne.s32.totalorder %s7498_s16, %s7494_s15 }
  0x21   : > { %s73_s14 = sor.u32 %s72_s13, %s71_s10  ;;  %p100_p0 = scmp.eq.s32.totalorder %s72_s13, 0 }
  0x22   : > { %p74_p1 = scmp.eq.s32.totalorder %s73_s14, 0  ;;  %p109_p3 = scmp.ne.s32.totalorder %s7502_s17, %s7498_s16 }
  0x23   : > { %s7671_s6 = scalar_select %p100_p0, %s7502_s17, %s102_s12  }
  0x24   : > { %s7676_s18 = scalar_select %p74_p1, %s7514_s20, %s76_s28  }
  0x25   : > { %p7678_p5 = por %p115_p13, %p90_p11  ;;  %s229_s7 = sand.u32 1, %s7502_s17  }
  0x26   : > { %p111_p6 = por %p109_p3, %p84_p2  ;;  %s4694_s8 = sshll.u32 %s229_s7, 3 }
  0x27   : > { %s237_s29 = scalar_lea.hbm %s8945_s2, %s4691_s30  ;;  %s233_s14 = scalar_lea.vmem [#allocation5], %s4694_s8 }
  0x28   : > { %s239_s13 = sshll.u32 %s237_s29, 4  ;;  %s241_s12 = sshll.u32 %s233_s14, 4  ;;  %s240_s13 = int_to_ptr.hbm [resolvable:$true] %s239_s13  ;;  %s242_s12 = int_to_ptr.vmem [resolvable:$true] %s241_s12 }
  0x29   : > { %p7284_p7 = pnand %p7287_p4, %p111_p6  ;;  %s230_s28 = scalar_lea.sflag [#allocation6], %s229_s7 }
  0x2a   : > { %250 = sbr.rel (%p7648_p8) target bundleno = 1143 (0x477), region = 36  ;;  %s252_s1 = sand.u32 (!%p7648_p8), 1, %s7510_s19  }
  0x2b   : > { %7286 = dma.hbm_to_vmem [thread:$0]  (!%p7284_p7), %s240_s13, 128, %s242_s12, %s230_s28  }
  0x2c   : > { %s4697_s27 = sshll.u32 (!%p7648_p8), %s252_s1, 12  ;;  %s253_s26 = scalar_lea.sflag (!%p7648_p8), [#allocation4], %s252_s1 }
  0x2d   : > { %s7695_s24 = scalar_lea.vmem (!%p7648_p8), [#allocation3], %s4697_s27 }
  0x2f   : > { %7485 = dma.done.wait (%p7659_p12), %s253_s26, 65536  }
  0x30   : > { %7487 = vsyncadd (%p7659_p12), %s253_s26, 4294901760  ;;  %s262_s30 = sand.u32 1, %s7498_s16  }
  0x31   : > { %s7702_s7 = sshll.u32 %s262_s30, 3  ;;  %s263_s11 = scalar_lea.sflag [#allocation6], %s262_s30 }
  0x32   : > { %s266_s8 = scalar_lea.vmem [#allocation5], %s7702_s7 }
  0x33   : > { %7489 = dma.done.wait (%p7678_p5), %s263_s11, 128  }
  0x34   : > { %7491 = vsyncadd (%p7678_p5), %s263_s11, 4294967168  ;;  %s4699_s1 = sshll.u32 %s7518_s21, 3  ;;  %s4701_s27 = sshll.u32 %s7522_s22, 3 }
  0x35   : > { %p313_p2 = scmp.lt.s32.totalorder %s4699_s1, 23  ;;  %p326_p4 = scmp.lt.s32.totalorder %s4701_s27, 15 }
  0x36   : > { %p4703_p8 = scmp.ne.s32.totalorder %s7518_s21, 0 }
  0x37   : > { %s8979_s1 = smov (!%p313_p2, %s4699_s1), 23  ;;  %s8981_s27 = smov (!%p326_p4, %s4701_s27), 15 }
  0x38   : > { %s4700_s26 = sshll.u32 %s8979_s1, 2  ;;  %s4702_s29 = sshll.u32 %s8981_s27, 1 }
  0x39   : > { %s7714_s10 = scalar_lea.vmem %s8943_s0, %s4700_s26  ;;  %s7719_s5 = scalar_lea.vmem %s8947_s4, %s4702_s29 }
  0x3a   : > { %336 = sbr.rel (%p4703_p8) target bundleno = 72 (0x48), region = 48 }
  0x3f   : > { %v7539_v0 = vmov 0.0  }
  0x40   : > { %337 = vst [vmem:[#allocation2 + $0x30] sm:$0xff] %v7539_v0 }
  0x41   : > { %338 = vst [vmem:[#allocation2] sm:$0xff] %v7539_v0 }
  0x42   : > { %339 = vst [vmem:[#allocation2 + $0x18] sm:$0xff] %v7539_v0 }
  0x43   : > { %340 = vst [vmem:[#allocation2 + $0x10] sm:$0xff] %v7539_v0 }
  0x44   : > { %341 = vst [vmem:[#allocation2 + $0x8] sm:$0xff] %v7539_v0 }
  0x45   : > { %342 = vst [vmem:[#allocation2 + $0x20] sm:$0xff] %v7539_v0 }
  0x46   : > { %343 = vst [vmem:[#allocation2 + $0x28] sm:$0xff] %v7539_v0 }
  0x47   : > { %344 = vst [vmem:[#allocation2 + $0x38] sm:$0xff] %v7539_v0 }
  0x48 PF: > { %v4930_v1 = vld [vmem:[%s7695_s24 + $0x1c0] sm:$0xf]  ;;  %p6752_p9 = scmp.ne.s32.totalorder %s7518_s21, 2 }
  0x49   : > { %v6824_v2 = vld [vmem:[%s7695_s24 + $0x1dc] sm:$0xf0] }
  0x4a   : > { %v5186_v3 = vld [vmem:[%s7695_s24 + $0x3c0] sm:$0xf]  ;;  %v4931_v4 = vor.u32 %v6824_v2, %v4930_v1 }
  0x4b   : > { %v6888_v5 = vld [vmem:[%s7695_s24 + $0x3dc] sm:$0xf0] }
  0x4c   : > { %v5442_v6 = vld [vmem:[%s7695_s24 + $0x5c0] sm:$0xf]  ;;  %v5187_v8 = vor.u32 %v6888_v5, %v5186_v3  ;;  %3457 = vmatpush.bf16.msra.mxu0 %v4931_v4 }
  0x4d   : > { %v6952_v7 = vld [vmem:[%s7695_s24 + $0x5dc] sm:$0xf0] }
  0x4e   : > { %v5443_v9 = vor.u32 %v6952_v7, %v5442_v6  ;;  %v5698_v10 = vld [vmem:[%s7695_s24 + $0x7c0] sm:$0xf]  ;;  %3470 = vmatpush.bf16.msra.mxu1 %v5187_v8 }
  0x4f   : > { %v7016_v11 = vld [vmem:[%s7695_s24 + $0x7dc] sm:$0xf0] }
  0x50   : > { %v4898_v12 = vld [vmem:[%s7695_s24 + $0x180] sm:$0xf]  ;;  %v5699_v13 = vor.u32 %v7016_v11, %v5698_v10  ;;  %3483 = vmatpush.bf16.msra.mxu2 %v5443_v9 }
  0x51   : > { %v6816_v14 = vld [vmem:[%s7695_s24 + $0x19c] sm:$0xf0] }
  0x52   : > { %v5154_v15 = vld [vmem:[%s7695_s24 + $0x380] sm:$0xf]  ;;  %v4899_v17 = vor.u32 %v6816_v14, %v4898_v12  ;;  %3496 = vmatpush.bf16.msra.mxu3 %v5699_v13 }
  0x53   : > { %v6880_v16 = vld [vmem:[%s7695_s24 + $0x39c] sm:$0xf0] }
  0x54   : > { %v5155_v18 = vor.u32 %v6880_v16, %v5154_v15  ;;  %v5410_v19 = vld [vmem:[%s7695_s24 + $0x580] sm:$0xf]  ;;  %3458 = vmatpush.bf16.msra.mxu0 %v4899_v17 }
  0x55   : > { %v6944_v20 = vld [vmem:[%s7695_s24 + $0x59c] sm:$0xf0] }
  0x56   : > { %v5666_v21 = vld [vmem:[%s7695_s24 + $0x780] sm:$0xf]  ;;  %v5411_v22 = vor.u32 %v6944_v20, %v5410_v19  ;;  %3471 = vmatpush.bf16.msra.mxu1 %v5155_v18 }
  0x57   : > { %v7008_v23 = vld [vmem:[%s7695_s24 + $0x79c] sm:$0xf0] }
  0x58   : > { %v4866_v24 = vld [vmem:[%s7695_s24 + $0x140] sm:$0xf]  ;;  %v5667_v26 = vor.u32 %v7008_v23, %v5666_v21  ;;  %3484 = vmatpush.bf16.msra.mxu2 %v5411_v22 }
  0x59   : > { %v6808_v25 = vld [vmem:[%s7695_s24 + $0x15c] sm:$0xf0] }
  0x5a   : > { %v5122_v27 = vld [vmem:[%s7695_s24 + $0x340] sm:$0xf]  ;;  %v4867_v30 = vor.u32 %v6808_v25, %v4866_v24  ;;  %3497 = vmatpush.bf16.msra.mxu3 %v5667_v26 }
  0x5b   : > { %v6872_v28 = vld [vmem:[%s7695_s24 + $0x35c] sm:$0xf0] }
  0x5c   : > { %v5378_v29 = vld [vmem:[%s7695_s24 + $0x540] sm:$0xf]  ;;  %v5123_v34 = vor.u32 %v6872_v28, %v5122_v27  ;;  %3459 = vmatpush.bf16.msra.mxu0 %v4867_v30 }
  0x5d   : > { %v6936_v31 = vld [vmem:[%s7695_s24 + $0x55c] sm:$0xf0] }
  0x5e   : > { %v5634_v32 = vld [vmem:[%s7695_s24 + $0x740] sm:$0xf]  ;;  %v5379_v35 = vor.u32 %v6936_v31, %v5378_v29  ;;  %3472 = vmatpush.bf16.msra.mxu1 %v5123_v34 }
  0x5f   : > { %v7000_v33 = vld [vmem:[%s7695_s24 + $0x75c] sm:$0xf0] }
  0x60   : > { %v4834_v36 = vld [vmem:[%s7695_s24 + $0x100] sm:$0xf]  ;;  %v5635_v39 = vor.u32 %v7000_v33, %v5634_v32  ;;  %3485 = vmatpush.bf16.msra.mxu2 %v5379_v35 }
  0x61   : > { %v6800_v37 = vld [vmem:[%s7695_s24 + $0x11c] sm:$0xf0] }
  0x62   : > { %v5090_v38 = vld [vmem:[%s7695_s24 + $0x300] sm:$0xf]  ;;  %v4835_v45 = vor.u32 %v6800_v37, %v4834_v36  ;;  %3498 = vmatpush.bf16.msra.mxu3 %v5635_v39 }
  0x63   : > { %v6864_v40 = vld [vmem:[%s7695_s24 + $0x31c] sm:$0xf0] }
  0x64   : > { %v5346_v41 = vld [vmem:[%s7695_s24 + $0x500] sm:$0xf]  ;;  %v5091_v46 = vor.u32 %v6864_v40, %v5090_v38  ;;  %3460 = vmatpush.bf16.msra.mxu0 %v4835_v45 }
  0x65   : > { %v6928_v42 = vld [vmem:[%s7695_s24 + $0x51c] sm:$0xf0] }
  0x66   : > { %v5602_v43 = vld [vmem:[%s7695_s24 + $0x700] sm:$0xf]  ;;  %v5347_v47 = vor.u32 %v6928_v42, %v5346_v41  ;;  %3473 = vmatpush.bf16.msra.mxu1 %v5091_v46 }
  0x67   : > { %v6992_v44 = vld [vmem:[%s7695_s24 + $0x71c] sm:$0xf0] }
  0x68   : > { %v4802_v48 = vld [vmem:[%s7695_s24 + $0xc0] sm:$0xf]  ;;  %v5603_v51 = vor.u32 %v6992_v44, %v5602_v43  ;;  %3486 = vmatpush.bf16.msra.mxu2 %v5347_v47 }
  0x69   : > { %v6792_v49 = vld [vmem:[%s7695_s24 + $0xdc] sm:$0xf0] }
  0x6a   : > { %v5058_v50 = vld [vmem:[%s7695_s24 + $0x2c0] sm:$0xf]  ;;  %v4803_v57 = vor.u32 %v6792_v49, %v4802_v48  ;;  %3499 = vmatpush.bf16.msra.mxu3 %v5603_v51 }
  0x6b   : > { %v6856_v52 = vld [vmem:[%s7695_s24 + $0x2dc] sm:$0xf0] }
  0x6c   : > { %v5314_v53 = vld [vmem:[%s7695_s24 + $0x4c0] sm:$0xf]  ;;  %v5059_v58 = vor.u32 %v6856_v52, %v5058_v50  ;;  %3461 = vmatpush.bf16.msra.mxu0 %v4803_v57 }
  0x6d   : > { %v6920_v54 = vld [vmem:[%s7695_s24 + $0x4dc] sm:$0xf0] }
  0x6e   : > { %v5570_v55 = vld [vmem:[%s7695_s24 + $0x6c0] sm:$0xf]  ;;  %v5315_v59 = vor.u32 %v6920_v54, %v5314_v53  ;;  %3474 = vmatpush.bf16.msra.mxu1 %v5059_v58 }
  0x6f   : > { %v6984_v56 = vld [vmem:[%s7695_s24 + $0x6dc] sm:$0xf0] }
  0x70   : > { %v4770_v60 = vld [vmem:[%s7695_s24 + $0x80] sm:$0xf]  ;;  %v5571_v63 = vor.u32 %v6984_v56, %v5570_v55  ;;  %3487 = vmatpush.bf16.msra.mxu2 %v5315_v59  ;;  %v354_v59 = vld [vmem:[%s7714_s10 + $0x8] sm:$0xff] }
  0x71   : > { %v6784_v61 = vld [vmem:[%s7695_s24 + $0x9c] sm:$0xf0] }
  0x72   : > { %v5026_v62 = vld [vmem:[%s7695_s24 + $0x280] sm:$0xf]  ;;  %v4771_v5 = vor.u32 %v6784_v61, %v4770_v60  ;;  %3500 = vmatpush.bf16.msra.mxu3 %v5571_v63 }
  0x73   : > { %v6848_v0 = vld [vmem:[%s7695_s24 + $0x29c] sm:$0xf0] }
  0x74   : > { %v5282_v1 = vld [vmem:[%s7695_s24 + $0x480] sm:$0xf]  ;;  %v5027_v6 = vor.u32 %v6848_v0, %v5026_v62  ;;  %3462 = vmatpush.bf16.msra.mxu0 %v4771_v5  ;;  %v875_v0 = vunpack.c.l.b16 %v354_v59 }
  0x75   : > { %v6912_v2 = vld [vmem:[%s7695_s24 + $0x49c] sm:$0xf0] }
  0x76   : > { %v5538_v3 = vld [vmem:[%s7695_s24 + $0x680] sm:$0xf]  ;;  %v5283_v7 = vor.u32 %v6912_v2, %v5282_v1  ;;  %3475 = vmatpush.bf16.msra.mxu1 %v5027_v6  ;;  %v876_v1 = vunpack.c.h.b16 %v354_v59  ;;  %v7811_v5 = vpack.c.b16 %v875_v0, %v875_v0 }
  0x77   : > { %v6976_v4 = vld [vmem:[%s7695_s24 + $0x69c] sm:$0xf0] }
  0x78   : > { %v4738_v8 = vld [vmem:[%s7695_s24 + $0x40] sm:$0xf]  ;;  %v5539_v11 = vor.u32 %v6976_v4, %v5538_v3  ;;  %3488 = vmatpush.bf16.msra.mxu2 %v5283_v7  ;;  %v7814_v7 = vpack.c.b16 %v876_v1, %v876_v1 }
  0x79   : > { %v6776_v9 = vld [vmem:[%s7695_s24 + $0x5c] sm:$0xf0] }
  0x7a   : > { %v4994_v10 = vld [vmem:[%s7695_s24 + $0x240] sm:$0xf]  ;;  %v4739_v17 = vor.u32 %v6776_v9, %v4738_v8  ;;  %3501 = vmatpush.bf16.msra.mxu3 %v5539_v11 }
  0x7b   : > { %v6840_v12 = vld [vmem:[%s7695_s24 + $0x25c] sm:$0xf0] }
  0x7c   : > { %v5250_v13 = vld [vmem:[%s7695_s24 + $0x440] sm:$0xf]  ;;  %v4995_v20 = vor.u32 %v6840_v12, %v4994_v10  ;;  %3463 = vmatpush.bf16.msra.mxu0 %v4739_v17 }
  0x7d   : > { %v6904_v14 = vld [vmem:[%s7695_s24 + $0x45c] sm:$0xf0] }
  0x7e   : > { %v5506_v15 = vld [vmem:[%s7695_s24 + $0x640] sm:$0xf]  ;;  %v5251_v21 = vor.u32 %v6904_v14, %v5250_v13  ;;  %3476 = vmatpush.bf16.msra.mxu1 %v4995_v20 }
  0x7f   : > { %v6968_v16 = vld [vmem:[%s7695_s24 + $0x65c] sm:$0xf0] }
  0x80   : > { %v4706_v18 = vld [vmem:[%s7695_s24] sm:$0xf]  ;;  %v5507_v25 = vor.u32 %v6968_v16, %v5506_v15  ;;  %3489 = vmatpush.bf16.msra.mxu2 %v5251_v21 }
  0x81   : > { %v6768_v19 = vld [vmem:[%s7695_s24 + $0x1c] sm:$0xf0] }
  0x82   : > { %v4962_v22 = vld [vmem:[%s7695_s24 + $0x200] sm:$0xf]  ;;  %v4707_v32 = vor.u32 %v6768_v19, %v4706_v18  ;;  %3502 = vmatpush.bf16.msra.mxu3 %v5507_v25 }
  0x83   : > { %v6832_v23 = vld [vmem:[%s7695_s24 + $0x21c] sm:$0xf0] }
  0x84   : > { %v5218_v24 = vld [vmem:[%s7695_s24 + $0x400] sm:$0xf]  ;;  %v4963_v36 = vor.u32 %v6832_v23, %v4962_v22  ;;  %3464 = vmatpush.bf16.msra.mxu0 %v4707_v32 }
  0x85   : > { %v6896_v26 = vld [vmem:[%s7695_s24 + $0x41c] sm:$0xf0] }
  0x86   : > { %v5474_v27 = vld [vmem:[%s7695_s24 + $0x600] sm:$0xf]  ;;  %v5219_v37 = vor.u32 %v6896_v26, %v5218_v24  ;;  %3477 = vmatpush.bf16.msra.mxu1 %v4963_v36 }
  0x87   : > { %v6960_v28 = vld [vmem:[%s7695_s24 + $0x61c] sm:$0xf0] }
  0x88   : > { %v5954_v29 = vld [vmem:[%s7695_s24 + $0x9c0] sm:$0xf]  ;;  %v5475_v40 = vor.u32 %v6960_v28, %v5474_v27  ;;  %3490 = vmatpush.bf16.msra.mxu2 %v5219_v37 }
  0x89   : > { %v7080_v30 = vld [vmem:[%s7695_s24 + $0x9dc] sm:$0xf0] }
  0x8a   : > { %v6210_v31 = vld [vmem:[%s7695_s24 + $0xbc0] sm:$0xf]  ;;  %v5955_v41 = vor.u32 %v7080_v30, %v5954_v29  ;;  %3503 = vmatpush.bf16.msra.mxu3 %v5475_v40 }
  0x8b   : > { %v7144_v33 = vld [vmem:[%s7695_s24 + $0xbdc] sm:$0xf0]  ;;  %3491 = vmatmul.bf16.vlgmr.msra.gmra.mxu2 %v7811_v5 }
  0x8c   : > { %v6466_v34 = vld [vmem:[%s7695_s24 + $0xdc0] sm:$0xf]  ;;  %v6211_v42 = vor.u32 %v7144_v33, %v6210_v31  ;;  %3509 = vmatpush.bf16.msrb.mxu0 %v5955_v41 }
  0x8d   : > { %v7208_v35 = vld [vmem:[%s7695_s24 + $0xddc] sm:$0xf0]  ;;  %3504 = vmatmul.bf16.vlgmr.msra.gmra.mxu3 %v7814_v7 }
  0x8e   : > { %v6722_v38 = vld [vmem:[%s7695_s24 + $0xfc0] sm:$0xf]  ;;  %v6467_v43 = vor.u32 %v7208_v35, %v6466_v34  ;;  %3522 = vmatpush.bf16.msrb.mxu1 %v6211_v42 }
  0x8f   : > { %v7272_v39 = vld [vmem:[%s7695_s24 + $0xfdc] sm:$0xf0] }
  0x90   : > { %v5922_v44 = vld [vmem:[%s7695_s24 + $0x980] sm:$0xf]  ;;  %v6723_v47 = vor.u32 %v7272_v39, %v6722_v38  ;;  %3535 = vmatpush.bf16.msrb.mxu2 %v6467_v43 }
  0x91   : > { %v7072_v45 = vld [vmem:[%s7695_s24 + $0x99c] sm:$0xf0] }
  0x92   : > { %v6178_v46 = vld [vmem:[%s7695_s24 + $0xb80] sm:$0xf]  ;;  %v5923_v53 = vor.u32 %v7072_v45, %v5922_v44  ;;  %3548 = vmatpush.bf16.msrb.mxu3 %v6723_v47 }
  0x93   : > { %v7136_v48 = vld [vmem:[%s7695_s24 + $0xb9c] sm:$0xf0] }
  0x94   : > { %v6434_v49 = vld [vmem:[%s7695_s24 + $0xd80] sm:$0xf]  ;;  %v6179_v55 = vor.u32 %v7136_v48, %v6178_v46  ;;  %3510 = vmatpush.bf16.msrb.mxu0 %v5923_v53 }
  0x95   : > { %v7200_v50 = vld [vmem:[%s7695_s24 + $0xd9c] sm:$0xf0] }
  0x96   : > { %v6690_v51 = vld [vmem:[%s7695_s24 + $0xf80] sm:$0xf]  ;;  %v6435_v56 = vor.u32 %v7200_v50, %v6434_v49  ;;  %3523 = vmatpush.bf16.msrb.mxu1 %v6179_v55 }
  0x97   : > { %v7264_v52 = vld [vmem:[%s7695_s24 + $0xf9c] sm:$0xf0] }
  0x98   : > { %v5890_v54 = vld [vmem:[%s7695_s24 + $0x940] sm:$0xf]  ;;  %v6691_v60 = vor.u32 %v7264_v52, %v6690_v51  ;;  %3536 = vmatpush.bf16.msrb.mxu2 %v6435_v56 }
  0x99   : > { %v7064_v57 = vld [vmem:[%s7695_s24 + $0x95c] sm:$0xf0] }
  0x9a   : > { %v6146_v58 = vld [vmem:[%s7695_s24 + $0xb40] sm:$0xf]  ;;  %v5891_v4 = vor.u32 %v7064_v57, %v5890_v54  ;;  %3549 = vmatpush.bf16.msrb.mxu3 %v6691_v60 }
  0x9b   : > { %v7128_v61 = vld [vmem:[%s7695_s24 + $0xb5c] sm:$0xf0] }
  0x9c   : > { %v6402_v62 = vld [vmem:[%s7695_s24 + $0xd40] sm:$0xf]  ;;  %v6147_v8 = vor.u32 %v7128_v61, %v6146_v58  ;;  %3511 = vmatpush.bf16.msrb.mxu0 %v5891_v4  ;;  %v356_v4 = vld [vmem:[%s7714_s10 + $0x18] sm:$0xff] }
  0x9d   : > { %v7192_v63 = vld [vmem:[%s7695_s24 + $0xd5c] sm:$0xf0] }
  0x9e   : > { %v6658_v2 = vld [vmem:[%s7695_s24 + $0xf40] sm:$0xf]  ;;  %v6403_v9 = vor.u32 %v7192_v63, %v6402_v62  ;;  %3524 = vmatpush.bf16.msrb.mxu1 %v6147_v8 }
  0x9f   : > { %v7256_v3 = vld [vmem:[%s7695_s24 + $0xf5c] sm:$0xf0] }
  0xa0   : > { %v353_v6 = vld [vmem:[%s7714_s10] sm:$0xff]  ;;  %v6659_v15 = vor.u32 %v7256_v3, %v6658_v2  ;;  %3537 = vmatpush.bf16.msrb.mxu2 %v6403_v9 }
  0xa1   : > { %v5858_v10 = vld [vmem:[%s7695_s24 + $0x900] sm:$0xf]  ;;  %v873_v13 = vunpack.c.l.b16 %v353_v6  ;;  %v874_v14 = vunpack.c.h.b16 %v353_v6 }
  0xa2   : > { %v7056_v11 = vld [vmem:[%s7695_s24 + $0x91c] sm:$0xf0]  ;;  %3550 = vmatpush.bf16.msrb.mxu3 %v6659_v15  ;;  %v5188_v15 = vld [vmem:[%s7695_s24 + $0x3e0] sm:$0xf0] }
  0xa3   : > { %v6114_v12 = vld [vmem:[%s7695_s24 + $0xb00] sm:$0xf]  ;;  %v7825_v21 = vpack.c.b16 %v873_v13, %v873_v13  ;;  %v7828_v22 = vpack.c.b16 %v874_v14, %v874_v14  ;;  %v5859_v23 = vor.u32 %v7056_v11, %v5858_v10  ;;  %v355_v10 = vld [vmem:[%s7714_s10 + $0x10] sm:$0xff]  ;;  %v6820_v11 = vld [vmem:[%s7695_s24 + $0x1c4] sm:$0xf] }
  0xa4   : > { %v7120_v16 = vld [vmem:[%s7695_s24 + $0xb1c] sm:$0xf0]  ;;  %v6884_v13 = vld [vmem:[%s7695_s24 + $0x3c4] sm:$0xf] }
  0xa5   : > { %v6370_v17 = vld [vmem:[%s7695_s24 + $0xd00] sm:$0xf]  ;;  %v6115_v24 = vor.u32 %v7120_v16, %v6114_v12  ;;  %3465 = vmatmul.bf16.vlgmr.msra.gmra.mxu0 %v7825_v21  ;;  %3478 = vmatmul.bf16.vlgmr.msra.gmra.mxu1 %v7828_v22  ;;  %v4932_v12 = vld [vmem:[%s7695_s24 + $0x1e0] sm:$0xf0] }
  0xa6   : > { %v7184_v18 = vld [vmem:[%s7695_s24 + $0xd1c] sm:$0xf0]  ;;  %3512 = vmatpush.bf16.msrb.mxu0 %v5859_v23  ;;  %v6948_v16 = vld [vmem:[%s7695_s24 + $0x5c4] sm:$0xf] }
  0xa7   : > { %v6626_v19 = vld [vmem:[%s7695_s24 + $0xf00] sm:$0xf]  ;;  %v6371_v25 = vor.u32 %v7184_v18, %v6370_v17  ;;  %3525 = vmatpush.bf16.msrb.mxu1 %v6115_v24  ;;  %v5444_v17 = vld [vmem:[%s7695_s24 + $0x5e0] sm:$0xf0]  ;;  %v879_v18 = vunpack.c.l.b16 %v356_v4 }
  0xa8   : > { %v7248_v20 = vld [vmem:[%s7695_s24 + $0xf1c] sm:$0xf0]  ;;  %v7012_v23 = vld [vmem:[%s7695_s24 + $0x7c4] sm:$0xf] }
  0xa9   : > { %v5826_v26 = vld [vmem:[%s7695_s24 + $0x8c0] sm:$0xf]  ;;  %v6627_v29 = vor.u32 %v7248_v20, %v6626_v19  ;;  %3538 = vmatpush.bf16.msrb.mxu2 %v6371_v25  ;;  %v5700_v24 = vld [vmem:[%s7695_s24 + $0x7e0] sm:$0xf0]  ;;  %v877_v25 = vunpack.c.l.b16 %v355_v10 }
  0xaa   : > { %v7048_v27 = vld [vmem:[%s7695_s24 + $0x8dc] sm:$0xf0] }
  0xab   : > { %v6082_v28 = vld [vmem:[%s7695_s24 + $0xac0] sm:$0xf]  ;;  %v5827_v35 = vor.u32 %v7048_v27, %v5826_v26  ;;  %3551 = vmatpush.bf16.msrb.mxu3 %v6627_v29  ;;  %v880_v26 = vunpack.c.h.b16 %v356_v4  ;;  %v878_v29 = vunpack.c.h.b16 %v355_v10  ;;  %v5604_v4 = vld [vmem:[%s7695_s24 + $0x720] sm:$0xf0] }
  0xac   : > { %v7112_v30 = vld [vmem:[%s7695_s24 + $0xadc] sm:$0xf0]  ;;  %v6788_v10 = vld [vmem:[%s7695_s24 + $0xc4] sm:$0xf] }
  0xad   : > { %v6338_v31 = vld [vmem:[%s7695_s24 + $0xcc0] sm:$0xf]  ;;  %v6083_v36 = vor.u32 %v7112_v30, %v6082_v28  ;;  %3513 = vmatpush.bf16.msrb.mxu0 %v5827_v35  ;;  %v4935_v28 = vor.u32 %v6820_v11, %v4932_v12  ;;  %v5191_v30 = vor.u32 %v6884_v13, %v5188_v15  ;;  %v5703_v35 = vor.u32 %v7012_v23, %v5700_v24  ;;  %v4804_v11 = vld [vmem:[%s7695_s24 + $0xe0] sm:$0xf0] }
  0xae   : > { %v7176_v32 = vld [vmem:[%s7695_s24 + $0xcdc] sm:$0xf0]  ;;  %v6852_v12 = vld [vmem:[%s7695_s24 + $0x2c4] sm:$0xf] }
  0xaf   : > { %v6594_v33 = vld [vmem:[%s7695_s24 + $0xec0] sm:$0xf]  ;;  %v6339_v37 = vor.u32 %v7176_v32, %v6338_v31  ;;  %3526 = vmatpush.bf16.msrb.mxu1 %v6083_v36  ;;  %v5447_v31 = vor.u32 %v6948_v16, %v5444_v17  ;;  %v6812_v32 = vld [vmem:[%s7695_s24 + $0x184] sm:$0xf] }
  0xb0   : > { %v7240_v34 = vld [vmem:[%s7695_s24 + $0xedc] sm:$0xf0]  ;;  %v5156_v36 = vld [vmem:[%s7695_s24 + $0x3a0] sm:$0xf0] }
  0xb1   : > { %v5794_v38 = vld [vmem:[%s7695_s24 + $0x880] sm:$0xf]  ;;  %v6595_v41 = vor.u32 %v7240_v34, %v6594_v33  ;;  %3539 = vmatpush.bf16.msrb.mxu2 %v6339_v37  ;;  %v4900_v33 = vld [vmem:[%s7695_s24 + $0x1a0] sm:$0xf0] }
  0xb2   : > { %v7040_v39 = vld [vmem:[%s7695_s24 + $0x89c] sm:$0xf0]  ;;  %v6876_v34 = vld [vmem:[%s7695_s24 + $0x384] sm:$0xf] }
  0xb3   : > { %v6050_v40 = vld [vmem:[%s7695_s24 + $0xa80] sm:$0xf]  ;;  %v5795_v47 = vor.u32 %v7040_v39, %v5794_v38  ;;  %3552 = vmatpush.bf16.msrb.mxu3 %v6595_v41  ;;  %v6940_v37 = vld [vmem:[%s7695_s24 + $0x584] sm:$0xf]  ;;  %v7880_v39 = vpack.c.b16 %v879_v18, %v879_v18 }
  0xb4   : > { %v7104_v42 = vld [vmem:[%s7695_s24 + $0xa9c] sm:$0xf0]  ;;  %v5412_v38 = vld [vmem:[%s7695_s24 + $0x5a0] sm:$0xf0] }
  0xb5   : > { %v6306_v43 = vld [vmem:[%s7695_s24 + $0xc80] sm:$0xf]  ;;  %v6051_v48 = vor.u32 %v7104_v42, %v6050_v40  ;;  %3514 = vmatpush.bf16.msrb.mxu0 %v5795_v47  ;;  %v7004_v40 = vld [vmem:[%s7695_s24 + $0x784] sm:$0xf]  ;;  %v7884_v42 = vpack.c.b16 %v877_v25, %v877_v25  ;;  %v5415_v47 = vor.u32 %v6940_v37, %v5412_v38 }
  0xb6   : > { %v7168_v44 = vld [vmem:[%s7695_s24 + $0xc9c] sm:$0xf0]  ;;  %v5668_v41 = vld [vmem:[%s7695_s24 + $0x7a0] sm:$0xf0] }
  0xb7   : > { %v6562_v45 = vld [vmem:[%s7695_s24 + $0xe80] sm:$0xf]  ;;  %v6307_v49 = vor.u32 %v7168_v44, %v6306_v43  ;;  %3527 = vmatpush.bf16.msrb.mxu1 %v6051_v48  ;;  %v7886_v43 = vpack.c.b16 %v880_v26, %v880_v26  ;;  %v4903_v44 = vor.u32 %v6812_v32, %v4900_v33  ;;  %v6804_v48 = vld [vmem:[%s7695_s24 + $0x144] sm:$0xf] }
  0xb8   : > { %v7232_v46 = vld [vmem:[%s7695_s24 + $0xe9c] sm:$0xf0]  ;;  %v6916_v15 = vld [vmem:[%s7695_s24 + $0x4c4] sm:$0xf] }
  0xb9   : > { %v5762_v50 = vld [vmem:[%s7695_s24 + $0x840] sm:$0xf]  ;;  %v6563_v53 = vor.u32 %v7232_v46, %v6562_v45  ;;  %3540 = vmatpush.bf16.msrb.mxu2 %v6307_v49  ;;  %v7888_v45 = vpack.c.b16 %v878_v29, %v878_v29  ;;  %v5159_v46 = vor.u32 %v6876_v34, %v5156_v36  ;;  %v4868_v49 = vld [vmem:[%s7695_s24 + $0x160] sm:$0xf0] }
  0xba   : > { %v7032_v51 = vld [vmem:[%s7695_s24 + $0x85c] sm:$0xf0]  ;;  %v5316_v16 = vld [vmem:[%s7695_s24 + $0x4e0] sm:$0xf0] }
  0xbb   : > { %v6018_v52 = vld [vmem:[%s7695_s24 + $0xa40] sm:$0xf]  ;;  %v5763_v60 = vor.u32 %v7032_v51, %v5762_v50  ;;  %3553 = vmatpush.bf16.msrb.mxu3 %v6563_v53  ;;  %v6868_v50 = vld [vmem:[%s7695_s24 + $0x344] sm:$0xf]  ;;  %v5671_v51 = vor.u32 %v7004_v40, %v5668_v41  ;;  %v5319_v23 = vor.u32 %v6916_v15, %v5316_v16 }
  0xbc   : > { %v7096_v54 = vld [vmem:[%s7695_s24 + $0xa5c] sm:$0xf0]  ;;  %v6932_v53 = vld [vmem:[%s7695_s24 + $0x544] sm:$0xf] }
  0xbd   : > { %v6274_v55 = vld [vmem:[%s7695_s24 + $0xc40] sm:$0xf]  ;;  %v6019_v0 = vor.u32 %v7096_v54, %v6018_v52  ;;  %3515 = vmatpush.bf16.msrb.mxu0 %v5763_v60  ;;  %v5124_v52 = vld [vmem:[%s7695_s24 + $0x360] sm:$0xf0] }
  0xbe   : > { %v7160_v56 = vld [vmem:[%s7695_s24 + $0xc5c] sm:$0xf0]  ;;  %v5380_v54 = vld [vmem:[%s7695_s24 + $0x560] sm:$0xf0] }
  0xbf   : > { %v6530_v57 = vld [vmem:[%s7695_s24 + $0xe40] sm:$0xf]  ;;  %v6275_v1 = vor.u32 %v7160_v56, %v6274_v55  ;;  %3528 = vmatpush.bf16.msrb.mxu1 %v6019_v0  ;;  %v6996_v55 = vld [vmem:[%s7695_s24 + $0x744] sm:$0xf] }
  0xc0   : > { %v7224_v58 = vld [vmem:[%s7695_s24 + $0xe5c] sm:$0xf0]  ;;  %v5636_v56 = vld [vmem:[%s7695_s24 + $0x760] sm:$0xf0] }
  0xc1   : > { %v5730_v59 = vld [vmem:[%s7695_s24 + $0x800] sm:$0xf]  ;;  %v6531_v6 = vor.u32 %v7224_v58, %v6530_v57  ;;  %3541 = vmatpush.bf16.msrb.mxu2 %v6275_v1  ;;  %v4871_v57 = vor.u32 %v6804_v48, %v4868_v49  ;;  %v5127_v58 = vor.u32 %v6868_v50, %v5124_v52  ;;  %v6796_v60 = vld [vmem:[%s7695_s24 + $0x104] sm:$0xf] }
  0xc2   : > { %v7024_v61 = vld [vmem:[%s7695_s24 + $0x81c] sm:$0xf0]  ;;  %v5092_v0 = vld [vmem:[%s7695_s24 + $0x320] sm:$0xf0] }
  0xc3   : > { %v5986_v62 = vld [vmem:[%s7695_s24 + $0xa00] sm:$0xf]  ;;  %v5731_v14 = vor.u32 %v7024_v61, %v5730_v59  ;;  %3554 = vmatpush.bf16.msrb.mxu3 %v6531_v6  ;;  %v5383_v59 = vor.u32 %v6932_v53, %v5380_v54  ;;  %v4836_v61 = vld [vmem:[%s7695_s24 + $0x120] sm:$0xf0] }
  0xc4   : > { %v7088_v63 = vld [vmem:[%s7695_s24 + $0xa1c] sm:$0xf0]  ;;  %v6924_v1 = vld [vmem:[%s7695_s24 + $0x504] sm:$0xf]  ;;  %v4839_v6 = vor.u32 %v6796_v60, %v4836_v61 }
  0xc5   : > { %v6242_v2 = vld [vmem:[%s7695_s24 + $0xc00] sm:$0xf]  ;;  %v5987_v19 = vor.u32 %v7088_v63, %v5986_v62  ;;  %3516 = vmatpush.bf16.msrb.mxu0 %v5731_v14  ;;  %v6860_v62 = vld [vmem:[%s7695_s24 + $0x304] sm:$0xf]  ;;  %v5639_v63 = vor.u32 %v6996_v55, %v5636_v56 }
  0xc6   : > { %v7152_v3 = vld [vmem:[%s7695_s24 + $0xc1c] sm:$0xf0]  ;;  %v5060_v14 = vld [vmem:[%s7695_s24 + $0x2e0] sm:$0xf0] }
  0xc7   : > { %v6498_v8 = vld [vmem:[%s7695_s24 + $0xe00] sm:$0xf]  ;;  %v6243_v20 = vor.u32 %v7152_v3, %v6242_v2  ;;  %3529 = vmatpush.bf16.msrb.mxu1 %v5987_v19  ;;  %v5348_v2 = vld [vmem:[%s7695_s24 + $0x520] sm:$0xf0]  ;;  %v4807_v19 = vor.u32 %v6788_v10, %v4804_v11 }
  0xc8   : > { %v7216_v9 = vld [vmem:[%s7695_s24 + $0xe1c] sm:$0xf0]  ;;  %3517 = vmatmul.bf16.vlgmr.msrb.gmra.mxu0 %v7884_v42  ;;  %v6988_v3 = vld [vmem:[%s7695_s24 + $0x704] sm:$0xf] }
  0xc9   : > { %v6499_v27 = vor.u32 %v7216_v9, %v6498_v8  ;;  %3542 = vmatpush.bf16.msrb.mxu2 %v6243_v20  ;;  %3561 = vmatpush.bf16.msra.mxu0 %v4935_v28  ;;  %v5095_v8 = vor.u32 %v6860_v62, %v5092_v0  ;;  %v5351_v9 = vor.u32 %v6924_v1, %v5348_v2  ;;  %v6980_v17 = vld [vmem:[%s7695_s24 + $0x6c4] sm:$0xf] }
  0xca   : > { %3530 = vmatmul.bf16.vlgmr.msrb.gmra.mxu1 %v7888_v45  ;;  %v5607_v13 = vor.u32 %v6988_v3, %v5604_v4  ;;  %v5572_v18 = vld [vmem:[%s7695_s24 + $0x6e0] sm:$0xf0]  ;;  %v5063_v20 = vor.u32 %v6852_v12, %v5060_v14 }
  0xcb   : > { %3555 = vmatpush.bf16.msrb.mxu3 %v6499_v27  ;;  %3574 = vmatpush.bf16.msra.mxu1 %v5191_v30  ;;  %v6780_v24 = vld [vmem:[%s7695_s24 + $0x84] sm:$0xf]  ;;  %v5575_v27 = vor.u32 %v6980_v17, %v5572_v18 }
  0xcc   : > { %3543 = vmatmul.bf16.vlgmr.msrb.gmra.mxu2 %v7880_v39  ;;  %v4772_v25 = vld [vmem:[%s7695_s24 + $0xa0] sm:$0xf0] }
  0xcd   : > { %3587 = vmatpush.bf16.msra.mxu2 %v5447_v31  ;;  %3562 = vmatpush.bf16.msra.mxu0 %v4903_v44  ;;  %v6844_v26 = vld [vmem:[%s7695_s24 + $0x284] sm:$0xf]  ;;  %v4775_v33 = vor.u32 %v6780_v24, %v4772_v25 }
  0xce   : > { %3556 = vmatmul.bf16.vlgmr.msrb.gmra.mxu3 %v7886_v43  ;;  %v5028_v28 = vld [vmem:[%s7695_s24 + $0x2a0] sm:$0xf0] }
  0xcf   : > { %3600 = vmatpush.bf16.msra.mxu3 %v5703_v35  ;;  %3575 = vmatpush.bf16.msra.mxu1 %v5159_v46  ;;  %v6908_v29 = vld [vmem:[%s7695_s24 + $0x484] sm:$0xf]  ;;  %v5031_v34 = vor.u32 %v6844_v26, %v5028_v28 }
  0xd0   : > { %v5284_v30 = vld [vmem:[%s7695_s24 + $0x4a0] sm:$0xf0] }
  0xd1   : > { %3588 = vmatpush.bf16.msra.mxu2 %v5415_v47  ;;  %3563 = vmatpush.bf16.msra.mxu0 %v4871_v57  ;;  %v6972_v31 = vld [vmem:[%s7695_s24 + $0x684] sm:$0xf]  ;;  %v5287_v35 = vor.u32 %v6908_v29, %v5284_v30 }
  0xd2   : > { %v5540_v32 = vld [vmem:[%s7695_s24 + $0x6a0] sm:$0xf0] }
  0xd3   : > { %3601 = vmatpush.bf16.msra.mxu3 %v5671_v51  ;;  %3576 = vmatpush.bf16.msra.mxu1 %v5127_v58  ;;  %v6772_v36 = vld [vmem:[%s7695_s24 + $0x44] sm:$0xf]  ;;  %v5543_v40 = vor.u32 %v6972_v31, %v5540_v32 }
  0xd4   : > { %v4740_v37 = vld [vmem:[%s7695_s24 + $0x60] sm:$0xf0] }
  0xd5   : > { %3589 = vmatpush.bf16.msra.mxu2 %v5383_v59  ;;  %3564 = vmatpush.bf16.msra.mxu0 %v4839_v6  ;;  %v6836_v38 = vld [vmem:[%s7695_s24 + $0x244] sm:$0xf]  ;;  %v4743_v49 = vor.u32 %v6772_v36, %v4740_v37 }
  0xd6   : > { %v4996_v41 = vld [vmem:[%s7695_s24 + $0x260] sm:$0xf0] }
  0xd7   : > { %3602 = vmatpush.bf16.msra.mxu3 %v5639_v63  ;;  %3577 = vmatpush.bf16.msra.mxu1 %v5095_v8  ;;  %v6900_v44 = vld [vmem:[%s7695_s24 + $0x444] sm:$0xf]  ;;  %v4999_v52 = vor.u32 %v6836_v38, %v4996_v41 }
  0xd8   : > { %v5252_v46 = vld [vmem:[%s7695_s24 + $0x460] sm:$0xf0] }
  0xd9   : > { %3590 = vmatpush.bf16.msra.mxu2 %v5351_v9  ;;  %3565 = vmatpush.bf16.msra.mxu0 %v4807_v19  ;;  %v6964_v47 = vld [vmem:[%s7695_s24 + $0x644] sm:$0xf]  ;;  %v5255_v53 = vor.u32 %v6900_v44, %v5252_v46 }
  0xda   : > { %v5508_v48 = vld [vmem:[%s7695_s24 + $0x660] sm:$0xf0] }
  0xdb   : > { %3603 = vmatpush.bf16.msra.mxu3 %v5607_v13  ;;  %3578 = vmatpush.bf16.msra.mxu1 %v5063_v20  ;;  %v6764_v50 = vld [vmem:[%s7695_s24 + $0x4] sm:$0xf]  ;;  %v5511_v57 = vor.u32 %v6964_v47, %v5508_v48 }
  0xdc   : > { %v4708_v51 = vld [vmem:[%s7695_s24 + $0x20] sm:$0xf0] }
  0xdd   : > { %3591 = vmatpush.bf16.msra.mxu2 %v5319_v23  ;;  %3566 = vmatpush.bf16.msra.mxu0 %v4775_v33  ;;  %v6828_v54 = vld [vmem:[%s7695_s24 + $0x204] sm:$0xf]  ;;  %v4711_v0 = vor.u32 %v6764_v50, %v4708_v51 }
  0xde   : > { %v4964_v55 = vld [vmem:[%s7695_s24 + $0x220] sm:$0xf0] }
  0xdf   : > { %3604 = vmatpush.bf16.msra.mxu3 %v5575_v27  ;;  %3579 = vmatpush.bf16.msra.mxu1 %v5031_v34  ;;  %v6892_v56 = vld [vmem:[%s7695_s24 + $0x404] sm:$0xf]  ;;  %v4967_v4 = vor.u32 %v6828_v54, %v4964_v55 }
  0xe0   : > { %v5220_v58 = vld [vmem:[%s7695_s24 + $0x420] sm:$0xf0] }
  0xe1   : > { %3592 = vmatpush.bf16.msra.mxu2 %v5287_v35  ;;  %v6956_v59 = vld [vmem:[%s7695_s24 + $0x604] sm:$0xf]  ;;  %3567 = vmatpush.bf16.msra.mxu0 %v4743_v49  ;;  %v5223_v6 = vor.u32 %v6892_v56, %v5220_v58 }
  0xe2   : > { %v5476_v60 = vld [vmem:[%s7695_s24 + $0x620] sm:$0xf0] }
  0xe3   : > { %3605 = vmatpush.bf16.msra.mxu3 %v5543_v40  ;;  %v7076_v61 = vld [vmem:[%s7695_s24 + $0x9c4] sm:$0xf]  ;;  %3580 = vmatpush.bf16.msra.mxu1 %v4999_v52  ;;  %v5479_v10 = vor.u32 %v6956_v59, %v5476_v60 }
  0xe4   : > { %v5956_v62 = vld [vmem:[%s7695_s24 + $0x9e0] sm:$0xf0] }
  0xe5   : > { %v7140_v63 = vld [vmem:[%s7695_s24 + $0xbc4] sm:$0xf]  ;;  %3593 = vmatpush.bf16.msra.mxu2 %v5255_v53  ;;  %v5959_v11 = vor.u32 %v7076_v61, %v5956_v62  ;;  %3568 = vmatpush.bf16.msra.mxu0 %v4711_v0 }
  0xe6   : > { %v6212_v1 = vld [vmem:[%s7695_s24 + $0xbe0] sm:$0xf0] }
  0xe7   : > { %v7204_v2 = vld [vmem:[%s7695_s24 + $0xdc4] sm:$0xf]  ;;  %3606 = vmatpush.bf16.msra.mxu3 %v5511_v57  ;;  %v6215_v12 = vor.u32 %v7140_v63, %v6212_v1  ;;  %3581 = vmatpush.bf16.msra.mxu1 %v4967_v4 }
  0xe8   : > { %v6468_v3 = vld [vmem:[%s7695_s24 + $0xde0] sm:$0xf0]  ;;  %3569 = vmatmul.bf16.vlgmr.msra.gmra.mxu0 %v7825_v21 }
  0xe9   : > { %v7268_v8 = vld [vmem:[%s7695_s24 + $0xfc4] sm:$0xf]  ;;  %v6471_v13 = vor.u32 %v7204_v2, %v6468_v3  ;;  %3594 = vmatpush.bf16.msra.mxu2 %v5223_v6  ;;  %3613 = vmatpush.bf16.msrb.mxu0 %v5959_v11 }
  0xea   : > { %v6724_v9 = vld [vmem:[%s7695_s24 + $0xfe0] sm:$0xf0]  ;;  %3582 = vmatmul.bf16.vlgmr.msra.gmra.mxu1 %v7828_v22 }
  0xeb   : > { %v7068_v14 = vld [vmem:[%s7695_s24 + $0x984] sm:$0xf]  ;;  %v6727_v17 = vor.u32 %v7268_v8, %v6724_v9  ;;  %3607 = vmatpush.bf16.msra.mxu3 %v5479_v10  ;;  %3626 = vmatpush.bf16.msrb.mxu1 %v6215_v12 }
  0xec   : > { %v5924_v15 = vld [vmem:[%s7695_s24 + $0x9a0] sm:$0xf0]  ;;  %3595 = vmatmul.bf16.vlgmr.msra.gmra.mxu2 %v7811_v5 }
  0xed   : > { %v7132_v16 = vld [vmem:[%s7695_s24 + $0xb84] sm:$0xf]  ;;  %v5927_v25 = vor.u32 %v7068_v14, %v5924_v15  ;;  %3639 = vmatpush.bf16.msrb.mxu2 %v6471_v13 }
  0xee   : > { %v6180_v18 = vld [vmem:[%s7695_s24 + $0xba0] sm:$0xf0]  ;;  %3608 = vmatmul.bf16.vlgmr.msra.gmra.mxu3 %v7814_v7 }
  0xef   : > { %v7196_v19 = vld [vmem:[%s7695_s24 + $0xd84] sm:$0xf]  ;;  %v6183_v26 = vor.u32 %v7132_v16, %v6180_v18  ;;  %3652 = vmatpush.bf16.msrb.mxu3 %v6727_v17  ;;  %3614 = vmatpush.bf16.msrb.mxu0 %v5927_v25 }
  0xf0   : > { %v6436_v20 = vld [vmem:[%s7695_s24 + $0xda0] sm:$0xf0] }
  0xf1   : > { %v7260_v23 = vld [vmem:[%s7695_s24 + $0xf84] sm:$0xf]  ;;  %v6439_v27 = vor.u32 %v7196_v19, %v6436_v20  ;;  %3627 = vmatpush.bf16.msrb.mxu1 %v6183_v26 }
  0xf2   : > { %v6692_v24 = vld [vmem:[%s7695_s24 + $0xfa0] sm:$0xf0] }
  0xf3   : > { %v7060_v28 = vld [vmem:[%s7695_s24 + $0x944] sm:$0xf]  ;;  %v6695_v31 = vor.u32 %v7260_v23, %v6692_v24  ;;  %3640 = vmatpush.bf16.msrb.mxu2 %v6439_v27 }
  0xf4   : > { %v5892_v29 = vld [vmem:[%s7695_s24 + $0x960] sm:$0xf0] }
  0xf5   : > { %v7124_v30 = vld [vmem:[%s7695_s24 + $0xb44] sm:$0xf]  ;;  %v5895_v37 = vor.u32 %v7060_v28, %v5892_v29  ;;  %3653 = vmatpush.bf16.msrb.mxu3 %v6695_v31 }
  0xf6   : > { %v6148_v32 = vld [vmem:[%s7695_s24 + $0xb60] sm:$0xf0] }
  0xf7   : > { %v7188_v33 = vld [vmem:[%s7695_s24 + $0xd44] sm:$0xf]  ;;  %v6151_v38 = vor.u32 %v7124_v30, %v6148_v32  ;;  %3615 = vmatpush.bf16.msrb.mxu0 %v5895_v37 }
  0xf8   : > { %v6404_v34 = vld [vmem:[%s7695_s24 + $0xd60] sm:$0xf0] }
  0xf9   : > { %v7252_v35 = vld [vmem:[%s7695_s24 + $0xf44] sm:$0xf]  ;;  %v6407_v40 = vor.u32 %v7188_v33, %v6404_v34  ;;  %3628 = vmatpush.bf16.msrb.mxu1 %v6151_v38 }
  0xfa   : > { %v6660_v36 = vld [vmem:[%s7695_s24 + $0xf60] sm:$0xf0] }
  0xfb   : > { %v7052_v41 = vld [vmem:[%s7695_s24 + $0x904] sm:$0xf]  ;;  %v6663_v47 = vor.u32 %v7252_v35, %v6660_v36  ;;  %3641 = vmatpush.bf16.msrb.mxu2 %v6407_v40 }
  0xfc   : > { %v5860_v44 = vld [vmem:[%s7695_s24 + $0x920] sm:$0xf0] }
  0xfd   : > { %v7116_v46 = vld [vmem:[%s7695_s24 + $0xb04] sm:$0xf]  ;;  %v5863_v53 = vor.u32 %v7052_v41, %v5860_v44  ;;  %3654 = vmatpush.bf16.msrb.mxu3 %v6663_v47  ;;  %v4938_v44 = vld [vmem:[%s7695_s24 + $0x1c8] sm:$0xf] }
  0xfe   : > { %v6116_v48 = vld [vmem:[%s7695_s24 + $0xb20] sm:$0xf0]  ;;  %v5194_v47 = vld [vmem:[%s7695_s24 + $0x3c8] sm:$0xf] }
  0xff   : > { %v7180_v49 = vld [vmem:[%s7695_s24 + $0xd04] sm:$0xf]  ;;  %v6119_v54 = vor.u32 %v7116_v46, %v6116_v48  ;;  %3616 = vmatpush.bf16.msrb.mxu0 %v5863_v53  ;;  %v6825_v46 = vld [vmem:[%s7695_s24 + $0x1e4] sm:$0xf0] }
 0x100   : > { %v6372_v50 = vld [vmem:[%s7695_s24 + $0xd20] sm:$0xf0] }
 0x101   : > { %v7244_v51 = vld [vmem:[%s7695_s24 + $0xf04] sm:$0xf]  ;;  %v6375_v55 = vor.u32 %v7180_v49, %v6372_v50  ;;  %3629 = vmatpush.bf16.msrb.mxu1 %v6119_v54  ;;  %v6889_v49 = vld [vmem:[%s7695_s24 + $0x3e4] sm:$0xf0] }
 0x102   : > { %v6628_v52 = vld [vmem:[%s7695_s24 + $0xf20] sm:$0xf0]  ;;  %v5450_v50 = vld [vmem:[%s7695_s24 + $0x5c8] sm:$0xf] }
 0x103   : > { %v7044_v56 = vld [vmem:[%s7695_s24 + $0x8c4] sm:$0xf]  ;;  %v6631_v59 = vor.u32 %v7244_v51, %v6628_v52  ;;  %3642 = vmatpush.bf16.msrb.mxu2 %v6375_v55  ;;  %v6953_v51 = vld [vmem:[%s7695_s24 + $0x5e4] sm:$0xf0] }
 0x104   : > { %v5828_v57 = vld [vmem:[%s7695_s24 + $0x8e0] sm:$0xf0]  ;;  %v5706_v54 = vld [vmem:[%s7695_s24 + $0x7c8] sm:$0xf] }
 0x105   : > { %v7108_v58 = vld [vmem:[%s7695_s24 + $0xac4] sm:$0xf]  ;;  %v5831_v1 = vor.u32 %v7044_v56, %v5828_v57  ;;  %3655 = vmatpush.bf16.msrb.mxu3 %v6631_v59  ;;  %v7017_v55 = vld [vmem:[%s7695_s24 + $0x7e4] sm:$0xf0]  ;;  %v4939_v57 = vor.u32 %v6825_v46, %v4938_v44  ;;  %v5451_v59 = vor.u32 %v6953_v51, %v5450_v50 }
 0x106   : > { %v6084_v60 = vld [vmem:[%s7695_s24 + $0xae0] sm:$0xf0]  ;;  %v5322_v44 = vld [vmem:[%s7695_s24 + $0x4c8] sm:$0xf] }
 0x107   : > { %v7172_v61 = vld [vmem:[%s7695_s24 + $0xcc4] sm:$0xf]  ;;  %v6087_v2 = vor.u32 %v7108_v58, %v6084_v60  ;;  %3617 = vmatpush.bf16.msrb.mxu0 %v5831_v1  ;;  %v5195_v58 = vor.u32 %v6889_v49, %v5194_v47  ;;  %v4906_v60 = vld [vmem:[%s7695_s24 + $0x188] sm:$0xf] }
 0x108   : > { %v6340_v62 = vld [vmem:[%s7695_s24 + $0xce0] sm:$0xf0]  ;;  %v5418_v1 = vld [vmem:[%s7695_s24 + $0x588] sm:$0xf] }
 0x109   : > { %v7236_v63 = vld [vmem:[%s7695_s24 + $0xec4] sm:$0xf]  ;;  %v6343_v3 = vor.u32 %v7172_v61, %v6340_v62  ;;  %3630 = vmatpush.bf16.msrb.mxu1 %v6087_v2  ;;  %v6817_v61 = vld [vmem:[%s7695_s24 + $0x1a4] sm:$0xf0] }
 0x10a   : > { %v6596_v0 = vld [vmem:[%s7695_s24 + $0xee0] sm:$0xf0]  ;;  %v5162_v62 = vld [vmem:[%s7695_s24 + $0x388] sm:$0xf] }
 0x10b   : > { %v7036_v4 = vld [vmem:[%s7695_s24 + $0x884] sm:$0xf]  ;;  %v6599_v9 = vor.u32 %v7236_v63, %v6596_v0  ;;  %3643 = vmatpush.bf16.msrb.mxu2 %v6343_v3  ;;  %v5707_v63 = vor.u32 %v7017_v55, %v5706_v54  ;;  %v6881_v0 = vld [vmem:[%s7695_s24 + $0x3a4] sm:$0xf0] }
 0x10c   : > { %v5796_v6 = vld [vmem:[%s7695_s24 + $0x8a0] sm:$0xf0]  ;;  %v6945_v2 = vld [vmem:[%s7695_s24 + $0x5a4] sm:$0xf0] }
 0x10d   : > { %v7100_v8 = vld [vmem:[%s7695_s24 + $0xa84] sm:$0xf]  ;;  %v5799_v15 = vor.u32 %v7036_v4, %v5796_v6  ;;  %3656 = vmatpush.bf16.msrb.mxu3 %v6599_v9  ;;  %v5674_v3 = vld [vmem:[%s7695_s24 + $0x788] sm:$0xf]  ;;  %v4907_v6 = vor.u32 %v6817_v61, %v4906_v60  ;;  %v5419_v9 = vor.u32 %v6945_v2, %v5418_v1 }
 0x10e   : > { %v6052_v10 = vld [vmem:[%s7695_s24 + $0xaa0] sm:$0xf0]  ;;  %v7009_v4 = vld [vmem:[%s7695_s24 + $0x7a4] sm:$0xf0] }
 0x10f   : > { %v7164_v11 = vld [vmem:[%s7695_s24 + $0xc84] sm:$0xf]  ;;  %v6055_v16 = vor.u32 %v7100_v8, %v6052_v10  ;;  %3618 = vmatpush.bf16.msrb.mxu0 %v5799_v15  ;;  %v5163_v8 = vor.u32 %v6881_v0, %v5162_v62  ;;  %v4874_v10 = vld [vmem:[%s7695_s24 + $0x148] sm:$0xf] }
 0x110   : > { %v6308_v12 = vld [vmem:[%s7695_s24 + $0xca0] sm:$0xf0]  ;;  %v5386_v15 = vld [vmem:[%s7695_s24 + $0x548] sm:$0xf] }
 0x111   : > { %v7228_v13 = vld [vmem:[%s7695_s24 + $0xe84] sm:$0xf]  ;;  %v6311_v17 = vor.u32 %v7164_v11, %v6308_v12  ;;  %3631 = vmatpush.bf16.msrb.mxu1 %v6055_v16  ;;  %v6809_v11 = vld [vmem:[%s7695_s24 + $0x164] sm:$0xf0] }
 0x112   : > { %v6564_v14 = vld [vmem:[%s7695_s24 + $0xea0] sm:$0xf0]  ;;  %v5130_v12 = vld [vmem:[%s7695_s24 + $0x348] sm:$0xf] }
 0x113   : > { %v7028_v18 = vld [vmem:[%s7695_s24 + $0x844] sm:$0xf]  ;;  %v6567_v23 = vor.u32 %v7228_v13, %v6564_v14  ;;  %3644 = vmatpush.bf16.msrb.mxu2 %v6311_v17  ;;  %v5675_v13 = vor.u32 %v7009_v4, %v5674_v3  ;;  %v6873_v14 = vld [vmem:[%s7695_s24 + $0x364] sm:$0xf0] }
 0x114   : > { %v5764_v19 = vld [vmem:[%s7695_s24 + $0x860] sm:$0xf0]  ;;  %v6937_v16 = vld [vmem:[%s7695_s24 + $0x564] sm:$0xf0] }
 0x115   : > { %v7092_v20 = vld [vmem:[%s7695_s24 + $0xa44] sm:$0xf]  ;;  %v5767_v29 = vor.u32 %v7028_v18, %v5764_v19  ;;  %3657 = vmatpush.bf16.msrb.mxu3 %v6567_v23  ;;  %v5642_v17 = vld [vmem:[%s7695_s24 + $0x748] sm:$0xf]  ;;  %v4875_v19 = vor.u32 %v6809_v11, %v4874_v10  ;;  %v5387_v23 = vor.u32 %v6937_v16, %v5386_v15 }
 0x116   : > { %v6020_v24 = vld [vmem:[%s7695_s24 + $0xa60] sm:$0xf0]  ;;  %v7001_v18 = vld [vmem:[%s7695_s24 + $0x764] sm:$0xf0] }
 0x117   : > { %v7156_v25 = vld [vmem:[%s7695_s24 + $0xc44] sm:$0xf]  ;;  %v6023_v32 = vor.u32 %v7092_v20, %v6020_v24  ;;  %3619 = vmatpush.bf16.msrb.mxu0 %v5767_v29  ;;  %v5131_v20 = vor.u32 %v6873_v14, %v5130_v12  ;;  %v4842_v24 = vld [vmem:[%s7695_s24 + $0x108] sm:$0xf] }
 0x118   : > { %v6276_v26 = vld [vmem:[%s7695_s24 + $0xc60] sm:$0xf0]  ;;  %v5354_v29 = vld [vmem:[%s7695_s24 + $0x508] sm:$0xf] }
 0x119   : > { %v7220_v27 = vld [vmem:[%s7695_s24 + $0xe44] sm:$0xf]  ;;  %v6279_v33 = vor.u32 %v7156_v25, %v6276_v26  ;;  %3632 = vmatpush.bf16.msrb.mxu1 %v6023_v32  ;;  %v6801_v25 = vld [vmem:[%s7695_s24 + $0x124] sm:$0xf0] }
 0x11a   : > { %v6532_v28 = vld [vmem:[%s7695_s24 + $0xe60] sm:$0xf0]  ;;  %v5098_v26 = vld [vmem:[%s7695_s24 + $0x308] sm:$0xf] }
 0x11b   : > { %v7020_v30 = vld [vmem:[%s7695_s24 + $0x804] sm:$0xf]  ;;  %v6535_v37 = vor.u32 %v7220_v27, %v6532_v28  ;;  %3645 = vmatpush.bf16.msrb.mxu2 %v6279_v33  ;;  %v5643_v27 = vor.u32 %v7001_v18, %v5642_v17  ;;  %v6865_v28 = vld [vmem:[%s7695_s24 + $0x324] sm:$0xf0]  ;;  %v4843_v33 = vor.u32 %v6801_v25, %v4842_v24 }
 0x11c   : > { %v5732_v31 = vld [vmem:[%s7695_s24 + $0x820] sm:$0xf0]  ;;  %v6993_v32 = vld [vmem:[%s7695_s24 + $0x724] sm:$0xf0] }
 0x11d   : > { %v7084_v34 = vld [vmem:[%s7695_s24 + $0xa04] sm:$0xf]  ;;  %v5735_v48 = vor.u32 %v7020_v30, %v5732_v31  ;;  %3658 = vmatpush.bf16.msrb.mxu3 %v6535_v37  ;;  %v6929_v30 = vld [vmem:[%s7695_s24 + $0x524] sm:$0xf0] }
 0x11e   : > { %v5988_v35 = vld [vmem:[%s7695_s24 + $0xa20] sm:$0xf0]  ;;  %v5610_v31 = vld [vmem:[%s7695_s24 + $0x708] sm:$0xf] }
 0x11f   : > { %v7148_v36 = vld [vmem:[%s7695_s24 + $0xc04] sm:$0xf]  ;;  %v5991_v52 = vor.u32 %v7084_v34, %v5988_v35  ;;  %3620 = vmatpush.bf16.msrb.mxu0 %v5735_v48  ;;  %v5099_v34 = vor.u32 %v6865_v28, %v5098_v26  ;;  %v5355_v35 = vor.u32 %v6929_v30, %v5354_v29  ;;  %v6793_v37 = vld [vmem:[%s7695_s24 + $0xe4] sm:$0xf0] }
 0x120   : > { %v6244_v38 = vld [vmem:[%s7695_s24 + $0xc20] sm:$0xf0]  ;;  %v6921_v46 = vld [vmem:[%s7695_s24 + $0x4e4] sm:$0xf0] }
 0x121   : > { %v7212_v40 = vld [vmem:[%s7695_s24 + $0xe04] sm:$0xf]  ;;  %v6247_v53 = vor.u32 %v7148_v36, %v6244_v38  ;;  %3633 = vmatpush.bf16.msrb.mxu1 %v5991_v52  ;;  %v4810_v36 = vld [vmem:[%s7695_s24 + $0xc8] sm:$0xf]  ;;  %v5323_v51 = vor.u32 %v6921_v46, %v5322_v44 }
 0x122   : > { %v6500_v41 = vld [vmem:[%s7695_s24 + $0xe20] sm:$0xf0]  ;;  %3621 = vmatmul.bf16.vlgmr.msrb.gmra.mxu0 %v7884_v42  ;;  %v5066_v38 = vld [vmem:[%s7695_s24 + $0x2c8] sm:$0xf]  ;;  %v4811_v49 = vor.u32 %v6793_v37, %v4810_v36 }
 0x123   : > { %v6503_v56 = vor.u32 %v7212_v40, %v6500_v41  ;;  %3646 = vmatpush.bf16.msrb.mxu2 %v6247_v53  ;;  %3665 = vmatpush.bf16.msra.mxu0 %v4939_v57  ;;  %v5611_v40 = vor.u32 %v6993_v32, %v5610_v31  ;;  %v6857_v41 = vld [vmem:[%s7695_s24 + $0x2e4] sm:$0xf0] }
 0x124   : > { %3634 = vmatmul.bf16.vlgmr.msrb.gmra.mxu1 %v7888_v45  ;;  %v5578_v47 = vld [vmem:[%s7695_s24 + $0x6c8] sm:$0xf]  ;;  %v5067_v50 = vor.u32 %v6857_v41, %v5066_v38 }
 0x125   : > { %3659 = vmatpush.bf16.msrb.mxu3 %v6503_v56  ;;  %3678 = vmatpush.bf16.msra.mxu1 %v5195_v58  ;;  %v6985_v48 = vld [vmem:[%s7695_s24 + $0x6e4] sm:$0xf0] }
 0x126   : > { %3647 = vmatmul.bf16.vlgmr.msrb.gmra.mxu2 %v7880_v39  ;;  %v4778_v52 = vld [vmem:[%s7695_s24 + $0x88] sm:$0xf]  ;;  %v5579_v55 = vor.u32 %v6985_v48, %v5578_v47 }
 0x127   : > { %3691 = vmatpush.bf16.msra.mxu2 %v5451_v59  ;;  %3666 = vmatpush.bf16.msra.mxu0 %v4907_v6  ;;  %v6785_v53 = vld [vmem:[%s7695_s24 + $0xa4] sm:$0xf0] }
 0x128   : > { %3660 = vmatmul.bf16.vlgmr.msrb.gmra.mxu3 %v7886_v43  ;;  %v5034_v54 = vld [vmem:[%s7695_s24 + $0x288] sm:$0xf]  ;;  %v4779_v61 = vor.u32 %v6785_v53, %v4778_v52 }
 0x129   : > { %3704 = vmatpush.bf16.msra.mxu3 %v5707_v63  ;;  %3679 = vmatpush.bf16.msra.mxu1 %v5163_v8  ;;  %v6849_v56 = vld [vmem:[%s7695_s24 + $0x2a4] sm:$0xf0] }
 0x12a   : > { %v5290_v57 = vld [vmem:[%s7695_s24 + $0x488] sm:$0xf]  ;;  %v5035_v62 = vor.u32 %v6849_v56, %v5034_v54 }
 0x12b   : > { %3692 = vmatpush.bf16.msra.mxu2 %v5419_v9  ;;  %3667 = vmatpush.bf16.msra.mxu0 %v4875_v19  ;;  %v6913_v58 = vld [vmem:[%s7695_s24 + $0x4a4] sm:$0xf0] }
 0x12c   : > { %v5546_v59 = vld [vmem:[%s7695_s24 + $0x688] sm:$0xf]  ;;  %v5291_v63 = vor.u32 %v6913_v58, %v5290_v57 }
 0x12d   : > { %3705 = vmatpush.bf16.msra.mxu3 %v5675_v13  ;;  %3680 = vmatpush.bf16.msra.mxu1 %v5131_v20  ;;  %v6977_v60 = vld [vmem:[%s7695_s24 + $0x6a4] sm:$0xf0] }
 0x12e   : > { %v4746_v0 = vld [vmem:[%s7695_s24 + $0x48] sm:$0xf]  ;;  %v5547_v3 = vor.u32 %v6977_v60, %v5546_v59 }
 0x12f   : > { %3693 = vmatpush.bf16.msra.mxu2 %v5387_v23  ;;  %3668 = vmatpush.bf16.msra.mxu0 %v4843_v33  ;;  %v6777_v1 = vld [vmem:[%s7695_s24 + $0x64] sm:$0xf0] }
 0x130   : > { %v5002_v2 = vld [vmem:[%s7695_s24 + $0x248] sm:$0xf]  ;;  %v4747_v11 = vor.u32 %v6777_v1, %v4746_v0 }
 0x131   : > { %3706 = vmatpush.bf16.msra.mxu3 %v5643_v27  ;;  %3681 = vmatpush.bf16.msra.mxu1 %v5099_v34  ;;  %v6841_v4 = vld [vmem:[%s7695_s24 + $0x264] sm:$0xf0] }
 0x132   : > { %v5258_v6 = vld [vmem:[%s7695_s24 + $0x448] sm:$0xf]  ;;  %v5003_v14 = vor.u32 %v6841_v4, %v5002_v2 }
 0x133   : > { %3694 = vmatpush.bf16.msra.mxu2 %v5355_v35  ;;  %3669 = vmatpush.bf16.msra.mxu0 %v4811_v49  ;;  %v6905_v8 = vld [vmem:[%s7695_s24 + $0x464] sm:$0xf0] }
 0x134   : > { %v5514_v9 = vld [vmem:[%s7695_s24 + $0x648] sm:$0xf]  ;;  %v5259_v15 = vor.u32 %v6905_v8, %v5258_v6 }
 0x135   : > { %3707 = vmatpush.bf16.msra.mxu3 %v5611_v40  ;;  %3682 = vmatpush.bf16.msra.mxu1 %v5067_v50  ;;  %v6969_v10 = vld [vmem:[%s7695_s24 + $0x664] sm:$0xf0] }
 0x136   : > { %v4714_v12 = vld [vmem:[%s7695_s24 + $0x8] sm:$0xf]  ;;  %v5515_v19 = vor.u32 %v6969_v10, %v5514_v9 }
 0x137   : > { %3695 = vmatpush.bf16.msra.mxu2 %v5323_v51  ;;  %3670 = vmatpush.bf16.msra.mxu0 %v4779_v61  ;;  %v6769_v13 = vld [vmem:[%s7695_s24 + $0x24] sm:$0xf0] }
 0x138   : > { %v4970_v16 = vld [vmem:[%s7695_s24 + $0x208] sm:$0xf]  ;;  %v4715_v28 = vor.u32 %v6769_v13, %v4714_v12 }
 0x139   : > { %3708 = vmatpush.bf16.msra.mxu3 %v5579_v55  ;;  %3683 = vmatpush.bf16.msra.mxu1 %v5035_v62  ;;  %v6833_v17 = vld [vmem:[%s7695_s24 + $0x224] sm:$0xf0] }
 0x13a   : > { %v5226_v18 = vld [vmem:[%s7695_s24 + $0x408] sm:$0xf]  ;;  %v4971_v32 = vor.u32 %v6833_v17, %v4970_v16 }
 0x13b   : > { %3696 = vmatpush.bf16.msra.mxu2 %v5291_v63  ;;  %v6897_v20 = vld [vmem:[%s7695_s24 + $0x424] sm:$0xf0]  ;;  %3671 = vmatpush.bf16.msra.mxu0 %v4747_v11 }
 0x13c   : > { %v5482_v23 = vld [vmem:[%s7695_s24 + $0x608] sm:$0xf]  ;;  %v5227_v33 = vor.u32 %v6897_v20, %v5226_v18 }
 0x13d   : > { %3709 = vmatpush.bf16.msra.mxu3 %v5547_v3  ;;  %v6961_v24 = vld [vmem:[%s7695_s24 + $0x624] sm:$0xf0]  ;;  %3684 = vmatpush.bf16.msra.mxu1 %v5003_v14 }
 0x13e   : > { %v5962_v25 = vld [vmem:[%s7695_s24 + $0x9c8] sm:$0xf]  ;;  %v5483_v36 = vor.u32 %v6961_v24, %v5482_v23 }
 0x13f   : > { %v7081_v26 = vld [vmem:[%s7695_s24 + $0x9e4] sm:$0xf0]  ;;  %3697 = vmatpush.bf16.msra.mxu2 %v5259_v15  ;;  %3672 = vmatpush.bf16.msra.mxu0 %v4715_v28 }
 0x140   : > { %v6218_v27 = vld [vmem:[%s7695_s24 + $0xbc8] sm:$0xf]  ;;  %v5963_v37 = vor.u32 %v7081_v26, %v5962_v25 }
 0x141   : > { %v7145_v29 = vld [vmem:[%s7695_s24 + $0xbe4] sm:$0xf0]  ;;  %3710 = vmatpush.bf16.msra.mxu3 %v5515_v19  ;;  %3685 = vmatpush.bf16.msra.mxu1 %v4971_v32 }
 0x142   : > { %v6474_v30 = vld [vmem:[%s7695_s24 + $0xdc8] sm:$0xf]  ;;  %v6219_v38 = vor.u32 %v7145_v29, %v6218_v27  ;;  %3673 = vmatmul.bf16.vlgmr.msra.gmra.mxu0 %v7825_v21 }
 0x143   : > { %v7209_v31 = vld [vmem:[%s7695_s24 + $0xde4] sm:$0xf0]  ;;  %3698 = vmatpush.bf16.msra.mxu2 %v5227_v33  ;;  %3717 = vmatpush.bf16.msrb.mxu0 %v5963_v37 }
 0x144   : > { %v6730_v34 = vld [vmem:[%s7695_s24 + $0xfc8] sm:$0xf]  ;;  %v6475_v40 = vor.u32 %v7209_v31, %v6474_v30  ;;  %3686 = vmatmul.bf16.vlgmr.msra.gmra.mxu1 %v7828_v22 }
 0x145   : > { %v7273_v35 = vld [vmem:[%s7695_s24 + $0xfe4] sm:$0xf0]  ;;  %3711 = vmatpush.bf16.msra.mxu3 %v5483_v36  ;;  %3730 = vmatpush.bf16.msrb.mxu1 %v6219_v38 }
 0x146   : > { %v5930_v41 = vld [vmem:[%s7695_s24 + $0x988] sm:$0xf]  ;;  %v6731_v47 = vor.u32 %v7273_v35, %v6730_v34  ;;  %3699 = vmatmul.bf16.vlgmr.msra.gmra.mxu2 %v7811_v5 }
 0x147   : > { %v7073_v44 = vld [vmem:[%s7695_s24 + $0x9a4] sm:$0xf0]  ;;  %3743 = vmatpush.bf16.msrb.mxu2 %v6475_v40 }
 0x148   : > { %v6186_v46 = vld [vmem:[%s7695_s24 + $0xb88] sm:$0xf]  ;;  %v5931_v53 = vor.u32 %v7073_v44, %v5930_v41  ;;  %3712 = vmatmul.bf16.vlgmr.msra.gmra.mxu3 %v7814_v7  ;;  %v3466_v44 = vpop.f32.mrf.mxu0 }
 0x149   : > { %v7137_v48 = vld [vmem:[%s7695_s24 + $0xba4] sm:$0xf0]  ;;  %3756 = vmatpush.bf16.msrb.mxu3 %v6731_v47  ;;  %v3479_v47 = vpop.f32.mrf.mxu1 }
 0x14a   : > { %v6442_v49 = vld [vmem:[%s7695_s24 + $0xd88] sm:$0xf]  ;;  %v6187_v54 = vor.u32 %v7137_v48, %v6186_v46  ;;  %3718 = vmatpush.bf16.msrb.mxu0 %v5931_v53  ;;  %v8133_v53 = vpop.f32.mrf.mxu2 }
 0x14b   : > { %v7201_v50 = vld [vmem:[%s7695_s24 + $0xda4] sm:$0xf0] }
 0x14c   : > { %v6698_v51 = vld [vmem:[%s7695_s24 + $0xf88] sm:$0xf]  ;;  %v6443_v55 = vor.u32 %v7201_v50, %v6442_v49  ;;  %3731 = vmatpush.bf16.msrb.mxu1 %v6187_v54 }
 0x14d   : > { %v7265_v52 = vld [vmem:[%s7695_s24 + $0xfa4] sm:$0xf0] }
 0x14e   : > { %v5898_v56 = vld [vmem:[%s7695_s24 + $0x948] sm:$0xf]  ;;  %v6699_v59 = vor.u32 %v7265_v52, %v6698_v51  ;;  %3744 = vmatpush.bf16.msrb.mxu2 %v6443_v55 }
 0x14f   : > { %v7065_v57 = vld [vmem:[%s7695_s24 + $0x964] sm:$0xf0] }
 0x150   : > { %v6154_v58 = vld [vmem:[%s7695_s24 + $0xb48] sm:$0xf]  ;;  %v5899_v1 = vor.u32 %v7065_v57, %v5898_v56  ;;  %3757 = vmatpush.bf16.msrb.mxu3 %v6699_v59 }
 0x151   : > { %v7129_v60 = vld [vmem:[%s7695_s24 + $0xb64] sm:$0xf0] }
 0x152   : > { %v6410_v61 = vld [vmem:[%s7695_s24 + $0xd48] sm:$0xf]  ;;  %v6155_v2 = vor.u32 %v7129_v60, %v6154_v58  ;;  %3719 = vmatpush.bf16.msrb.mxu0 %v5899_v1  ;;  %v8138_v58 = vpop.f32.mrf.mxu3 }
 0x153   : > { %v7193_v62 = vld [vmem:[%s7695_s24 + $0xd64] sm:$0xf0] }
 0x154   : > { %v6666_v63 = vld [vmem:[%s7695_s24 + $0xf48] sm:$0xf]  ;;  %v6411_v3 = vor.u32 %v7193_v62, %v6410_v61  ;;  %3732 = vmatpush.bf16.msrb.mxu1 %v6155_v2 }
 0x155   : > { %v7257_v0 = vld [vmem:[%s7695_s24 + $0xf64] sm:$0xf0] }
 0x156   : > { %v5866_v4 = vld [vmem:[%s7695_s24 + $0x908] sm:$0xf]  ;;  %v6667_v9 = vor.u32 %v7257_v0, %v6666_v63  ;;  %3745 = vmatpush.bf16.msrb.mxu2 %v6411_v3 }
 0x157   : > { %v7057_v6 = vld [vmem:[%s7695_s24 + $0x924] sm:$0xf0] }
 0x158   : > { %v6122_v8 = vld [vmem:[%s7695_s24 + $0xb08] sm:$0xf]  ;;  %v5867_v15 = vor.u32 %v7057_v6, %v5866_v4  ;;  %3758 = vmatpush.bf16.msrb.mxu3 %v6667_v9 }
 0x159   : > { %v7121_v10 = vld [vmem:[%s7695_s24 + $0xb24] sm:$0xf0] }
 0x15a   : > { %v6378_v11 = vld [vmem:[%s7695_s24 + $0xd08] sm:$0xf]  ;;  %v6123_v16 = vor.u32 %v7121_v10, %v6122_v8  ;;  %3720 = vmatpush.bf16.msrb.mxu0 %v5867_v15 }
 0x15b   : > { %v7185_v12 = vld [vmem:[%s7695_s24 + $0xd24] sm:$0xf0] }
 0x15c   : > { %v6634_v13 = vld [vmem:[%s7695_s24 + $0xf08] sm:$0xf]  ;;  %v6379_v17 = vor.u32 %v7185_v12, %v6378_v11  ;;  %3733 = vmatpush.bf16.msrb.mxu1 %v6123_v16  ;;  %v6821_v11 = vld [vmem:[%s7695_s24 + $0x1cc] sm:$0xf] }
 0x15d   : > { %v7249_v14 = vld [vmem:[%s7695_s24 + $0xf24] sm:$0xf0]  ;;  %v4940_v12 = vld [vmem:[%s7695_s24 + $0x1e8] sm:$0xf0] }
 0x15e   : > { %v5834_v18 = vld [vmem:[%s7695_s24 + $0x8c8] sm:$0xf]  ;;  %v6635_v23 = vor.u32 %v7249_v14, %v6634_v13  ;;  %3746 = vmatpush.bf16.msrb.mxu2 %v6379_v17  ;;  %v6885_v13 = vld [vmem:[%s7695_s24 + $0x3cc] sm:$0xf]  ;;  %v3468_v14 = vpop.f32.mrf.mxu0 }
 0x15f   : > { %v7049_v19 = vld [vmem:[%s7695_s24 + $0x8e4] sm:$0xf0]  ;;  %v5196_v16 = vld [vmem:[%s7695_s24 + $0x3e8] sm:$0xf0] }
 0x160   : > { %v6090_v20 = vld [vmem:[%s7695_s24 + $0xac8] sm:$0xf]  ;;  %v5835_v29 = vor.u32 %v7049_v19, %v5834_v18  ;;  %3759 = vmatpush.bf16.msrb.mxu3 %v6635_v23  ;;  %v6949_v17 = vld [vmem:[%s7695_s24 + $0x5cc] sm:$0xf]  ;;  %v3481_v19 = vpop.f32.mrf.mxu1 }
 0x161   : > { %v7113_v24 = vld [vmem:[%s7695_s24 + $0xae4] sm:$0xf0]  ;;  %v5452_v18 = vld [vmem:[%s7695_s24 + $0x5e8] sm:$0xf0] }
 0x162   : > { %v6346_v25 = vld [vmem:[%s7695_s24 + $0xcc8] sm:$0xf]  ;;  %v6091_v30 = vor.u32 %v7113_v24, %v6090_v20  ;;  %3721 = vmatpush.bf16.msrb.mxu0 %v5835_v29  ;;  %v7013_v24 = vld [vmem:[%s7695_s24 + $0x7cc] sm:$0xf]  ;;  %v3507_v29 = vpop.f32.mrf.mxu3 }
 0x163   : > { %v7177_v26 = vld [vmem:[%s7695_s24 + $0xce4] sm:$0xf0]  ;;  %v6789_v14 = vld [vmem:[%s7695_s24 + $0xcc] sm:$0xf] }
 0x164   : > { %v6602_v27 = vld [vmem:[%s7695_s24 + $0xec8] sm:$0xf]  ;;  %v6347_v31 = vor.u32 %v7177_v26, %v6346_v25  ;;  %3734 = vmatpush.bf16.msrb.mxu1 %v6091_v30  ;;  %v5708_v25 = vld [vmem:[%s7695_s24 + $0x7e8] sm:$0xf0]  ;;  %v3494_v26 = vpop.f32.mrf.mxu2  ;;  %v5199_v30 = vor.u32 %v6885_v13, %v5196_v16 }
 0x165   : > { %v7241_v28 = vld [vmem:[%s7695_s24 + $0xee4] sm:$0xf0]  ;;  %v6853_v16 = vld [vmem:[%s7695_s24 + $0x2cc] sm:$0xf] }
 0x166   : > { %v5802_v32 = vld [vmem:[%s7695_s24 + $0x888] sm:$0xf]  ;;  %v6603_v35 = vor.u32 %v7241_v28, %v6602_v27  ;;  %3747 = vmatpush.bf16.msrb.mxu2 %v6347_v31  ;;  %v4943_v28 = vor.u32 %v6821_v11, %v4940_v12  ;;  %v5455_v31 = vor.u32 %v6949_v17, %v5452_v18  ;;  %v3518_v11 = vpop.f32.mrf.mxu0  ;;  %v5580_v26 = vld [vmem:[%s7695_s24 + $0x6e8] sm:$0xf0] }
 0x167   : > { %v7041_v33 = vld [vmem:[%s7695_s24 + $0x8a4] sm:$0xf0] }
 0x168   : > { %v6058_v34 = vld [vmem:[%s7695_s24 + $0xa88] sm:$0xf]  ;;  %v5803_v46 = vor.u32 %v7041_v33, %v5802_v32  ;;  %3760 = vmatpush.bf16.msrb.mxu3 %v6603_v35  ;;  %v3480_v32 = vadd.f32 %v3479_v47, %v3466_v44  ;;  %v6813_v33 = vld [vmem:[%s7695_s24 + $0x18c] sm:$0xf]  ;;  %v3531_v18 = vpop.f32.mrf.mxu1 }
 0x169   : > { %v7105_v36 = vld [vmem:[%s7695_s24 + $0xaa4] sm:$0xf0]  ;;  %v6877_v35 = vld [vmem:[%s7695_s24 + $0x38c] sm:$0xf] }
 0x16a   : > { %v6314_v37 = vld [vmem:[%s7695_s24 + $0xc88] sm:$0xf]  ;;  %v6059_v48 = vor.u32 %v7105_v36, %v6058_v34  ;;  %3722 = vmatpush.bf16.msrb.mxu0 %v5803_v46  ;;  %v4908_v34 = vld [vmem:[%s7695_s24 + $0x1a8] sm:$0xf0]  ;;  %v5711_v36 = vor.u32 %v7013_v24, %v5708_v25 }
 0x16b   : > { %v7169_v38 = vld [vmem:[%s7695_s24 + $0xca4] sm:$0xf0]  ;;  %v5676_v46 = vld [vmem:[%s7695_s24 + $0x7a8] sm:$0xf0]  ;;  %v4911_v44 = vor.u32 %v6813_v33, %v4908_v34 }
 0x16c   : > { %v6570_v40 = vld [vmem:[%s7695_s24 + $0xe88] sm:$0xf]  ;;  %v6315_v49 = vor.u32 %v7169_v38, %v6314_v37  ;;  %3735 = vmatpush.bf16.msrb.mxu1 %v6059_v48  ;;  %v5164_v37 = vld [vmem:[%s7695_s24 + $0x3a8] sm:$0xf0]  ;;  %v3544_v34 = vpop.f32.mrf.mxu2 }
 0x16d   : > { %v7233_v41 = vld [vmem:[%s7695_s24 + $0xea4] sm:$0xf0]  ;;  %v6941_v38 = vld [vmem:[%s7695_s24 + $0x58c] sm:$0xf]  ;;  %v5167_v47 = vor.u32 %v6877_v35, %v5164_v37 }
 0x16e   : > { %v5770_v50 = vld [vmem:[%s7695_s24 + $0x848] sm:$0xf]  ;;  %v6571_v54 = vor.u32 %v7233_v41, %v6570_v40  ;;  %3748 = vmatpush.bf16.msrb.mxu2 %v6315_v49  ;;  %v5420_v40 = vld [vmem:[%s7695_s24 + $0x5a8] sm:$0xf0]  ;;  %v3493_v49 = vadd.f32 %v8133_v53, %v3480_v32 }
 0x16f   : > { %v7033_v51 = vld [vmem:[%s7695_s24 + $0x864] sm:$0xf0]  ;;  %v7005_v41 = vld [vmem:[%s7695_s24 + $0x78c] sm:$0xf]  ;;  %v5423_v48 = vor.u32 %v6941_v38, %v5420_v40 }
 0x170   : > { %v6026_v52 = vld [vmem:[%s7695_s24 + $0xa48] sm:$0xf]  ;;  %v5771_v61 = vor.u32 %v7033_v51, %v5770_v50  ;;  %3761 = vmatpush.bf16.msrb.mxu3 %v6571_v54  ;;  %v6805_v50 = vld [vmem:[%s7695_s24 + $0x14c] sm:$0xf]  ;;  %v5679_v54 = vor.u32 %v7005_v41, %v5676_v46  ;;  %v3557_v41 = vpop.f32.mrf.mxu3 }
 0x171   : > { %v7097_v55 = vld [vmem:[%s7695_s24 + $0xa64] sm:$0xf0]  ;;  %v4876_v51 = vld [vmem:[%s7695_s24 + $0x168] sm:$0xf0] }
 0x172   : > { %v6282_v56 = vld [vmem:[%s7695_s24 + $0xc48] sm:$0xf]  ;;  %v6027_v0 = vor.u32 %v7097_v55, %v6026_v52  ;;  %3723 = vmatpush.bf16.msrb.mxu0 %v5771_v61  ;;  %v6869_v52 = vld [vmem:[%s7695_s24 + $0x34c] sm:$0xf]  ;;  %v3506_v61 = vadd.f32 %v8138_v58, %v3493_v49 }
 0x173   : > { %v7161_v57 = vld [vmem:[%s7695_s24 + $0xc64] sm:$0xf0]  ;;  %v5132_v55 = vld [vmem:[%s7695_s24 + $0x368] sm:$0xf0] }
 0x174   : > { %v6538_v59 = vld [vmem:[%s7695_s24 + $0xe48] sm:$0xf]  ;;  %v6283_v1 = vor.u32 %v7161_v57, %v6282_v56  ;;  %3736 = vmatpush.bf16.msrb.mxu1 %v6027_v0  ;;  %v6933_v56 = vld [vmem:[%s7695_s24 + $0x54c] sm:$0xf]  ;;  %v3519_v17 = vadd.f32 %v3518_v11, %v3506_v61 }
 0x175   : > { %v7225_v60 = vld [vmem:[%s7695_s24 + $0xe64] sm:$0xf0]  ;;  %v5388_v57 = vld [vmem:[%s7695_s24 + $0x568] sm:$0xf0] }
 0x176   : > { %v5738_v62 = vld [vmem:[%s7695_s24 + $0x808] sm:$0xf]  ;;  %v6539_v6 = vor.u32 %v7225_v60, %v6538_v59  ;;  %3749 = vmatpush.bf16.msrb.mxu2 %v6283_v1  ;;  %v6997_v59 = vld [vmem:[%s7695_s24 + $0x74c] sm:$0xf]  ;;  %v4879_v60 = vor.u32 %v6805_v50, %v4876_v51  ;;  %v3520_v50 = vpop.f32.mrf.mxu0 }
 0x177   : > { %v7025_v63 = vld [vmem:[%s7695_s24 + $0x824] sm:$0xf0]  ;;  %v5644_v53 = vld [vmem:[%s7695_s24 + $0x768] sm:$0xf0] }
 0x178   : > { %v5994_v2 = vld [vmem:[%s7695_s24 + $0xa08] sm:$0xf]  ;;  %v5739_v15 = vor.u32 %v7025_v63, %v5738_v62  ;;  %3762 = vmatpush.bf16.msrb.mxu3 %v6539_v6  ;;  %v5135_v62 = vor.u32 %v6869_v52, %v5132_v55  ;;  %v5391_v63 = vor.u32 %v6933_v56, %v5388_v57  ;;  %v6797_v0 = vld [vmem:[%s7695_s24 + $0x10c] sm:$0xf]  ;;  %v3533_v57 = vpop.f32.mrf.mxu1 }
 0x179   : > { %v7089_v3 = vld [vmem:[%s7695_s24 + $0xa24] sm:$0xf0]  ;;  %v4844_v1 = vld [vmem:[%s7695_s24 + $0x128] sm:$0xf0] }
 0x17a   : > { %v6250_v4 = vld [vmem:[%s7695_s24 + $0xc08] sm:$0xf]  ;;  %v5995_v20 = vor.u32 %v7089_v3, %v5994_v2  ;;  %3724 = vmatpush.bf16.msrb.mxu0 %v5739_v15  ;;  %v6861_v2 = vld [vmem:[%s7695_s24 + $0x30c] sm:$0xf]  ;;  %v5647_v3 = vor.u32 %v6997_v59, %v5644_v53  ;;  %v4847_v58 = vor.u32 %v6797_v0, %v4844_v1 }
 0x17b   : > { %v7153_v8 = vld [vmem:[%s7695_s24 + $0xc24] sm:$0xf0]  ;;  %v6925_v6 = vld [vmem:[%s7695_s24 + $0x50c] sm:$0xf] }
 0x17c   : > { %v6506_v9 = vld [vmem:[%s7695_s24 + $0xe08] sm:$0xf]  ;;  %v6251_v23 = vor.u32 %v7153_v8, %v6250_v4  ;;  %3737 = vmatpush.bf16.msrb.mxu1 %v5995_v20  ;;  %v5100_v4 = vld [vmem:[%s7695_s24 + $0x328] sm:$0xf0] }
 0x17d   : > { %v7217_v10 = vld [vmem:[%s7695_s24 + $0xe24] sm:$0xf0]  ;;  %3725 = vmatmul.bf16.vlgmr.msrb.gmra.mxu0 %v7884_v42  ;;  %v5356_v8 = vld [vmem:[%s7695_s24 + $0x528] sm:$0xf0]  ;;  %v5103_v12 = vor.u32 %v6861_v2, %v5100_v4 }
 0x17e   : > { %v6507_v27 = vor.u32 %v7217_v10, %v6506_v9  ;;  %3750 = vmatpush.bf16.msrb.mxu2 %v6251_v23  ;;  %3769 = vmatpush.bf16.msra.mxu0 %v4943_v28  ;;  %v6989_v9 = vld [vmem:[%s7695_s24 + $0x70c] sm:$0xf]  ;;  %v5359_v13 = vor.u32 %v6925_v6, %v5356_v8 }
 0x17f   : > { %3738 = vmatmul.bf16.vlgmr.msrb.gmra.mxu1 %v7888_v45  ;;  %v5612_v10 = vld [vmem:[%s7695_s24 + $0x728] sm:$0xf0] }
 0x180   : > { %3763 = vmatpush.bf16.msrb.mxu3 %v6507_v27  ;;  %3782 = vmatpush.bf16.msra.mxu1 %v5199_v30  ;;  %v4812_v15 = vld [vmem:[%s7695_s24 + $0xe8] sm:$0xf0]  ;;  %v5615_v19 = vor.u32 %v6989_v9, %v5612_v10  ;;  %v3532_v27 = vadd.f32 %v3531_v18, %v3519_v17 }
 0x181   : > { %3751 = vmatmul.bf16.vlgmr.msrb.gmra.mxu2 %v7880_v39  ;;  %v5068_v20 = vld [vmem:[%s7695_s24 + $0x2e8] sm:$0xf0]  ;;  %v4815_v28 = vor.u32 %v6789_v14, %v4812_v15  ;;  %v3559_v15 = vpop.f32.mrf.mxu3 }
 0x182   : > { %3795 = vmatpush.bf16.msra.mxu2 %v5455_v31  ;;  %3770 = vmatpush.bf16.msra.mxu0 %v4911_v44  ;;  %v6917_v23 = vld [vmem:[%s7695_s24 + $0x4cc] sm:$0xf]  ;;  %v5071_v29 = vor.u32 %v6853_v16, %v5068_v20  ;;  %v3545_v40 = vadd.f32 %v3544_v34, %v3532_v27  ;;  %v8261_v15 = vpop.f32.mrf.mxu1 }
 0x183   : > { %3764 = vmatmul.bf16.vlgmr.msrb.gmra.mxu3 %v7886_v43  ;;  %v5324_v24 = vld [vmem:[%s7695_s24 + $0x4e8] sm:$0xf0] }
 0x184   : > { %3808 = vmatpush.bf16.msra.mxu3 %v5711_v36  ;;  %3783 = vmatpush.bf16.msra.mxu1 %v5167_v47  ;;  %v6981_v25 = vld [vmem:[%s7695_s24 + $0x6cc] sm:$0xf]  ;;  %v5327_v30 = vor.u32 %v6917_v23, %v5324_v24  ;;  %v345_v47 = vld [vmem:[#allocation2 + $0x30] sm:$0xff]  ;;  %v3558_v49 = vadd.f32 %v3557_v41, %v3545_v40 }
 0x185   : > { %v6781_v31 = vld [vmem:[%s7695_s24 + $0x8c] sm:$0xf]  ;;  %v5583_v35 = vor.u32 %v6981_v25, %v5580_v26 }
 0x186   : > { %3796 = vmatpush.bf16.msra.mxu2 %v5423_v48  ;;  %3771 = vmatpush.bf16.msra.mxu0 %v4879_v60  ;;  %v4780_v32 = vld [vmem:[%s7695_s24 + $0xa8] sm:$0xf0]  ;;  %v4289_v53 = vadd.f32 %v3558_v49, %v345_v47 }
 0x187   : > { %v6845_v33 = vld [vmem:[%s7695_s24 + $0x28c] sm:$0xf]  ;;  %v4783_v48 = vor.u32 %v6781_v31, %v4780_v32 }
 0x188   : > { %3809 = vmatpush.bf16.msra.mxu3 %v5679_v54  ;;  %3784 = vmatpush.bf16.msra.mxu1 %v5135_v62  ;;  %v5036_v36 = vld [vmem:[%s7695_s24 + $0x2a8] sm:$0xf0]  ;;  %4297 = vst [vmem:[#allocation2 + $0x30] sm:$0xff] %v4289_v53 }
 0x189   : > { %v6909_v37 = vld [vmem:[%s7695_s24 + $0x48c] sm:$0xf]  ;;  %v5039_v51 = vor.u32 %v6845_v33, %v5036_v36 }
 0x18a   : > { %3797 = vmatpush.bf16.msra.mxu2 %v5391_v63  ;;  %3772 = vmatpush.bf16.msra.mxu0 %v4847_v58  ;;  %v5292_v38 = vld [vmem:[%s7695_s24 + $0x4a8] sm:$0xf0]  ;;  %v3546_v58 = vpop.f32.mrf.mxu2 }
 0x18b   : > { %v6973_v46 = vld [vmem:[%s7695_s24 + $0x68c] sm:$0xf]  ;;  %v5295_v52 = vor.u32 %v6909_v37, %v5292_v38 }
 0x18c   : > { %3810 = vmatpush.bf16.msra.mxu3 %v5647_v3  ;;  %3785 = vmatpush.bf16.msra.mxu1 %v5103_v12  ;;  %v5548_v44 = vld [vmem:[%s7695_s24 + $0x6a8] sm:$0xf0] }
 0x18d   : > { %v6773_v54 = vld [vmem:[%s7695_s24 + $0x4c] sm:$0xf]  ;;  %v5551_v59 = vor.u32 %v6973_v46, %v5548_v44 }
 0x18e   : > { %3798 = vmatpush.bf16.msra.mxu2 %v5359_v13  ;;  %3773 = vmatpush.bf16.msra.mxu0 %v4815_v28  ;;  %v4748_v55 = vld [vmem:[%s7695_s24 + $0x68] sm:$0xf0] }
 0x18f   : > { %v6837_v56 = vld [vmem:[%s7695_s24 + $0x24c] sm:$0xf]  ;;  %v4751_v1 = vor.u32 %v6773_v54, %v4748_v55 }
 0x190   : > { %3811 = vmatpush.bf16.msra.mxu3 %v5615_v19  ;;  %3786 = vmatpush.bf16.msra.mxu1 %v5071_v29  ;;  %v5004_v60 = vld [vmem:[%s7695_s24 + $0x268] sm:$0xf0] }
 0x191   : > { %v6901_v61 = vld [vmem:[%s7695_s24 + $0x44c] sm:$0xf]  ;;  %v5007_v4 = vor.u32 %v6837_v56, %v5004_v60 }
 0x192   : > { %3799 = vmatpush.bf16.msra.mxu2 %v5327_v30  ;;  %v5260_v62 = vld [vmem:[%s7695_s24 + $0x468] sm:$0xf0]  ;;  %3774 = vmatpush.bf16.msra.mxu0 %v4783_v48 }
 0x193   : > { %v6965_v63 = vld [vmem:[%s7695_s24 + $0x64c] sm:$0xf]  ;;  %v5263_v6 = vor.u32 %v6901_v61, %v5260_v62 }
 0x194   : > { %3812 = vmatpush.bf16.msra.mxu3 %v5583_v35  ;;  %v5516_v0 = vld [vmem:[%s7695_s24 + $0x668] sm:$0xf0]  ;;  %3787 = vmatpush.bf16.msra.mxu1 %v5039_v51 }
 0x195   : > { %v6765_v2 = vld [vmem:[%s7695_s24 + $0xc] sm:$0xf]  ;;  %v5519_v11 = vor.u32 %v6965_v63, %v5516_v0 }
 0x196   : > { %v4716_v3 = vld [vmem:[%s7695_s24 + $0x28] sm:$0xf0]  ;;  %3800 = vmatpush.bf16.msra.mxu2 %v5295_v52  ;;  %3775 = vmatpush.bf16.msra.mxu0 %v4751_v1 }
 0x197   : > { %v6829_v8 = vld [vmem:[%s7695_s24 + $0x20c] sm:$0xf]  ;;  %v4719_v19 = vor.u32 %v6765_v2, %v4716_v3 }
 0x198   : > { %v4972_v9 = vld [vmem:[%s7695_s24 + $0x228] sm:$0xf0]  ;;  %3813 = vmatpush.bf16.msra.mxu3 %v5551_v59  ;;  %3788 = vmatpush.bf16.msra.mxu1 %v5007_v4 }
 0x199   : > { %v6893_v10 = vld [vmem:[%s7695_s24 + $0x40c] sm:$0xf]  ;;  %v4975_v25 = vor.u32 %v6829_v8, %v4972_v9 }
 0x19a   : > { %v5228_v12 = vld [vmem:[%s7695_s24 + $0x428] sm:$0xf0]  ;;  %3801 = vmatpush.bf16.msra.mxu2 %v5263_v6  ;;  %3776 = vmatpush.bf16.msra.mxu0 %v4719_v19 }
 0x19b   : > { %v6957_v13 = vld [vmem:[%s7695_s24 + $0x60c] sm:$0xf]  ;;  %v5231_v26 = vor.u32 %v6893_v10, %v5228_v12  ;;  %v8256_v10 = vpop.f32.mrf.mxu0 }
 0x19c   : > { %v5484_v14 = vld [vmem:[%s7695_s24 + $0x628] sm:$0xf0]  ;;  %3814 = vmatpush.bf16.msra.mxu3 %v5519_v11  ;;  %3789 = vmatpush.bf16.msra.mxu1 %v4975_v25 }
 0x19d   : > { %v7077_v16 = vld [vmem:[%s7695_s24 + $0x9cc] sm:$0xf]  ;;  %v5487_v29 = vor.u32 %v6957_v13, %v5484_v14  ;;  %3777 = vmatmul.bf16.vlgmr.msra.gmra.mxu0 %v7825_v21 }
 0x19e   : > { %v5964_v17 = vld [vmem:[%s7695_s24 + $0x9e8] sm:$0xf0]  ;;  %3802 = vmatpush.bf16.msra.mxu2 %v5231_v26 }
 0x19f   : > { %v7141_v18 = vld [vmem:[%s7695_s24 + $0xbcc] sm:$0xf]  ;;  %v5967_v30 = vor.u32 %v7077_v16, %v5964_v17  ;;  %3790 = vmatmul.bf16.vlgmr.msra.gmra.mxu1 %v7828_v22 }
 0x1a0   : > { %v6220_v20 = vld [vmem:[%s7695_s24 + $0xbe8] sm:$0xf0]  ;;  %3815 = vmatpush.bf16.msra.mxu3 %v5487_v29 }
 0x1a1   : > { %v7205_v23 = vld [vmem:[%s7695_s24 + $0xdcc] sm:$0xf]  ;;  %v6223_v31 = vor.u32 %v7141_v18, %v6220_v20  ;;  %3821 = vmatpush.bf16.msrb.mxu0 %v5967_v30  ;;  %3803 = vmatmul.bf16.vlgmr.msra.gmra.mxu2 %v7811_v5  ;;  %v8271_v30 = vpop.f32.mrf.mxu2 }
 0x1a2   : > { %v6476_v24 = vld [vmem:[%s7695_s24 + $0xde8] sm:$0xf0] }
 0x1a3   : > { %v7269_v27 = vld [vmem:[%s7695_s24 + $0xfcc] sm:$0xf]  ;;  %v6479_v32 = vor.u32 %v7205_v23, %v6476_v24  ;;  %3834 = vmatpush.bf16.msrb.mxu1 %v6223_v31  ;;  %3816 = vmatmul.bf16.vlgmr.msra.gmra.mxu3 %v7814_v7 }
 0x1a4   : > { %v6732_v28 = vld [vmem:[%s7695_s24 + $0xfe8] sm:$0xf0] }
 0x1a5   : > { %v7069_v33 = vld [vmem:[%s7695_s24 + $0x98c] sm:$0xf]  ;;  %v6735_v36 = vor.u32 %v7269_v27, %v6732_v28  ;;  %3847 = vmatpush.bf16.msrb.mxu2 %v6479_v32 }
 0x1a6   : > { %v5932_v34 = vld [vmem:[%s7695_s24 + $0x9a8] sm:$0xf0] }
 0x1a7   : > { %v7133_v35 = vld [vmem:[%s7695_s24 + $0xb8c] sm:$0xf]  ;;  %v5935_v44 = vor.u32 %v7069_v33, %v5932_v34  ;;  %3860 = vmatpush.bf16.msrb.mxu3 %v6735_v36 }
 0x1a8   : > { %v6188_v37 = vld [vmem:[%s7695_s24 + $0xba8] sm:$0xf0] }
 0x1a9   : > { %v7197_v38 = vld [vmem:[%s7695_s24 + $0xd8c] sm:$0xf]  ;;  %v6191_v47 = vor.u32 %v7133_v35, %v6188_v37  ;;  %3822 = vmatpush.bf16.msrb.mxu0 %v5935_v44  ;;  %v8276_v35 = vpop.f32.mrf.mxu3 }
 0x1aa   : > { %v6444_v40 = vld [vmem:[%s7695_s24 + $0xda8] sm:$0xf0] }
 0x1ab   : > { %v7261_v41 = vld [vmem:[%s7695_s24 + $0xf8c] sm:$0xf]  ;;  %v6447_v48 = vor.u32 %v7197_v38, %v6444_v40  ;;  %3835 = vmatpush.bf16.msrb.mxu1 %v6191_v47  ;;  %v3572_v40 = vpop.f32.mrf.mxu0 }
 0x1ac   : > { %v6700_v46 = vld [vmem:[%s7695_s24 + $0xfa8] sm:$0xf0] }
 0x1ad   : > { %v7061_v49 = vld [vmem:[%s7695_s24 + $0x94c] sm:$0xf]  ;;  %v6703_v52 = vor.u32 %v7261_v41, %v6700_v46  ;;  %3848 = vmatpush.bf16.msrb.mxu2 %v6447_v48 }
 0x1ae   : > { %v5900_v50 = vld [vmem:[%s7695_s24 + $0x968] sm:$0xf0] }
 0x1af   : > { %v7125_v51 = vld [vmem:[%s7695_s24 + $0xb4c] sm:$0xf]  ;;  %v5903_v53 = vor.u32 %v7061_v49, %v5900_v50  ;;  %3861 = vmatpush.bf16.msrb.mxu3 %v6703_v52  ;;  %v3585_v49 = vpop.f32.mrf.mxu1 }
 0x1b0   : > { %v6156_v54 = vld [vmem:[%s7695_s24 + $0xb68] sm:$0xf0]  ;;  %v6874_v49 = vld [vmem:[%s7695_s24 + $0x36c] sm:$0xf0] }
 0x1b1   : > { %v7189_v55 = vld [vmem:[%s7695_s24 + $0xd4c] sm:$0xf]  ;;  %v6159_v60 = vor.u32 %v7125_v51, %v6156_v54  ;;  %3823 = vmatpush.bf16.msrb.mxu0 %v5903_v53 }
 0x1b2   : > { %v6412_v56 = vld [vmem:[%s7695_s24 + $0xd68] sm:$0xf0] }
 0x1b3   : > { %v7253_v57 = vld [vmem:[%s7695_s24 + $0xf4c] sm:$0xf]  ;;  %v6415_v61 = vor.u32 %v7189_v55, %v6412_v56  ;;  %3836 = vmatpush.bf16.msrb.mxu1 %v6159_v60 }
 0x1b4   : > { %v6668_v59 = vld [vmem:[%s7695_s24 + $0xf68] sm:$0xf0] }
 0x1b5   : > { %v7053_v62 = vld [vmem:[%s7695_s24 + $0x90c] sm:$0xf]  ;;  %v6671_v1 = vor.u32 %v7253_v57, %v6668_v59  ;;  %3849 = vmatpush.bf16.msrb.mxu2 %v6415_v61 }
 0x1b6   : > { %v5868_v63 = vld [vmem:[%s7695_s24 + $0x928] sm:$0xf0] }
 0x1b7   : > { %v7117_v0 = vld [vmem:[%s7695_s24 + $0xb0c] sm:$0xf]  ;;  %v5871_v9 = vor.u32 %v7053_v62, %v5868_v63  ;;  %3862 = vmatpush.bf16.msrb.mxu3 %v6671_v1  ;;  %v3598_v1 = vpop.f32.mrf.mxu2 }
 0x1b8   : > { %v6124_v2 = vld [vmem:[%s7695_s24 + $0xb28] sm:$0xf0]  ;;  %v5618_v1 = vld [vmem:[%s7695_s24 + $0x710] sm:$0xf] }
 0x1b9   : > { %v7181_v3 = vld [vmem:[%s7695_s24 + $0xd0c] sm:$0xf]  ;;  %v6127_v58 = vor.u32 %v7117_v0, %v6124_v2  ;;  %3824 = vmatpush.bf16.msrb.mxu0 %v5871_v9  ;;  %v4946_v9 = vld [vmem:[%s7695_s24 + $0x1d0] sm:$0xf] }
 0x1ba   : > { %v6380_v4 = vld [vmem:[%s7695_s24 + $0xd28] sm:$0xf0] }
 0x1bb   : > { %v7245_v6 = vld [vmem:[%s7695_s24 + $0xf0c] sm:$0xf]  ;;  %v6383_v11 = vor.u32 %v7181_v3, %v6380_v4  ;;  %3837 = vmatpush.bf16.msrb.mxu1 %v6127_v58  ;;  %v6826_v58 = vld [vmem:[%s7695_s24 + $0x1ec] sm:$0xf0] }
 0x1bc   : > { %v6636_v8 = vld [vmem:[%s7695_s24 + $0xf28] sm:$0xf0] }
 0x1bd   : > { %v7045_v12 = vld [vmem:[%s7695_s24 + $0x8cc] sm:$0xf]  ;;  %v6639_v16 = vor.u32 %v7245_v6, %v6636_v8  ;;  %3850 = vmatpush.bf16.msrb.mxu2 %v6383_v11  ;;  %v3611_v8 = vpop.f32.mrf.mxu3  ;;  %v5202_v11 = vld [vmem:[%s7695_s24 + $0x3d0] sm:$0xf] }
 0x1be   : > { %v5836_v13 = vld [vmem:[%s7695_s24 + $0x8e8] sm:$0xf0]  ;;  %v4818_v8 = vld [vmem:[%s7695_s24 + $0xd0] sm:$0xf] }
 0x1bf   : > { %v7109_v14 = vld [vmem:[%s7695_s24 + $0xacc] sm:$0xf]  ;;  %v5839_v24 = vor.u32 %v7045_v12, %v5836_v13  ;;  %3863 = vmatpush.bf16.msrb.mxu3 %v6639_v16  ;;  %v6890_v13 = vld [vmem:[%s7695_s24 + $0x3ec] sm:$0xf0] }
 0x1c0   : > { %v6092_v17 = vld [vmem:[%s7695_s24 + $0xae8] sm:$0xf0]  ;;  %v6954_v16 = vld [vmem:[%s7695_s24 + $0x5ec] sm:$0xf0] }
 0x1c1   : > { %v7173_v18 = vld [vmem:[%s7695_s24 + $0xccc] sm:$0xf]  ;;  %v6095_v25 = vor.u32 %v7109_v14, %v6092_v17  ;;  %3825 = vmatpush.bf16.msrb.mxu0 %v5839_v24  ;;  %v5458_v14 = vld [vmem:[%s7695_s24 + $0x5d0] sm:$0xf]  ;;  %v4947_v24 = vor.u32 %v6826_v58, %v4946_v9 }
 0x1c2   : > { %v6348_v19 = vld [vmem:[%s7695_s24 + $0xce8] sm:$0xf0]  ;;  %v6794_v9 = vld [vmem:[%s7695_s24 + $0xec] sm:$0xf0] }
 0x1c3   : > { %v7237_v20 = vld [vmem:[%s7695_s24 + $0xecc] sm:$0xf]  ;;  %v6351_v26 = vor.u32 %v7173_v18, %v6348_v19  ;;  %3838 = vmatpush.bf16.msrb.mxu1 %v6095_v25  ;;  %v5714_v19 = vld [vmem:[%s7695_s24 + $0x7d0] sm:$0xf]  ;;  %v5203_v25 = vor.u32 %v6890_v13, %v5202_v11 }
 0x1c4   : > { %v6604_v23 = vld [vmem:[%s7695_s24 + $0xee8] sm:$0xf0]  ;;  %v5074_v58 = vld [vmem:[%s7695_s24 + $0x2d0] sm:$0xf] }
 0x1c5   : > { %v7037_v27 = vld [vmem:[%s7695_s24 + $0x88c] sm:$0xf]  ;;  %v6607_v31 = vor.u32 %v7237_v20, %v6604_v23  ;;  %3851 = vmatpush.bf16.msrb.mxu2 %v6351_v26  ;;  %v7018_v20 = vld [vmem:[%s7695_s24 + $0x7ec] sm:$0xf0]  ;;  %v5459_v26 = vor.u32 %v6954_v16, %v5458_v14 }
 0x1c6   : > { %v5804_v28 = vld [vmem:[%s7695_s24 + $0x8a8] sm:$0xf0]  ;;  %v6858_v14 = vld [vmem:[%s7695_s24 + $0x2ec] sm:$0xf0] }
 0x1c7   : > { %v7101_v29 = vld [vmem:[%s7695_s24 + $0xa8c] sm:$0xf]  ;;  %v5807_v38 = vor.u32 %v7037_v27, %v5804_v28  ;;  %3864 = vmatpush.bf16.msrb.mxu3 %v6607_v31  ;;  %v3584_v27 = vadd.f32 %v8261_v15, %v8256_v10  ;;  %v4914_v28 = vld [vmem:[%s7695_s24 + $0x190] sm:$0xf] }
 0x1c8   : > { %v6060_v32 = vld [vmem:[%s7695_s24 + $0xaa8] sm:$0xf0]  ;;  %v5170_v31 = vld [vmem:[%s7695_s24 + $0x390] sm:$0xf] }
 0x1c9   : > { %v7165_v33 = vld [vmem:[%s7695_s24 + $0xc8c] sm:$0xf]  ;;  %v6063_v41 = vor.u32 %v7101_v29, %v6060_v32  ;;  %3826 = vmatpush.bf16.msrb.mxu0 %v5807_v38  ;;  %v6818_v29 = vld [vmem:[%s7695_s24 + $0x1ac] sm:$0xf0]  ;;  %v5715_v32 = vor.u32 %v7018_v20, %v5714_v19 }
 0x1ca   : > { %v6316_v34 = vld [vmem:[%s7695_s24 + $0xca8] sm:$0xf0]  ;;  %v7010_v38 = vld [vmem:[%s7695_s24 + $0x7ac] sm:$0xf0]  ;;  %v4915_v10 = vor.u32 %v6818_v29, %v4914_v28  ;;  %v3648_v29 = vpop.f32.mrf.mxu2 }
 0x1cb   : > { %v7229_v36 = vld [vmem:[%s7695_s24 + $0xe8c] sm:$0xf]  ;;  %v6319_v46 = vor.u32 %v7165_v33, %v6316_v34  ;;  %3839 = vmatpush.bf16.msrb.mxu1 %v6063_v41  ;;  %v6882_v33 = vld [vmem:[%s7695_s24 + $0x3ac] sm:$0xf0]  ;;  %v3597_v41 = vadd.f32 %v8271_v30, %v3584_v27 }
 0x1cc   : > { %v6572_v37 = vld [vmem:[%s7695_s24 + $0xea8] sm:$0xf0]  ;;  %v5426_v34 = vld [vmem:[%s7695_s24 + $0x590] sm:$0xf]  ;;  %v5171_v15 = vor.u32 %v6882_v33, %v5170_v31 }
 0x1cd   : > { %v7029_v44 = vld [vmem:[%s7695_s24 + $0x84c] sm:$0xf]  ;;  %v6575_v50 = vor.u32 %v7229_v36, %v6572_v37  ;;  %3852 = vmatpush.bf16.msrb.mxu2 %v6319_v46  ;;  %v6946_v36 = vld [vmem:[%s7695_s24 + $0x5ac] sm:$0xf0] }
 0x1ce   : > { %v5772_v47 = vld [vmem:[%s7695_s24 + $0x868] sm:$0xf0]  ;;  %v5682_v37 = vld [vmem:[%s7695_s24 + $0x790] sm:$0xf]  ;;  %v5427_v40 = vor.u32 %v6946_v36, %v5426_v34 }
 0x1cf   : > { %v7093_v48 = vld [vmem:[%s7695_s24 + $0xa4c] sm:$0xf]  ;;  %v5775_v57 = vor.u32 %v7029_v44, %v5772_v47  ;;  %3865 = vmatpush.bf16.msrb.mxu3 %v6575_v50  ;;  %v4882_v46 = vld [vmem:[%s7695_s24 + $0x150] sm:$0xf] }
 0x1d0   : > { %v6028_v51 = vld [vmem:[%s7695_s24 + $0xa68] sm:$0xf0]  ;;  %v6810_v44 = vld [vmem:[%s7695_s24 + $0x16c] sm:$0xf0] }
 0x1d1   : > { %v7157_v52 = vld [vmem:[%s7695_s24 + $0xc4c] sm:$0xf]  ;;  %v6031_v60 = vor.u32 %v7093_v48, %v6028_v51  ;;  %3827 = vmatpush.bf16.msrb.mxu0 %v5775_v57  ;;  %v5138_v47 = vld [vmem:[%s7695_s24 + $0x350] sm:$0xf]  ;;  %v5683_v48 = vor.u32 %v7010_v38, %v5682_v37  ;;  %v3661_v37 = vpop.f32.mrf.mxu3 }
 0x1d2   : > { %v6284_v54 = vld [vmem:[%s7695_s24 + $0xc68] sm:$0xf0]  ;;  %v5394_v50 = vld [vmem:[%s7695_s24 + $0x550] sm:$0xf] }
 0x1d3   : > { %v7221_v55 = vld [vmem:[%s7695_s24 + $0xe4c] sm:$0xf]  ;;  %v6287_v61 = vor.u32 %v7157_v52, %v6284_v54  ;;  %3840 = vmatpush.bf16.msrb.mxu1 %v6031_v60  ;;  %v6938_v51 = vld [vmem:[%s7695_s24 + $0x56c] sm:$0xf0]  ;;  %v4883_v54 = vor.u32 %v6810_v44, %v4882_v46 }
 0x1d4   : > { %v6540_v56 = vld [vmem:[%s7695_s24 + $0xe68] sm:$0xf0]  ;;  %v5650_v52 = vld [vmem:[%s7695_s24 + $0x750] sm:$0xf]  ;;  %v5395_v57 = vor.u32 %v6938_v51, %v5394_v50 }
 0x1d5   : > { %v7021_v59 = vld [vmem:[%s7695_s24 + $0x80c] sm:$0xf]  ;;  %v6543_v2 = vor.u32 %v7221_v55, %v6540_v56  ;;  %3853 = vmatpush.bf16.msrb.mxu2 %v6287_v61  ;;  %v7002_v30 = vld [vmem:[%s7695_s24 + $0x76c] sm:$0xf0]  ;;  %v3610_v55 = vadd.f32 %v8276_v35, %v3597_v41  ;;  %v5139_v56 = vor.u32 %v6874_v49, %v5138_v47 }
 0x1d6   : > { %v5740_v53 = vld [vmem:[%s7695_s24 + $0x828] sm:$0xf0]  ;;  %v5106_v60 = vld [vmem:[%s7695_s24 + $0x310] sm:$0xf]  ;;  %v5651_v61 = vor.u32 %v7002_v30, %v5650_v52 }
 0x1d7   : > { %v7085_v62 = vld [vmem:[%s7695_s24 + $0xa0c] sm:$0xf]  ;;  %v5743_v12 = vor.u32 %v7021_v59, %v5740_v53  ;;  %3866 = vmatpush.bf16.msrb.mxu3 %v6543_v2  ;;  %v4850_v59 = vld [vmem:[%s7695_s24 + $0x110] sm:$0xf] }
 0x1d8   : > { %v5996_v63 = vld [vmem:[%s7695_s24 + $0xa28] sm:$0xf0]  ;;  %v6802_v53 = vld [vmem:[%s7695_s24 + $0x12c] sm:$0xf0] }
 0x1d9   : > { %v7149_v0 = vld [vmem:[%s7695_s24 + $0xc0c] sm:$0xf]  ;;  %v5999_v17 = vor.u32 %v7085_v62, %v5996_v63  ;;  %3828 = vmatpush.bf16.msrb.mxu0 %v5743_v12  ;;  %v6866_v62 = vld [vmem:[%s7695_s24 + $0x32c] sm:$0xf0]  ;;  %v4851_v35 = vor.u32 %v6802_v53, %v4850_v59  ;;  %v3635_v12 = vpop.f32.mrf.mxu1 }
 0x1da   : > { %v6252_v3 = vld [vmem:[%s7695_s24 + $0xc28] sm:$0xf0]  ;;  %v5362_v63 = vld [vmem:[%s7695_s24 + $0x510] sm:$0xf] }
 0x1db   : > { %v7213_v4 = vld [vmem:[%s7695_s24 + $0xe0c] sm:$0xf]  ;;  %v6255_v18 = vor.u32 %v7149_v0, %v6252_v3  ;;  %3841 = vmatpush.bf16.msrb.mxu1 %v5999_v17  ;;  %v6930_v0 = vld [vmem:[%s7695_s24 + $0x52c] sm:$0xf0]  ;;  %v3622_v3 = vpop.f32.mrf.mxu0 }
 0x1dc   : > { %v6508_v6 = vld [vmem:[%s7695_s24 + $0xe28] sm:$0xf0]  ;;  %3829 = vmatmul.bf16.vlgmr.msrb.gmra.mxu0 %v7884_v42  ;;  %v6994_v2 = vld [vmem:[%s7695_s24 + $0x72c] sm:$0xf0]  ;;  %v3623_v11 = vadd.f32 %v3622_v3, %v3610_v55 }
 0x1dd   : > { %v6511_v23 = vor.u32 %v7213_v4, %v6508_v6  ;;  %3854 = vmatpush.bf16.msrb.mxu2 %v6255_v18  ;;  %3873 = vmatpush.bf16.msra.mxu0 %v4947_v24  ;;  %v5107_v4 = vor.u32 %v6866_v62, %v5106_v60  ;;  %v5363_v6 = vor.u32 %v6930_v0, %v5362_v63  ;;  %v5330_v16 = vld [vmem:[%s7695_s24 + $0x4d0] sm:$0xf] }
 0x1de   : > { %3842 = vmatmul.bf16.vlgmr.msrb.gmra.mxu1 %v7888_v45  ;;  %v5619_v13 = vor.u32 %v6994_v2, %v5618_v1  ;;  %v6922_v17 = vld [vmem:[%s7695_s24 + $0x4ec] sm:$0xf0]  ;;  %v3636_v20 = vadd.f32 %v3635_v12, %v3623_v11  ;;  %v5075_v24 = vor.u32 %v6858_v14, %v5074_v58 }
 0x1df   : > { %3867 = vmatpush.bf16.msrb.mxu3 %v6511_v23  ;;  %3886 = vmatpush.bf16.msra.mxu1 %v5203_v25  ;;  %v5586_v18 = vld [vmem:[%s7695_s24 + $0x6d0] sm:$0xf]  ;;  %v4819_v23 = vor.u32 %v6794_v9, %v4818_v8  ;;  %v5331_v25 = vor.u32 %v6922_v17, %v5330_v16  ;;  %v3663_v9 = vpop.f32.mrf.mxu3 }
 0x1e0   : > { %3855 = vmatmul.bf16.vlgmr.msrb.gmra.mxu2 %v7880_v39  ;;  %v6986_v19 = vld [vmem:[%s7695_s24 + $0x6ec] sm:$0xf0]  ;;  %v3649_v36 = vadd.f32 %v3648_v29, %v3636_v20 }
 0x1e1   : > { %3899 = vmatpush.bf16.msra.mxu2 %v5459_v26  ;;  %3874 = vmatpush.bf16.msra.mxu0 %v4915_v10  ;;  %v4786_v26 = vld [vmem:[%s7695_s24 + $0x90] sm:$0xf]  ;;  %v5587_v31 = vor.u32 %v6986_v19, %v5586_v18  ;;  %v3637_v51 = vpop.f32.mrf.mxu1 }
 0x1e2   : > { %3868 = vmatmul.bf16.vlgmr.msrb.gmra.mxu3 %v7886_v43  ;;  %v6786_v27 = vld [vmem:[%s7695_s24 + $0xac] sm:$0xf0]  ;;  %v3662_v41 = vadd.f32 %v3661_v37, %v3649_v36 }
 0x1e3   : > { %3912 = vmatpush.bf16.msra.mxu3 %v5715_v32  ;;  %3887 = vmatpush.bf16.msra.mxu1 %v5171_v15  ;;  %v5042_v28 = vld [vmem:[%s7695_s24 + $0x290] sm:$0xf]  ;;  %v346_v15 = vld [vmem:[#allocation2] sm:$0xff]  ;;  %v3624_v46 = vpop.f32.mrf.mxu0 }
 0x1e4   : > { %v6850_v32 = vld [vmem:[%s7695_s24 + $0x2ac] sm:$0xf0]  ;;  %v4290_v30 = vadd.f32 %v3662_v41, %v346_v15 }
 0x1e5   : > { %3900 = vmatpush.bf16.msra.mxu2 %v5427_v40  ;;  %3875 = vmatpush.bf16.msra.mxu0 %v4883_v54  ;;  %v5298_v33 = vld [vmem:[%s7695_s24 + $0x490] sm:$0xf]  ;;  %v4787_v40 = vor.u32 %v6786_v27, %v4786_v26  ;;  %v5043_v44 = vor.u32 %v6850_v32, %v5042_v28 }
 0x1e6   : > { %v6914_v34 = vld [vmem:[%s7695_s24 + $0x4ac] sm:$0xf0]  ;;  %4298 = vst [vmem:[#allocation2] sm:$0xff] %v4290_v30 }
 0x1e7   : > { %3913 = vmatpush.bf16.msra.mxu3 %v5683_v48  ;;  %3888 = vmatpush.bf16.msra.mxu1 %v5139_v56  ;;  %v5554_v38 = vld [vmem:[%s7695_s24 + $0x690] sm:$0xf]  ;;  %v5299_v47 = vor.u32 %v6914_v34, %v5298_v33 }
 0x1e8   : > { %v6978_v10 = vld [vmem:[%s7695_s24 + $0x6ac] sm:$0xf0] }
 0x1e9   : > { %3901 = vmatpush.bf16.msra.mxu2 %v5395_v57  ;;  %3876 = vmatpush.bf16.msra.mxu0 %v4851_v35  ;;  %v4754_v48 = vld [vmem:[%s7695_s24 + $0x50] sm:$0xf]  ;;  %v5555_v52 = vor.u32 %v6978_v10, %v5554_v38  ;;  %v3650_v35 = vpop.f32.mrf.mxu2  ;;  %v8409_v9 = vpop.f32.mrf.mxu1 }
 0x1ea   : > { %v6778_v49 = vld [vmem:[%s7695_s24 + $0x6c] sm:$0xf0] }
 0x1eb   : > { %3914 = vmatpush.bf16.msra.mxu3 %v5651_v61  ;;  %3889 = vmatpush.bf16.msra.mxu1 %v5107_v4  ;;  %v5010_v50 = vld [vmem:[%s7695_s24 + $0x250] sm:$0xf]  ;;  %v4755_v53 = vor.u32 %v6778_v49, %v4754_v48 }
 0x1ec   : > { %v6842_v54 = vld [vmem:[%s7695_s24 + $0x26c] sm:$0xf0] }
 0x1ed   : > { %3902 = vmatpush.bf16.msra.mxu2 %v5363_v6  ;;  %3877 = vmatpush.bf16.msra.mxu0 %v4819_v23  ;;  %v5266_v55 = vld [vmem:[%s7695_s24 + $0x450] sm:$0xf]  ;;  %v5011_v62 = vor.u32 %v6842_v54, %v5010_v50 }
 0x1ee   : > { %v6906_v56 = vld [vmem:[%s7695_s24 + $0x46c] sm:$0xf0] }
 0x1ef   : > { %3915 = vmatpush.bf16.msra.mxu3 %v5619_v13  ;;  %3890 = vmatpush.bf16.msra.mxu1 %v5075_v24  ;;  %v5522_v57 = vld [vmem:[%s7695_s24 + $0x650] sm:$0xf]  ;;  %v5267_v63 = vor.u32 %v6906_v56, %v5266_v55 }
 0x1f0   : > { %v6970_v59 = vld [vmem:[%s7695_s24 + $0x66c] sm:$0xf0] }
 0x1f1   : > { %3903 = vmatpush.bf16.msra.mxu2 %v5331_v25  ;;  %3878 = vmatpush.bf16.msra.mxu0 %v4787_v40  ;;  %v4722_v60 = vld [vmem:[%s7695_s24 + $0x10] sm:$0xf]  ;;  %v5523_v3 = vor.u32 %v6970_v59, %v5522_v57 }
 0x1f2   : > { %v6770_v61 = vld [vmem:[%s7695_s24 + $0x2c] sm:$0xf0] }
 0x1f3   : > { %3916 = vmatpush.bf16.msra.mxu3 %v5587_v31  ;;  %3891 = vmatpush.bf16.msra.mxu1 %v5043_v44  ;;  %v4978_v0 = vld [vmem:[%s7695_s24 + $0x210] sm:$0xf]  ;;  %v4723_v13 = vor.u32 %v6770_v61, %v4722_v60 }
 0x1f4   : > { %v6834_v1 = vld [vmem:[%s7695_s24 + $0x22c] sm:$0xf0] }
 0x1f5   : > { %3904 = vmatpush.bf16.msra.mxu2 %v5299_v47  ;;  %v5234_v2 = vld [vmem:[%s7695_s24 + $0x410] sm:$0xf]  ;;  %3879 = vmatpush.bf16.msra.mxu0 %v4755_v53  ;;  %v4979_v18 = vor.u32 %v6834_v1, %v4978_v0 }
 0x1f6   : > { %v6898_v4 = vld [vmem:[%s7695_s24 + $0x42c] sm:$0xf0] }
 0x1f7   : > { %3917 = vmatpush.bf16.msra.mxu3 %v5555_v52  ;;  %v5490_v6 = vld [vmem:[%s7695_s24 + $0x610] sm:$0xf]  ;;  %3892 = vmatpush.bf16.msra.mxu1 %v5011_v62  ;;  %v5235_v19 = vor.u32 %v6898_v4, %v5234_v2  ;;  %v8404_v2 = vpop.f32.mrf.mxu0 }
 0x1f8   : > { %v6962_v8 = vld [vmem:[%s7695_s24 + $0x62c] sm:$0xf0] }
 0x1f9   : > { %v5970_v58 = vld [vmem:[%s7695_s24 + $0x9d0] sm:$0xf]  ;;  %3905 = vmatpush.bf16.msra.mxu2 %v5267_v63  ;;  %v5491_v24 = vor.u32 %v6962_v8, %v5490_v6  ;;  %3880 = vmatpush.bf16.msra.mxu0 %v4723_v13 }
 0x1fa   : > { %v7082_v11 = vld [vmem:[%s7695_s24 + $0x9ec] sm:$0xf0] }
 0x1fb   : > { %v6226_v12 = vld [vmem:[%s7695_s24 + $0xbd0] sm:$0xf]  ;;  %3918 = vmatpush.bf16.msra.mxu3 %v5523_v3  ;;  %v5971_v25 = vor.u32 %v7082_v11, %v5970_v58  ;;  %3893 = vmatpush.bf16.msra.mxu1 %v4979_v18 }
 0x1fc   : > { %v7146_v14 = vld [vmem:[%s7695_s24 + $0xbec] sm:$0xf0]  ;;  %3881 = vmatmul.bf16.vlgmr.msra.gmra.mxu0 %v7825_v21 }
 0x1fd   : > { %v6482_v16 = vld [vmem:[%s7695_s24 + $0xdd0] sm:$0xf]  ;;  %v6227_v26 = vor.u32 %v7146_v14, %v6226_v12  ;;  %3906 = vmatpush.bf16.msra.mxu2 %v5235_v19  ;;  %3925 = vmatpush.bf16.msrb.mxu0 %v5971_v25  ;;  %v8419_v25 = vpop.f32.mrf.mxu2 }
 0x1fe   : > { %v7210_v17 = vld [vmem:[%s7695_s24 + $0xdec] sm:$0xf0]  ;;  %3894 = vmatmul.bf16.vlgmr.msra.gmra.mxu1 %v7828_v22 }
 0x1ff   : > { %v6738_v20 = vld [vmem:[%s7695_s24 + $0xfd0] sm:$0xf]  ;;  %v6483_v27 = vor.u32 %v7210_v17, %v6482_v16  ;;  %3919 = vmatpush.bf16.msra.mxu3 %v5491_v24  ;;  %3938 = vmatpush.bf16.msrb.mxu1 %v6227_v26 }
 0x200   : > { %v7274_v23 = vld [vmem:[%s7695_s24 + $0xfec] sm:$0xf0]  ;;  %3907 = vmatmul.bf16.vlgmr.msra.gmra.mxu2 %v7811_v5 }
 0x201   : > { %v5938_v28 = vld [vmem:[%s7695_s24 + $0x990] sm:$0xf]  ;;  %v6739_v32 = vor.u32 %v7274_v23, %v6738_v20  ;;  %3951 = vmatpush.bf16.msrb.mxu2 %v6483_v27 }
 0x202   : > { %v7074_v29 = vld [vmem:[%s7695_s24 + $0x9ac] sm:$0xf0]  ;;  %3920 = vmatmul.bf16.vlgmr.msra.gmra.mxu3 %v7814_v7 }
 0x203   : > { %v6194_v31 = vld [vmem:[%s7695_s24 + $0xb90] sm:$0xf]  ;;  %v5939_v10 = vor.u32 %v7074_v29, %v5938_v28  ;;  %3964 = vmatpush.bf16.msrb.mxu3 %v6739_v32 }
 0x204   : > { %v7138_v33 = vld [vmem:[%s7695_s24 + $0xbac] sm:$0xf0] }
 0x205   : > { %v6450_v34 = vld [vmem:[%s7695_s24 + $0xd90] sm:$0xf]  ;;  %v6195_v15 = vor.u32 %v7138_v33, %v6194_v31  ;;  %3926 = vmatpush.bf16.msrb.mxu0 %v5939_v10  ;;  %v8424_v31 = vpop.f32.mrf.mxu3 }
 0x206   : > { %v7202_v36 = vld [vmem:[%s7695_s24 + $0xdac] sm:$0xf0] }
 0x207   : > { %v6706_v37 = vld [vmem:[%s7695_s24 + $0xf90] sm:$0xf]  ;;  %v6451_v40 = vor.u32 %v7202_v36, %v6450_v34  ;;  %3939 = vmatpush.bf16.msrb.mxu1 %v6195_v15  ;;  %v3676_v36 = vpop.f32.mrf.mxu0 }
 0x208   : > { %v7266_v38 = vld [vmem:[%s7695_s24 + $0xfac] sm:$0xf0] }
 0x209   : > { %v5906_v41 = vld [vmem:[%s7695_s24 + $0x950] sm:$0xf]  ;;  %v6707_v47 = vor.u32 %v7266_v38, %v6706_v37  ;;  %3952 = vmatpush.bf16.msrb.mxu2 %v6451_v40 }
 0x20a   : > { %v7066_v46 = vld [vmem:[%s7695_s24 + $0x96c] sm:$0xf0] }
 0x20b   : > { %v6162_v44 = vld [vmem:[%s7695_s24 + $0xb50] sm:$0xf]  ;;  %v5907_v30 = vor.u32 %v7066_v46, %v5906_v41  ;;  %3965 = vmatpush.bf16.msrb.mxu3 %v6707_v47  ;;  %v3689_v41 = vpop.f32.mrf.mxu1 }
 0x20c   : > { %v7130_v48 = vld [vmem:[%s7695_s24 + $0xb6c] sm:$0xf0]  ;;  %v5140_v41 = vld [vmem:[%s7695_s24 + $0x370] sm:$0xf0] }
 0x20d   : > { %v6418_v49 = vld [vmem:[%s7695_s24 + $0xd50] sm:$0xf]  ;;  %v6163_v54 = vor.u32 %v7130_v48, %v6162_v44  ;;  %3927 = vmatpush.bf16.msrb.mxu0 %v5907_v30 }
 0x20e   : > { %v7194_v50 = vld [vmem:[%s7695_s24 + $0xd6c] sm:$0xf0] }
 0x20f   : > { %v6674_v51 = vld [vmem:[%s7695_s24 + $0xf50] sm:$0xf]  ;;  %v6419_v55 = vor.u32 %v7194_v50, %v6418_v49  ;;  %3940 = vmatpush.bf16.msrb.mxu1 %v6163_v54 }
 0x210   : > { %v7258_v52 = vld [vmem:[%s7695_s24 + $0xf6c] sm:$0xf0] }
 0x211   : > { %v5874_v56 = vld [vmem:[%s7695_s24 + $0x910] sm:$0xf]  ;;  %v6675_v53 = vor.u32 %v7258_v52, %v6674_v51  ;;  %3953 = vmatpush.bf16.msrb.mxu2 %v6419_v55 }
 0x212   : > { %v7058_v57 = vld [vmem:[%s7695_s24 + $0x92c] sm:$0xf0] }
 0x213   : > { %v6130_v59 = vld [vmem:[%s7695_s24 + $0xb10] sm:$0xf]  ;;  %v5875_v1 = vor.u32 %v7058_v57, %v5874_v56  ;;  %3966 = vmatpush.bf16.msrb.mxu3 %v6675_v53  ;;  %v3702_v53 = vpop.f32.mrf.mxu2 }
 0x214   : > { %v7122_v60 = vld [vmem:[%s7695_s24 + $0xb2c] sm:$0xf0]  ;;  %v6990_v53 = vld [vmem:[%s7695_s24 + $0x714] sm:$0xf] }
 0x215   : > { %v6386_v61 = vld [vmem:[%s7695_s24 + $0xd10] sm:$0xf]  ;;  %v6131_v35 = vor.u32 %v7122_v60, %v6130_v59  ;;  %3928 = vmatpush.bf16.msrb.mxu0 %v5875_v1  ;;  %v6822_v1 = vld [vmem:[%s7695_s24 + $0x1d4] sm:$0xf] }
 0x216   : > { %v7186_v62 = vld [vmem:[%s7695_s24 + $0xd2c] sm:$0xf0] }
 0x217   : > { %v6642_v63 = vld [vmem:[%s7695_s24 + $0xf10] sm:$0xf]  ;;  %v6387_v3 = vor.u32 %v7186_v62, %v6386_v61  ;;  %3941 = vmatpush.bf16.msrb.mxu1 %v6131_v35  ;;  %v4948_v35 = vld [vmem:[%s7695_s24 + $0x1f0] sm:$0xf0] }
 0x218   : > { %v7250_v0 = vld [vmem:[%s7695_s24 + $0xf2c] sm:$0xf0] }
 0x219   : > { %v5842_v4 = vld [vmem:[%s7695_s24 + $0x8d0] sm:$0xf]  ;;  %v6643_v58 = vor.u32 %v7250_v0, %v6642_v63  ;;  %3954 = vmatpush.bf16.msrb.mxu2 %v6387_v3  ;;  %v3715_v0 = vpop.f32.mrf.mxu3  ;;  %v6886_v3 = vld [vmem:[%s7695_s24 + $0x3d4] sm:$0xf] }
 0x21a   : > { %v7050_v6 = vld [vmem:[%s7695_s24 + $0x8ec] sm:$0xf0]  ;;  %v6790_v0 = vld [vmem:[%s7695_s24 + $0xd4] sm:$0xf] }
 0x21b   : > { %v6098_v8 = vld [vmem:[%s7695_s24 + $0xad0] sm:$0xf]  ;;  %v5843_v17 = vor.u32 %v7050_v6, %v5842_v4  ;;  %3967 = vmatpush.bf16.msrb.mxu3 %v6643_v58  ;;  %v5204_v6 = vld [vmem:[%s7695_s24 + $0x3f0] sm:$0xf0] }
 0x21c   : > { %v7114_v11 = vld [vmem:[%s7695_s24 + $0xaec] sm:$0xf0]  ;;  %v5460_v58 = vld [vmem:[%s7695_s24 + $0x5f0] sm:$0xf0] }
 0x21d   : > { %v6354_v12 = vld [vmem:[%s7695_s24 + $0xcd0] sm:$0xf]  ;;  %v6099_v18 = vor.u32 %v7114_v11, %v6098_v8  ;;  %3929 = vmatpush.bf16.msrb.mxu0 %v5843_v17  ;;  %v6950_v8 = vld [vmem:[%s7695_s24 + $0x5d4] sm:$0xf]  ;;  %v4951_v17 = vor.u32 %v6822_v1, %v4948_v35 }
 0x21e   : > { %v7178_v13 = vld [vmem:[%s7695_s24 + $0xcec] sm:$0xf0]  ;;  %v4820_v1 = vld [vmem:[%s7695_s24 + $0xf0] sm:$0xf0] }
 0x21f   : > { %v6610_v14 = vld [vmem:[%s7695_s24 + $0xed0] sm:$0xf]  ;;  %v6355_v19 = vor.u32 %v7178_v13, %v6354_v12  ;;  %3942 = vmatpush.bf16.msrb.mxu1 %v6099_v18  ;;  %v7014_v13 = vld [vmem:[%s7695_s24 + $0x7d4] sm:$0xf]  ;;  %v5207_v18 = vor.u32 %v6886_v3, %v5204_v6 }
 0x220   : > { %v7242_v16 = vld [vmem:[%s7695_s24 + $0xeec] sm:$0xf0]  ;;  %v6854_v35 = vld [vmem:[%s7695_s24 + $0x2d4] sm:$0xf] }
 0x221   : > { %v5810_v20 = vld [vmem:[%s7695_s24 + $0x890] sm:$0xf]  ;;  %v6611_v26 = vor.u32 %v7242_v16, %v6610_v14  ;;  %3955 = vmatpush.bf16.msrb.mxu2 %v6355_v19  ;;  %v5716_v14 = vld [vmem:[%s7695_s24 + $0x7f0] sm:$0xf0]  ;;  %v5463_v19 = vor.u32 %v6950_v8, %v5460_v58 }
 0x222   : > { %v7042_v23 = vld [vmem:[%s7695_s24 + $0x8ac] sm:$0xf0]  ;;  %v5076_v8 = vld [vmem:[%s7695_s24 + $0x2f0] sm:$0xf0] }
 0x223   : > { %v6066_v24 = vld [vmem:[%s7695_s24 + $0xa90] sm:$0xf]  ;;  %v5811_v34 = vor.u32 %v7042_v23, %v5810_v20  ;;  %3968 = vmatpush.bf16.msrb.mxu3 %v6611_v26  ;;  %v3688_v20 = vadd.f32 %v8409_v9, %v8404_v2  ;;  %v6814_v23 = vld [vmem:[%s7695_s24 + $0x194] sm:$0xf] }
 0x224   : > { %v7106_v27 = vld [vmem:[%s7695_s24 + $0xaac] sm:$0xf0]  ;;  %v6878_v26 = vld [vmem:[%s7695_s24 + $0x394] sm:$0xf] }
 0x225   : > { %v6322_v28 = vld [vmem:[%s7695_s24 + $0xc90] sm:$0xf]  ;;  %v6067_v37 = vor.u32 %v7106_v27, %v6066_v24  ;;  %3930 = vmatpush.bf16.msrb.mxu0 %v5811_v34  ;;  %v4916_v24 = vld [vmem:[%s7695_s24 + $0x1b0] sm:$0xf0]  ;;  %v5719_v27 = vor.u32 %v7014_v13, %v5716_v14 }
 0x226   : > { %v7170_v29 = vld [vmem:[%s7695_s24 + $0xcac] sm:$0xf0]  ;;  %v5684_v34 = vld [vmem:[%s7695_s24 + $0x7b0] sm:$0xf0]  ;;  %v4919_v2 = vor.u32 %v6814_v23, %v4916_v24  ;;  %v3752_v24 = vpop.f32.mrf.mxu2 }
 0x227   : > { %v6578_v32 = vld [vmem:[%s7695_s24 + $0xe90] sm:$0xf]  ;;  %v6323_v38 = vor.u32 %v7170_v29, %v6322_v28  ;;  %3943 = vmatpush.bf16.msrb.mxu1 %v6067_v37  ;;  %v5172_v28 = vld [vmem:[%s7695_s24 + $0x3b0] sm:$0xf0]  ;;  %v3701_v37 = vadd.f32 %v8419_v25, %v3688_v20 }
 0x228   : > { %v7234_v33 = vld [vmem:[%s7695_s24 + $0xeac] sm:$0xf0]  ;;  %v6942_v29 = vld [vmem:[%s7695_s24 + $0x594] sm:$0xf]  ;;  %v5175_v9 = vor.u32 %v6878_v26, %v5172_v28 }
 0x229   : > { %v5778_v10 = vld [vmem:[%s7695_s24 + $0x850] sm:$0xf]  ;;  %v6579_v46 = vor.u32 %v7234_v33, %v6578_v32  ;;  %3956 = vmatpush.bf16.msrb.mxu2 %v6323_v38  ;;  %v5428_v32 = vld [vmem:[%s7695_s24 + $0x5b0] sm:$0xf0] }
 0x22a   : > { %v7034_v15 = vld [vmem:[%s7695_s24 + $0x86c] sm:$0xf0]  ;;  %v7006_v33 = vld [vmem:[%s7695_s24 + $0x794] sm:$0xf]  ;;  %v5431_v36 = vor.u32 %v6942_v29, %v5428_v32 }
 0x22b   : > { %v6034_v40 = vld [vmem:[%s7695_s24 + $0xa50] sm:$0xf]  ;;  %v5779_v51 = vor.u32 %v7034_v15, %v5778_v10  ;;  %3969 = vmatpush.bf16.msrb.mxu3 %v6579_v46  ;;  %v6806_v38 = vld [vmem:[%s7695_s24 + $0x154] sm:$0xf] }
 0x22c   : > { %v7098_v44 = vld [vmem:[%s7695_s24 + $0xa6c] sm:$0xf0]  ;;  %v4884_v10 = vld [vmem:[%s7695_s24 + $0x170] sm:$0xf0] }
 0x22d   : > { %v6290_v47 = vld [vmem:[%s7695_s24 + $0xc50] sm:$0xf]  ;;  %v6035_v54 = vor.u32 %v7098_v44, %v6034_v40  ;;  %3931 = vmatpush.bf16.msrb.mxu0 %v5779_v51  ;;  %v6870_v15 = vld [vmem:[%s7695_s24 + $0x354] sm:$0xf]  ;;  %v5687_v40 = vor.u32 %v7006_v33, %v5684_v34  ;;  %v3765_v33 = vpop.f32.mrf.mxu3 }
 0x22e   : > { %v7162_v48 = vld [vmem:[%s7695_s24 + $0xc6c] sm:$0xf0]  ;;  %v6934_v46 = vld [vmem:[%s7695_s24 + $0x554] sm:$0xf] }
 0x22f   : > { %v6546_v49 = vld [vmem:[%s7695_s24 + $0xe50] sm:$0xf]  ;;  %v6291_v55 = vor.u32 %v7162_v48, %v6290_v47  ;;  %3944 = vmatpush.bf16.msrb.mxu1 %v6035_v54  ;;  %v5396_v44 = vld [vmem:[%s7695_s24 + $0x570] sm:$0xf0]  ;;  %v4887_v48 = vor.u32 %v6806_v38, %v4884_v10 }
 0x230   : > { %v7226_v50 = vld [vmem:[%s7695_s24 + $0xe6c] sm:$0xf0]  ;;  %v6998_v47 = vld [vmem:[%s7695_s24 + $0x754] sm:$0xf]  ;;  %v5399_v51 = vor.u32 %v6934_v46, %v5396_v44 }
 0x231   : > { %v5746_v52 = vld [vmem:[%s7695_s24 + $0x810] sm:$0xf]  ;;  %v6547_v60 = vor.u32 %v7226_v50, %v6546_v49  ;;  %3957 = vmatpush.bf16.msrb.mxu2 %v6291_v55  ;;  %v5652_v25 = vld [vmem:[%s7695_s24 + $0x770] sm:$0xf0]  ;;  %v3714_v49 = vadd.f32 %v8424_v31, %v3701_v37  ;;  %v5143_v50 = vor.u32 %v6870_v15, %v5140_v41 }
 0x232   : > { %v7026_v30 = vld [vmem:[%s7695_s24 + $0x82c] sm:$0xf0]  ;;  %v6862_v54 = vld [vmem:[%s7695_s24 + $0x314] sm:$0xf]  ;;  %v5655_v55 = vor.u32 %v6998_v47, %v5652_v25 }
 0x233   : > { %v6002_v56 = vld [vmem:[%s7695_s24 + $0xa10] sm:$0xf]  ;;  %v5747_v4 = vor.u32 %v7026_v30, %v5746_v52  ;;  %3970 = vmatpush.bf16.msrb.mxu3 %v6547_v60  ;;  %v6798_v52 = vld [vmem:[%s7695_s24 + $0x114] sm:$0xf] }
 0x234   : > { %v7090_v57 = vld [vmem:[%s7695_s24 + $0xa2c] sm:$0xf0]  ;;  %v4852_v30 = vld [vmem:[%s7695_s24 + $0x130] sm:$0xf0] }
 0x235   : > { %v6258_v59 = vld [vmem:[%s7695_s24 + $0xc10] sm:$0xf]  ;;  %v6003_v11 = vor.u32 %v7090_v57, %v6002_v56  ;;  %3932 = vmatpush.bf16.msrb.mxu0 %v5747_v4  ;;  %v5108_v56 = vld [vmem:[%s7695_s24 + $0x330] sm:$0xf0]  ;;  %v4855_v31 = vor.u32 %v6798_v52, %v4852_v30  ;;  %v3739_v4 = vpop.f32.mrf.mxu1 }
 0x236   : > { %v7154_v61 = vld [vmem:[%s7695_s24 + $0xc2c] sm:$0xf0]  ;;  %v6926_v57 = vld [vmem:[%s7695_s24 + $0x514] sm:$0xf] }
 0x237   : > { %v6514_v62 = vld [vmem:[%s7695_s24 + $0xe10] sm:$0xf]  ;;  %v6259_v12 = vor.u32 %v7154_v61, %v6258_v59  ;;  %3945 = vmatpush.bf16.msrb.mxu1 %v6003_v11  ;;  %v5364_v59 = vld [vmem:[%s7695_s24 + $0x530] sm:$0xf0]  ;;  %v3726_v61 = vpop.f32.mrf.mxu0 }
 0x238   : > { %v7218_v63 = vld [vmem:[%s7695_s24 + $0xe2c] sm:$0xf0]  ;;  %3933 = vmatmul.bf16.vlgmr.msrb.gmra.mxu0 %v7884_v42  ;;  %v5620_v60 = vld [vmem:[%s7695_s24 + $0x730] sm:$0xf0]  ;;  %v3727_v3 = vadd.f32 %v3726_v61, %v3714_v49 }
 0x239   : > { %v6515_v16 = vor.u32 %v7218_v63, %v6514_v62  ;;  %3958 = vmatpush.bf16.msrb.mxu2 %v6259_v12  ;;  %3977 = vmatpush.bf16.msra.mxu0 %v4951_v17  ;;  %v5111_v62 = vor.u32 %v6862_v54, %v5108_v56  ;;  %v5367_v63 = vor.u32 %v6926_v57, %v5364_v59  ;;  %v6918_v58 = vld [vmem:[%s7695_s24 + $0x4d4] sm:$0xf] }
 0x23a   : > { %3946 = vmatmul.bf16.vlgmr.msrb.gmra.mxu1 %v7888_v45  ;;  %v5623_v6 = vor.u32 %v6990_v53, %v5620_v60  ;;  %v5332_v11 = vld [vmem:[%s7695_s24 + $0x4f0] sm:$0xf0]  ;;  %v3740_v14 = vadd.f32 %v3739_v4, %v3727_v3  ;;  %v5079_v17 = vor.u32 %v6854_v35, %v5076_v8 }
 0x23b   : > { %3971 = vmatpush.bf16.msrb.mxu3 %v6515_v16  ;;  %3990 = vmatpush.bf16.msra.mxu1 %v5207_v18  ;;  %v6982_v12 = vld [vmem:[%s7695_s24 + $0x6d4] sm:$0xf]  ;;  %v4823_v16 = vor.u32 %v6790_v0, %v4820_v1  ;;  %v5335_v18 = vor.u32 %v6918_v58, %v5332_v11  ;;  %v3767_v1 = vpop.f32.mrf.mxu3 }
 0x23c   : > { %3959 = vmatmul.bf16.vlgmr.msrb.gmra.mxu2 %v7880_v39  ;;  %v5588_v13 = vld [vmem:[%s7695_s24 + $0x6f0] sm:$0xf0]  ;;  %v3753_v32 = vadd.f32 %v3752_v24, %v3740_v14 }
 0x23d   : > { %4003 = vmatpush.bf16.msra.mxu2 %v5463_v19  ;;  %3978 = vmatpush.bf16.msra.mxu0 %v4919_v2  ;;  %v6782_v19 = vld [vmem:[%s7695_s24 + $0x94] sm:$0xf]  ;;  %v5591_v26 = vor.u32 %v6982_v12, %v5588_v13  ;;  %v3741_v44 = vpop.f32.mrf.mxu1 }
 0x23e   : > { %3972 = vmatmul.bf16.vlgmr.msrb.gmra.mxu3 %v7886_v43  ;;  %v4788_v20 = vld [vmem:[%s7695_s24 + $0xb0] sm:$0xf0]  ;;  %v3766_v37 = vadd.f32 %v3765_v33, %v3753_v32 }
 0x23f   : > { %4016 = vmatpush.bf16.msra.mxu3 %v5719_v27  ;;  %3991 = vmatpush.bf16.msra.mxu1 %v5175_v9  ;;  %v6846_v23 = vld [vmem:[%s7695_s24 + $0x294] sm:$0xf]  ;;  %v347_v9 = vld [vmem:[#allocation2 + $0x18] sm:$0xff]  ;;  %v3728_v38 = vpop.f32.mrf.mxu0 }
 0x240   : > { %v5044_v27 = vld [vmem:[%s7695_s24 + $0x2b0] sm:$0xf0]  ;;  %v4291_v25 = vadd.f32 %v3766_v37, %v347_v9 }
 0x241   : > { %4004 = vmatpush.bf16.msra.mxu2 %v5431_v36  ;;  %3979 = vmatpush.bf16.msra.mxu0 %v4887_v48  ;;  %v6910_v28 = vld [vmem:[%s7695_s24 + $0x494] sm:$0xf]  ;;  %v4791_v36 = vor.u32 %v6782_v19, %v4788_v20  ;;  %v5047_v10 = vor.u32 %v6846_v23, %v5044_v27 }
 0x242   : > { %v5300_v29 = vld [vmem:[%s7695_s24 + $0x4b0] sm:$0xf0]  ;;  %4299 = vst [vmem:[#allocation2 + $0x18] sm:$0xff] %v4291_v25 }
 0x243   : > { %4017 = vmatpush.bf16.msra.mxu3 %v5687_v40  ;;  %3992 = vmatpush.bf16.msra.mxu1 %v5143_v50  ;;  %v6974_v34 = vld [vmem:[%s7695_s24 + $0x694] sm:$0xf]  ;;  %v5303_v15 = vor.u32 %v6910_v28, %v5300_v29 }
 0x244   : > { %v5556_v2 = vld [vmem:[%s7695_s24 + $0x6b0] sm:$0xf0] }
 0x245   : > { %4005 = vmatpush.bf16.msra.mxu2 %v5399_v51  ;;  %3980 = vmatpush.bf16.msra.mxu0 %v4855_v31  ;;  %v6774_v40 = vld [vmem:[%s7695_s24 + $0x54] sm:$0xf]  ;;  %v5559_v47 = vor.u32 %v6974_v34, %v5556_v2  ;;  %v3754_v31 = vpop.f32.mrf.mxu2  ;;  %v8557_v1 = vpop.f32.mrf.mxu1 }
 0x246   : > { %v4756_v41 = vld [vmem:[%s7695_s24 + $0x70] sm:$0xf0] }
 0x247   : > { %4018 = vmatpush.bf16.msra.mxu3 %v5655_v55  ;;  %3993 = vmatpush.bf16.msra.mxu1 %v5111_v62  ;;  %v6838_v46 = vld [vmem:[%s7695_s24 + $0x254] sm:$0xf]  ;;  %v4759_v30 = vor.u32 %v6774_v40, %v4756_v41 }
 0x248   : > { %v5012_v48 = vld [vmem:[%s7695_s24 + $0x270] sm:$0xf0] }
 0x249   : > { %4006 = vmatpush.bf16.msra.mxu2 %v5367_v63  ;;  %3981 = vmatpush.bf16.msra.mxu0 %v4823_v16  ;;  %v6902_v49 = vld [vmem:[%s7695_s24 + $0x454] sm:$0xf]  ;;  %v5015_v56 = vor.u32 %v6838_v46, %v5012_v48 }
 0x24a   : > { %v5268_v50 = vld [vmem:[%s7695_s24 + $0x470] sm:$0xf0] }
 0x24b   : > { %4019 = vmatpush.bf16.msra.mxu3 %v5623_v6  ;;  %3994 = vmatpush.bf16.msra.mxu1 %v5079_v17  ;;  %v6966_v51 = vld [vmem:[%s7695_s24 + $0x654] sm:$0xf]  ;;  %v5271_v57 = vor.u32 %v6902_v49, %v5268_v50 }
 0x24c   : > { %v5524_v52 = vld [vmem:[%s7695_s24 + $0x670] sm:$0xf0] }
 0x24d   : > { %4007 = vmatpush.bf16.msra.mxu2 %v5335_v18  ;;  %3982 = vmatpush.bf16.msra.mxu0 %v4791_v36  ;;  %v6766_v54 = vld [vmem:[%s7695_s24 + $0x14] sm:$0xf]  ;;  %v5527_v61 = vor.u32 %v6966_v51, %v5524_v52 }
 0x24e   : > { %v4724_v55 = vld [vmem:[%s7695_s24 + $0x30] sm:$0xf0] }
 0x24f   : > { %4020 = vmatpush.bf16.msra.mxu3 %v5591_v26  ;;  %3995 = vmatpush.bf16.msra.mxu1 %v5047_v10  ;;  %v6830_v59 = vld [vmem:[%s7695_s24 + $0x214] sm:$0xf]  ;;  %v4727_v6 = vor.u32 %v6766_v54, %v4724_v55 }
 0x250   : > { %v4980_v53 = vld [vmem:[%s7695_s24 + $0x230] sm:$0xf0] }
 0x251   : > { %4008 = vmatpush.bf16.msra.mxu2 %v5303_v15  ;;  %v6894_v60 = vld [vmem:[%s7695_s24 + $0x414] sm:$0xf]  ;;  %3983 = vmatpush.bf16.msra.mxu0 %v4759_v30  ;;  %v4983_v12 = vor.u32 %v6830_v59, %v4980_v53 }
 0x252   : > { %v5236_v62 = vld [vmem:[%s7695_s24 + $0x430] sm:$0xf0] }
 0x253   : > { %4021 = vmatpush.bf16.msra.mxu3 %v5559_v47  ;;  %v6958_v63 = vld [vmem:[%s7695_s24 + $0x614] sm:$0xf]  ;;  %3996 = vmatpush.bf16.msra.mxu1 %v5015_v56  ;;  %v5239_v13 = vor.u32 %v6894_v60, %v5236_v62  ;;  %v8552_v60 = vpop.f32.mrf.mxu0 }
 0x254   : > { %v5492_v0 = vld [vmem:[%s7695_s24 + $0x630] sm:$0xf0] }
 0x255   : > { %v7078_v35 = vld [vmem:[%s7695_s24 + $0x9d4] sm:$0xf]  ;;  %4009 = vmatpush.bf16.msra.mxu2 %v5271_v57  ;;  %v5495_v17 = vor.u32 %v6958_v63, %v5492_v0  ;;  %3984 = vmatpush.bf16.msra.mxu0 %v4727_v6 }
 0x256   : > { %v5972_v3 = vld [vmem:[%s7695_s24 + $0x9f0] sm:$0xf0] }
 0x257   : > { %v7142_v4 = vld [vmem:[%s7695_s24 + $0xbd4] sm:$0xf]  ;;  %4022 = vmatpush.bf16.msra.mxu3 %v5527_v61  ;;  %v5975_v18 = vor.u32 %v7078_v35, %v5972_v3  ;;  %3997 = vmatpush.bf16.msra.mxu1 %v4983_v12 }
 0x258   : > { %v6228_v8 = vld [vmem:[%s7695_s24 + $0xbf0] sm:$0xf0]  ;;  %3985 = vmatmul.bf16.vlgmr.msra.gmra.mxu0 %v7825_v21 }
 0x259   : > { %v7206_v58 = vld [vmem:[%s7695_s24 + $0xdd4] sm:$0xf]  ;;  %v6231_v19 = vor.u32 %v7142_v4, %v6228_v8  ;;  %4010 = vmatpush.bf16.msra.mxu2 %v5239_v13  ;;  %4029 = vmatpush.bf16.msrb.mxu0 %v5975_v18  ;;  %v8567_v18 = vpop.f32.mrf.mxu2 }
 0x25a   : > { %v6484_v11 = vld [vmem:[%s7695_s24 + $0xdf0] sm:$0xf0]  ;;  %3998 = vmatmul.bf16.vlgmr.msra.gmra.mxu1 %v7828_v22 }
 0x25b   : > { %v7270_v14 = vld [vmem:[%s7695_s24 + $0xfd4] sm:$0xf]  ;;  %v6487_v20 = vor.u32 %v7206_v58, %v6484_v11  ;;  %4023 = vmatpush.bf16.msra.mxu3 %v5495_v17  ;;  %4042 = vmatpush.bf16.msrb.mxu1 %v6231_v19 }
 0x25c   : > { %v6740_v16 = vld [vmem:[%s7695_s24 + $0xff0] sm:$0xf0]  ;;  %4011 = vmatmul.bf16.vlgmr.msra.gmra.mxu2 %v7811_v5 }
 0x25d   : > { %v7070_v23 = vld [vmem:[%s7695_s24 + $0x994] sm:$0xf]  ;;  %v6743_v27 = vor.u32 %v7270_v14, %v6740_v16  ;;  %4055 = vmatpush.bf16.msrb.mxu2 %v6487_v20 }
 0x25e   : > { %v5940_v24 = vld [vmem:[%s7695_s24 + $0x9b0] sm:$0xf0]  ;;  %4024 = vmatmul.bf16.vlgmr.msra.gmra.mxu3 %v7814_v7 }
 0x25f   : > { %v7134_v26 = vld [vmem:[%s7695_s24 + $0xb94] sm:$0xf]  ;;  %v5943_v2 = vor.u32 %v7070_v23, %v5940_v24  ;;  %4068 = vmatpush.bf16.msrb.mxu3 %v6743_v27 }
 0x260   : > { %v6196_v28 = vld [vmem:[%s7695_s24 + $0xbb0] sm:$0xf0] }
 0x261   : > { %v7198_v29 = vld [vmem:[%s7695_s24 + $0xd94] sm:$0xf]  ;;  %v6199_v9 = vor.u32 %v7134_v26, %v6196_v28  ;;  %4030 = vmatpush.bf16.msrb.mxu0 %v5943_v2  ;;  %v8572_v26 = vpop.f32.mrf.mxu3 }
 0x262   : > { %v6452_v32 = vld [vmem:[%s7695_s24 + $0xdb0] sm:$0xf0] }
 0x263   : > { %v7262_v33 = vld [vmem:[%s7695_s24 + $0xf94] sm:$0xf]  ;;  %v6455_v36 = vor.u32 %v7198_v29, %v6452_v32  ;;  %4043 = vmatpush.bf16.msrb.mxu1 %v6199_v9  ;;  %v3780_v32 = vpop.f32.mrf.mxu0 }
 0x264   : > { %v6708_v34 = vld [vmem:[%s7695_s24 + $0xfb0] sm:$0xf0] }
 0x265   : > { %v7062_v37 = vld [vmem:[%s7695_s24 + $0x954] sm:$0xf]  ;;  %v6711_v15 = vor.u32 %v7262_v33, %v6708_v34  ;;  %4056 = vmatpush.bf16.msrb.mxu2 %v6455_v36 }
 0x266   : > { %v5908_v38 = vld [vmem:[%s7695_s24 + $0x970] sm:$0xf0] }
 0x267   : > { %v7126_v10 = vld [vmem:[%s7695_s24 + $0xb54] sm:$0xf]  ;;  %v5911_v25 = vor.u32 %v7062_v37, %v5908_v38  ;;  %4069 = vmatpush.bf16.msrb.mxu3 %v6711_v15  ;;  %v3793_v37 = vpop.f32.mrf.mxu1 }
 0x268   : > { %v6164_v40 = vld [vmem:[%s7695_s24 + $0xb70] sm:$0xf0]  ;;  %v6875_v37 = vld [vmem:[%s7695_s24 + $0x374] sm:$0xf0] }
 0x269   : > { %v7190_v41 = vld [vmem:[%s7695_s24 + $0xd54] sm:$0xf]  ;;  %v6167_v48 = vor.u32 %v7126_v10, %v6164_v40  ;;  %4031 = vmatpush.bf16.msrb.mxu0 %v5911_v25 }
 0x26a   : > { %v6420_v46 = vld [vmem:[%s7695_s24 + $0xd70] sm:$0xf0] }
 0x26b   : > { %v7254_v44 = vld [vmem:[%s7695_s24 + $0xf54] sm:$0xf]  ;;  %v6423_v49 = vor.u32 %v7190_v41, %v6420_v46  ;;  %4044 = vmatpush.bf16.msrb.mxu1 %v6167_v48 }
 0x26c   : > { %v6676_v47 = vld [vmem:[%s7695_s24 + $0xf70] sm:$0xf0] }
 0x26d   : > { %v7054_v50 = vld [vmem:[%s7695_s24 + $0x914] sm:$0xf]  ;;  %v6679_v30 = vor.u32 %v7254_v44, %v6676_v47  ;;  %4057 = vmatpush.bf16.msrb.mxu2 %v6423_v49 }
 0x26e   : > { %v5876_v51 = vld [vmem:[%s7695_s24 + $0x930] sm:$0xf0] }
 0x26f   : > { %v7118_v52 = vld [vmem:[%s7695_s24 + $0xb14] sm:$0xf]  ;;  %v5879_v53 = vor.u32 %v7054_v50, %v5876_v51  ;;  %4070 = vmatpush.bf16.msrb.mxu3 %v6679_v30  ;;  %v3806_v30 = vpop.f32.mrf.mxu2 }
 0x270   : > { %v6132_v54 = vld [vmem:[%s7695_s24 + $0xb30] sm:$0xf0]  ;;  %v5626_v30 = vld [vmem:[%s7695_s24 + $0x718] sm:$0xf] }
 0x271   : > { %v7182_v55 = vld [vmem:[%s7695_s24 + $0xd14] sm:$0xf]  ;;  %v6135_v31 = vor.u32 %v7118_v52, %v6132_v54  ;;  %4032 = vmatpush.bf16.msrb.mxu0 %v5879_v53  ;;  %v4954_v53 = vld [vmem:[%s7695_s24 + $0x1d8] sm:$0xf] }
 0x272   : > { %v6388_v56 = vld [vmem:[%s7695_s24 + $0xd30] sm:$0xf0] }
 0x273   : > { %v7246_v57 = vld [vmem:[%s7695_s24 + $0xf14] sm:$0xf]  ;;  %v6391_v61 = vor.u32 %v7182_v55, %v6388_v56  ;;  %4045 = vmatpush.bf16.msrb.mxu1 %v6135_v31  ;;  %v6827_v31 = vld [vmem:[%s7695_s24 + $0x1f4] sm:$0xf0] }
 0x274   : > { %v6644_v59 = vld [vmem:[%s7695_s24 + $0xf30] sm:$0xf0] }
 0x275   : > { %v7046_v62 = vld [vmem:[%s7695_s24 + $0x8d4] sm:$0xf]  ;;  %v6647_v35 = vor.u32 %v7246_v57, %v6644_v59  ;;  %4058 = vmatpush.bf16.msrb.mxu2 %v6391_v61  ;;  %v3819_v59 = vpop.f32.mrf.mxu3  ;;  %v5210_v61 = vld [vmem:[%s7695_s24 + $0x3d8] sm:$0xf] }
 0x276   : > { %v5844_v63 = vld [vmem:[%s7695_s24 + $0x8f0] sm:$0xf0]  ;;  %v4826_v59 = vld [vmem:[%s7695_s24 + $0xd8] sm:$0xf] }
 0x277   : > { %v7110_v0 = vld [vmem:[%s7695_s24 + $0xad4] sm:$0xf]  ;;  %v5847_v11 = vor.u32 %v7046_v62, %v5844_v63  ;;  %4071 = vmatpush.bf16.msrb.mxu3 %v6647_v35  ;;  %v6891_v63 = vld [vmem:[%s7695_s24 + $0x3f4] sm:$0xf0] }
 0x278   : > { %v6100_v3 = vld [vmem:[%s7695_s24 + $0xaf0] sm:$0xf0]  ;;  %v6955_v35 = vld [vmem:[%s7695_s24 + $0x5f4] sm:$0xf0] }
 0x279   : > { %v7174_v4 = vld [vmem:[%s7695_s24 + $0xcd4] sm:$0xf]  ;;  %v6103_v12 = vor.u32 %v7110_v0, %v6100_v3  ;;  %4033 = vmatpush.bf16.msrb.mxu0 %v5847_v11  ;;  %v5466_v0 = vld [vmem:[%s7695_s24 + $0x5d8] sm:$0xf]  ;;  %v4955_v11 = vor.u32 %v6827_v31, %v4954_v53 }
 0x27a   : > { %v6356_v6 = vld [vmem:[%s7695_s24 + $0xcf0] sm:$0xf0]  ;;  %v6795_v53 = vld [vmem:[%s7695_s24 + $0xf4] sm:$0xf0] }
 0x27b   : > { %v7238_v8 = vld [vmem:[%s7695_s24 + $0xed4] sm:$0xf]  ;;  %v6359_v13 = vor.u32 %v7174_v4, %v6356_v6  ;;  %4046 = vmatpush.bf16.msrb.mxu1 %v6103_v12  ;;  %v5722_v6 = vld [vmem:[%s7695_s24 + $0x7d8] sm:$0xf]  ;;  %v5211_v12 = vor.u32 %v6891_v63, %v5210_v61 }
 0x27c   : > { %v6612_v58 = vld [vmem:[%s7695_s24 + $0xef0] sm:$0xf0]  ;;  %v5082_v31 = vld [vmem:[%s7695_s24 + $0x2d8] sm:$0xf] }
 0x27d   : > { %v7038_v14 = vld [vmem:[%s7695_s24 + $0x894] sm:$0xf]  ;;  %v6615_v19 = vor.u32 %v7238_v8, %v6612_v58  ;;  %4059 = vmatpush.bf16.msrb.mxu2 %v6359_v13  ;;  %v7019_v8 = vld [vmem:[%s7695_s24 + $0x7f4] sm:$0xf0]  ;;  %v5467_v13 = vor.u32 %v6955_v35, %v5466_v0 }
 0x27e   : > { %v5812_v16 = vld [vmem:[%s7695_s24 + $0x8b0] sm:$0xf0]  ;;  %v6859_v0 = vld [vmem:[%s7695_s24 + $0x2f4] sm:$0xf0] }
 0x27f   : > { %v7102_v17 = vld [vmem:[%s7695_s24 + $0xa94] sm:$0xf]  ;;  %v5815_v29 = vor.u32 %v7038_v14, %v5812_v16  ;;  %4072 = vmatpush.bf16.msrb.mxu3 %v6615_v19  ;;  %v3792_v14 = vadd.f32 %v8557_v1, %v8552_v60  ;;  %v4922_v16 = vld [vmem:[%s7695_s24 + $0x198] sm:$0xf] }
 0x280   : > { %v6068_v20 = vld [vmem:[%s7695_s24 + $0xab0] sm:$0xf0]  ;;  %v5178_v19 = vld [vmem:[%s7695_s24 + $0x398] sm:$0xf] }
 0x281   : > { %v7166_v23 = vld [vmem:[%s7695_s24 + $0xc94] sm:$0xf]  ;;  %v6071_v33 = vor.u32 %v7102_v17, %v6068_v20  ;;  %4034 = vmatpush.bf16.msrb.mxu0 %v5815_v29  ;;  %v6819_v17 = vld [vmem:[%s7695_s24 + $0x1b4] sm:$0xf0]  ;;  %v5723_v20 = vor.u32 %v7019_v8, %v5722_v6 }
 0x282   : > { %v6324_v24 = vld [vmem:[%s7695_s24 + $0xcb0] sm:$0xf0]  ;;  %v7011_v29 = vld [vmem:[%s7695_s24 + $0x7b4] sm:$0xf0]  ;;  %v4923_v60 = vor.u32 %v6819_v17, %v4922_v16  ;;  %v3856_v17 = vpop.f32.mrf.mxu2 }
 0x283   : > { %v7230_v27 = vld [vmem:[%s7695_s24 + $0xe94] sm:$0xf]  ;;  %v6327_v34 = vor.u32 %v7166_v23, %v6324_v24  ;;  %4047 = vmatpush.bf16.msrb.mxu1 %v6071_v33  ;;  %v6883_v23 = vld [vmem:[%s7695_s24 + $0x3b4] sm:$0xf0]  ;;  %v3805_v33 = vadd.f32 %v8567_v18, %v3792_v14 }
 0x284   : > { %v6580_v28 = vld [vmem:[%s7695_s24 + $0xeb0] sm:$0xf0]  ;;  %v5434_v24 = vld [vmem:[%s7695_s24 + $0x598] sm:$0xf]  ;;  %v5179_v1 = vor.u32 %v6883_v23, %v5178_v19 }
 0x285   : > { %v7030_v2 = vld [vmem:[%s7695_s24 + $0x854] sm:$0xf]  ;;  %v6583_v38 = vor.u32 %v7230_v27, %v6580_v28  ;;  %4060 = vmatpush.bf16.msrb.mxu2 %v6327_v34  ;;  %v6947_v27 = vld [vmem:[%s7695_s24 + $0x5b4] sm:$0xf0] }
 0x286   : > { %v5780_v9 = vld [vmem:[%s7695_s24 + $0x870] sm:$0xf0]  ;;  %v5690_v28 = vld [vmem:[%s7695_s24 + $0x798] sm:$0xf]  ;;  %v5435_v32 = vor.u32 %v6947_v27, %v5434_v24 }
 0x287   : > { %v7094_v36 = vld [vmem:[%s7695_s24 + $0xa54] sm:$0xf]  ;;  %v5783_v44 = vor.u32 %v7030_v2, %v5780_v9  ;;  %4073 = vmatpush.bf16.msrb.mxu3 %v6583_v38  ;;  %v4890_v34 = vld [vmem:[%s7695_s24 + $0x158] sm:$0xf] }
 0x288   : > { %v6036_v10 = vld [vmem:[%s7695_s24 + $0xa70] sm:$0xf0]  ;;  %v6811_v2 = vld [vmem:[%s7695_s24 + $0x174] sm:$0xf0] }
 0x289   : > { %v7158_v15 = vld [vmem:[%s7695_s24 + $0xc54] sm:$0xf]  ;;  %v6039_v48 = vor.u32 %v7094_v36, %v6036_v10  ;;  %4035 = vmatpush.bf16.msrb.mxu0 %v5783_v44  ;;  %v5146_v9 = vld [vmem:[%s7695_s24 + $0x358] sm:$0xf]  ;;  %v5691_v36 = vor.u32 %v7011_v29, %v5690_v28  ;;  %v3869_v28 = vpop.f32.mrf.mxu3 }
 0x28a   : > { %v6292_v40 = vld [vmem:[%s7695_s24 + $0xc70] sm:$0xf0]  ;;  %v5402_v38 = vld [vmem:[%s7695_s24 + $0x558] sm:$0xf] }
 0x28b   : > { %v7222_v41 = vld [vmem:[%s7695_s24 + $0xe54] sm:$0xf]  ;;  %v6295_v49 = vor.u32 %v7158_v15, %v6292_v40  ;;  %4048 = vmatpush.bf16.msrb.mxu1 %v6039_v48  ;;  %v6939_v10 = vld [vmem:[%s7695_s24 + $0x574] sm:$0xf0]  ;;  %v4891_v40 = vor.u32 %v6811_v2, %v4890_v34 }
 0x28c   : > { %v6548_v46 = vld [vmem:[%s7695_s24 + $0xe70] sm:$0xf0]  ;;  %v5658_v15 = vld [vmem:[%s7695_s24 + $0x758] sm:$0xf]  ;;  %v5403_v44 = vor.u32 %v6939_v10, %v5402_v38 }
 0x28d   : > { %v7022_v47 = vld [vmem:[%s7695_s24 + $0x814] sm:$0xf]  ;;  %v6551_v54 = vor.u32 %v7222_v41, %v6548_v46  ;;  %4061 = vmatpush.bf16.msrb.mxu2 %v6295_v49  ;;  %v7003_v18 = vld [vmem:[%s7695_s24 + $0x774] sm:$0xf0]  ;;  %v3818_v41 = vadd.f32 %v8572_v26, %v3805_v33  ;;  %v5147_v46 = vor.u32 %v6875_v37, %v5146_v9 }
 0x28e   : > { %v5748_v25 = vld [vmem:[%s7695_s24 + $0x830] sm:$0xf0]  ;;  %v5114_v48 = vld [vmem:[%s7695_s24 + $0x318] sm:$0xf]  ;;  %v5659_v49 = vor.u32 %v7003_v18, %v5658_v15 }
 0x28f   : > { %v7086_v50 = vld [vmem:[%s7695_s24 + $0xa14] sm:$0xf]  ;;  %v5751_v62 = vor.u32 %v7022_v47, %v5748_v25  ;;  %4074 = vmatpush.bf16.msrb.mxu3 %v6551_v54  ;;  %v4858_v47 = vld [vmem:[%s7695_s24 + $0x118] sm:$0xf] }
 0x290   : > { %v6004_v51 = vld [vmem:[%s7695_s24 + $0xa30] sm:$0xf0]  ;;  %v6803_v25 = vld [vmem:[%s7695_s24 + $0x134] sm:$0xf0] }
 0x291   : > { %v7150_v52 = vld [vmem:[%s7695_s24 + $0xc14] sm:$0xf]  ;;  %v6007_v3 = vor.u32 %v7086_v50, %v6004_v51  ;;  %4036 = vmatpush.bf16.msrb.mxu0 %v5751_v62  ;;  %v6867_v50 = vld [vmem:[%s7695_s24 + $0x334] sm:$0xf0]  ;;  %v4859_v26 = vor.u32 %v6803_v25, %v4858_v47  ;;  %v3843_v62 = vpop.f32.mrf.mxu1 }
 0x292   : > { %v6260_v55 = vld [vmem:[%s7695_s24 + $0xc30] sm:$0xf0]  ;;  %v5370_v51 = vld [vmem:[%s7695_s24 + $0x518] sm:$0xf] }
 0x293   : > { %v7214_v56 = vld [vmem:[%s7695_s24 + $0xe14] sm:$0xf]  ;;  %v6263_v4 = vor.u32 %v7150_v52, %v6260_v55  ;;  %4049 = vmatpush.bf16.msrb.mxu1 %v6007_v3  ;;  %v6931_v52 = vld [vmem:[%s7695_s24 + $0x534] sm:$0xf0]  ;;  %v3830_v55 = vpop.f32.mrf.mxu0 }
 0x294   : > { %v6516_v57 = vld [vmem:[%s7695_s24 + $0xe30] sm:$0xf0]  ;;  %4037 = vmatmul.bf16.vlgmr.msrb.gmra.mxu0 %v7884_v42  ;;  %v6995_v54 = vld [vmem:[%s7695_s24 + $0x734] sm:$0xf0]  ;;  %v3831_v61 = vadd.f32 %v3830_v55, %v3818_v41 }
 0x295   : > { %v6519_v58 = vor.u32 %v7214_v56, %v6516_v57  ;;  %4062 = vmatpush.bf16.msrb.mxu2 %v6263_v4  ;;  %4081 = vmatpush.bf16.msra.mxu0 %v4955_v11  ;;  %v5115_v56 = vor.u32 %v6867_v50, %v5114_v48  ;;  %v5371_v57 = vor.u32 %v6931_v52, %v5370_v51  ;;  %v5338_v35 = vld [vmem:[%s7695_s24 + $0x4d8] sm:$0xf] }
 0x296   : > { %4050 = vmatmul.bf16.vlgmr.msrb.gmra.mxu1 %v7888_v45  ;;  %v5627_v63 = vor.u32 %v6995_v54, %v5626_v30  ;;  %v6923_v3 = vld [vmem:[%s7695_s24 + $0x4f4] sm:$0xf0]  ;;  %v3844_v8 = vadd.f32 %v3843_v62, %v3831_v61  ;;  %v5083_v11 = vor.u32 %v6859_v0, %v5082_v31 }
 0x297   : > { %4075 = vmatpush.bf16.msrb.mxu3 %v6519_v58  ;;  %4094 = vmatpush.bf16.msra.mxu1 %v5211_v12  ;;  %v5594_v4 = vld [vmem:[%s7695_s24 + $0x6d8] sm:$0xf]  ;;  %v4827_v58 = vor.u32 %v6795_v53, %v4826_v59  ;;  %v5339_v12 = vor.u32 %v6923_v3, %v5338_v35  ;;  %v3871_v53 = vpop.f32.mrf.mxu3 }
 0x298   : > { %4063 = vmatmul.bf16.vlgmr.msrb.gmra.mxu2 %v7880_v39  ;;  %v6987_v6 = vld [vmem:[%s7695_s24 + $0x6f4] sm:$0xf0]  ;;  %v3857_v27 = vadd.f32 %v3856_v17, %v3844_v8 }
 0x299   : > { %4107 = vmatpush.bf16.msra.mxu2 %v5467_v13  ;;  %4082 = vmatpush.bf16.msra.mxu0 %v4923_v60  ;;  %v4794_v13 = vld [vmem:[%s7695_s24 + $0x98] sm:$0xf]  ;;  %v5595_v19 = vor.u32 %v6987_v6, %v5594_v4  ;;  %v3845_v10 = vpop.f32.mrf.mxu1 }
 0x29a   : > { %4076 = vmatmul.bf16.vlgmr.msrb.gmra.mxu3 %v7886_v43  ;;  %v6787_v14 = vld [vmem:[%s7695_s24 + $0xb4] sm:$0xf0]  ;;  %v3870_v33 = vadd.f32 %v3869_v28, %v3857_v27 }
 0x29b   : > { %4120 = vmatpush.bf16.msra.mxu3 %v5723_v20  ;;  %4095 = vmatpush.bf16.msra.mxu1 %v5179_v1  ;;  %v5050_v16 = vld [vmem:[%s7695_s24 + $0x298] sm:$0xf]  ;;  %v348_v1 = vld [vmem:[#allocation2 + $0x10] sm:$0xff]  ;;  %v3832_v34 = vpop.f32.mrf.mxu0 }
 0x29c   : > { %v6851_v20 = vld [vmem:[%s7695_s24 + $0x2b4] sm:$0xf0]  ;;  %v4292_v18 = vadd.f32 %v3870_v33, %v348_v1 }
 0x29d   : > { %4108 = vmatpush.bf16.msra.mxu2 %v5435_v32  ;;  %4083 = vmatpush.bf16.msra.mxu0 %v4891_v40  ;;  %v5306_v23 = vld [vmem:[%s7695_s24 + $0x498] sm:$0xf]  ;;  %v4795_v32 = vor.u32 %v6787_v14, %v4794_v13  ;;  %v5051_v2 = vor.u32 %v6851_v20, %v5050_v16 }
 0x29e   : > { %v6915_v24 = vld [vmem:[%s7695_s24 + $0x4b4] sm:$0xf0]  ;;  %4300 = vst [vmem:[#allocation2 + $0x10] sm:$0xff] %v4292_v18 }
 0x29f   : > { %4121 = vmatpush.bf16.msra.mxu3 %v5691_v36  ;;  %4096 = vmatpush.bf16.msra.mxu1 %v5147_v46  ;;  %v5562_v29 = vld [vmem:[%s7695_s24 + $0x698] sm:$0xf]  ;;  %v5307_v9 = vor.u32 %v6915_v24, %v5306_v23 }
 0x2a0   : > { %v6979_v60 = vld [vmem:[%s7695_s24 + $0x6b4] sm:$0xf0] }
 0x2a1   : > { %4109 = vmatpush.bf16.msra.mxu2 %v5403_v44  ;;  %4084 = vmatpush.bf16.msra.mxu0 %v4859_v26  ;;  %v4762_v36 = vld [vmem:[%s7695_s24 + $0x58] sm:$0xf]  ;;  %v5563_v15 = vor.u32 %v6979_v60, %v5562_v29  ;;  %v3858_v26 = vpop.f32.mrf.mxu2  ;;  %v8705_v53 = vpop.f32.mrf.mxu1 }
 0x2a2   : > { %v6779_v37 = vld [vmem:[%s7695_s24 + $0x74] sm:$0xf0] }
 0x2a3   : > { %4122 = vmatpush.bf16.msra.mxu3 %v5659_v49  ;;  %4097 = vmatpush.bf16.msra.mxu1 %v5115_v56  ;;  %v5018_v38 = vld [vmem:[%s7695_s24 + $0x258] sm:$0xf]  ;;  %v4763_v25 = vor.u32 %v6779_v37, %v4762_v36 }
 0x2a4   : > { %v6843_v40 = vld [vmem:[%s7695_s24 + $0x274] sm:$0xf0] }
 0x2a5   : > { %4110 = vmatpush.bf16.msra.mxu2 %v5371_v57  ;;  %4085 = vmatpush.bf16.msra.mxu0 %v4827_v58  ;;  %v5274_v41 = vld [vmem:[%s7695_s24 + $0x458] sm:$0xf]  ;;  %v5019_v50 = vor.u32 %v6843_v40, %v5018_v38 }
 0x2a6   : > { %v6907_v46 = vld [vmem:[%s7695_s24 + $0x474] sm:$0xf0] }
 0x2a7   : > { %4123 = vmatpush.bf16.msra.mxu3 %v5627_v63  ;;  %4098 = vmatpush.bf16.msra.mxu1 %v5083_v11  ;;  %v5530_v44 = vld [vmem:[%s7695_s24 + $0x658] sm:$0xf]  ;;  %v5275_v51 = vor.u32 %v6907_v46, %v5274_v41 }
 0x2a8   : > { %v6971_v47 = vld [vmem:[%s7695_s24 + $0x674] sm:$0xf0] }
 0x2a9   : > { %4111 = vmatpush.bf16.msra.mxu2 %v5339_v12  ;;  %4086 = vmatpush.bf16.msra.mxu0 %v4795_v32  ;;  %v4730_v48 = vld [vmem:[%s7695_s24 + $0x18] sm:$0xf]  ;;  %v5531_v55 = vor.u32 %v6971_v47, %v5530_v44 }
 0x2aa   : > { %v6771_v49 = vld [vmem:[%s7695_s24 + $0x34] sm:$0xf0] }
 0x2ab   : > { %4124 = vmatpush.bf16.msra.mxu3 %v5595_v19  ;;  %4099 = vmatpush.bf16.msra.mxu1 %v5051_v2  ;;  %v4986_v52 = vld [vmem:[%s7695_s24 + $0x218] sm:$0xf]  ;;  %v4731_v63 = vor.u32 %v6771_v49, %v4730_v48 }
 0x2ac   : > { %v6835_v30 = vld [vmem:[%s7695_s24 + $0x234] sm:$0xf0] }
 0x2ad   : > { %4112 = vmatpush.bf16.msra.mxu2 %v5307_v9  ;;  %v5242_v54 = vld [vmem:[%s7695_s24 + $0x418] sm:$0xf]  ;;  %4087 = vmatpush.bf16.msra.mxu0 %v4763_v25  ;;  %v4987_v4 = vor.u32 %v6835_v30, %v4986_v52 }
 0x2ae   : > { %v6899_v56 = vld [vmem:[%s7695_s24 + $0x434] sm:$0xf0] }
 0x2af   : > { %4125 = vmatpush.bf16.msra.mxu3 %v5563_v15  ;;  %v5498_v57 = vld [vmem:[%s7695_s24 + $0x618] sm:$0xf]  ;;  %4100 = vmatpush.bf16.msra.mxu1 %v5019_v50  ;;  %v5243_v6 = vor.u32 %v6899_v56, %v5242_v54  ;;  %v8700_v54 = vpop.f32.mrf.mxu0 }
 0x2b0   : > { %v6963_v59 = vld [vmem:[%s7695_s24 + $0x634] sm:$0xf0] }
 0x2b1   : > { %v5978_v31 = vld [vmem:[%s7695_s24 + $0x9d8] sm:$0xf]  ;;  %4113 = vmatpush.bf16.msra.mxu2 %v5275_v51  ;;  %v5499_v11 = vor.u32 %v6963_v59, %v5498_v57  ;;  %4088 = vmatpush.bf16.msra.mxu0 %v4731_v63 }
 0x2b2   : > { %v7083_v61 = vld [vmem:[%s7695_s24 + $0x9f4] sm:$0xf0] }
 0x2b3   : > { %v6234_v62 = vld [vmem:[%s7695_s24 + $0xbd8] sm:$0xf]  ;;  %4126 = vmatpush.bf16.msra.mxu3 %v5531_v55  ;;  %v5979_v12 = vor.u32 %v7083_v61, %v5978_v31  ;;  %4101 = vmatpush.bf16.msra.mxu1 %v4987_v4 }
 0x2b4   : > { %v7147_v0 = vld [vmem:[%s7695_s24 + $0xbf4] sm:$0xf0]  ;;  %4089 = vmatmul.bf16.vlgmr.msra.gmra.mxu0 %v7825_v21 }
 0x2b5   : > { %v6490_v35 = vld [vmem:[%s7695_s24 + $0xdd8] sm:$0xf]  ;;  %v6235_v13 = vor.u32 %v7147_v0, %v6234_v62  ;;  %4114 = vmatpush.bf16.msra.mxu2 %v5243_v6  ;;  %4133 = vmatpush.bf16.msrb.mxu0 %v5979_v12  ;;  %v8715_v12 = vpop.f32.mrf.mxu2 }
 0x2b6   : > { %v7211_v3 = vld [vmem:[%s7695_s24 + $0xdf4] sm:$0xf0]  ;;  %4102 = vmatmul.bf16.vlgmr.msra.gmra.mxu1 %v7828_v22 }
 0x2b7   : > { %v6746_v8 = vld [vmem:[%s7695_s24 + $0xfd8] sm:$0xf]  ;;  %v6491_v14 = vor.u32 %v7211_v3, %v6490_v35  ;;  %4127 = vmatpush.bf16.msra.mxu3 %v5499_v11  ;;  %4146 = vmatpush.bf16.msrb.mxu1 %v6235_v13 }
 0x2b8   : > { %v7275_v58 = vld [vmem:[%s7695_s24 + $0xff4] sm:$0xf0]  ;;  %4115 = vmatmul.bf16.vlgmr.msra.gmra.mxu2 %v7811_v5 }
 0x2b9   : > { %v5946_v16 = vld [vmem:[%s7695_s24 + $0x998] sm:$0xf]  ;;  %v6747_v20 = vor.u32 %v7275_v58, %v6746_v8  ;;  %4159 = vmatpush.bf16.msrb.mxu2 %v6491_v14 }
 0x2ba   : > { %v7075_v17 = vld [vmem:[%s7695_s24 + $0x9b4] sm:$0xf0]  ;;  %4128 = vmatmul.bf16.vlgmr.msra.gmra.mxu3 %v7814_v7 }
 0x2bb   : > { %v6202_v19 = vld [vmem:[%s7695_s24 + $0xb98] sm:$0xf]  ;;  %v5947_v60 = vor.u32 %v7075_v17, %v5946_v16  ;;  %4172 = vmatpush.bf16.msrb.mxu3 %v6747_v20 }
 0x2bc   : > { %v7139_v23 = vld [vmem:[%s7695_s24 + $0xbb4] sm:$0xf0] }
 0x2bd   : > { %v6458_v24 = vld [vmem:[%s7695_s24 + $0xd98] sm:$0xf]  ;;  %v6203_v1 = vor.u32 %v7139_v23, %v6202_v19  ;;  %4134 = vmatpush.bf16.msrb.mxu0 %v5947_v60  ;;  %v8720_v19 = vpop.f32.mrf.mxu3 }
 0x2be   : > { %v7203_v27 = vld [vmem:[%s7695_s24 + $0xdb4] sm:$0xf0] }
 0x2bf   : > { %v6714_v28 = vld [vmem:[%s7695_s24 + $0xf98] sm:$0xf]  ;;  %v6459_v32 = vor.u32 %v7203_v27, %v6458_v24  ;;  %4147 = vmatpush.bf16.msrb.mxu1 %v6203_v1  ;;  %v3884_v27 = vpop.f32.mrf.mxu0 }
 0x2c0   : > { %v7267_v29 = vld [vmem:[%s7695_s24 + $0xfb4] sm:$0xf0] }
 0x2c1   : > { %v5914_v33 = vld [vmem:[%s7695_s24 + $0x958] sm:$0xf]  ;;  %v6715_v9 = vor.u32 %v7267_v29, %v6714_v28  ;;  %4160 = vmatpush.bf16.msrb.mxu2 %v6459_v32 }
 0x2c2   : > { %v7067_v34 = vld [vmem:[%s7695_s24 + $0x974] sm:$0xf0] }
 0x2c3   : > { %v6170_v2 = vld [vmem:[%s7695_s24 + $0xb58] sm:$0xf]  ;;  %v5915_v18 = vor.u32 %v7067_v34, %v5914_v33  ;;  %4173 = vmatpush.bf16.msrb.mxu3 %v6715_v9  ;;  %v3897_v33 = vpop.f32.mrf.mxu1 }
 0x2c4   : > { %v7131_v36 = vld [vmem:[%s7695_s24 + $0xb74] sm:$0xf0]  ;;  %v5148_v33 = vld [vmem:[%s7695_s24 + $0x378] sm:$0xf0] }
 0x2c5   : > { %v6426_v37 = vld [vmem:[%s7695_s24 + $0xd58] sm:$0xf]  ;;  %v6171_v40 = vor.u32 %v7131_v36, %v6170_v2  ;;  %4135 = vmatpush.bf16.msrb.mxu0 %v5915_v18 }
 0x2c6   : > { %v7195_v38 = vld [vmem:[%s7695_s24 + $0xd74] sm:$0xf0] }
 0x2c7   : > { %v6682_v10 = vld [vmem:[%s7695_s24 + $0xf58] sm:$0xf]  ;;  %v6427_v41 = vor.u32 %v7195_v38, %v6426_v37  ;;  %4148 = vmatpush.bf16.msrb.mxu1 %v6171_v40 }
 0x2c8   : > { %v7259_v15 = vld [vmem:[%s7695_s24 + $0xf74] sm:$0xf0] }
 0x2c9   : > { %v5882_v46 = vld [vmem:[%s7695_s24 + $0x918] sm:$0xf]  ;;  %v6683_v25 = vor.u32 %v7259_v15, %v6682_v10  ;;  %4161 = vmatpush.bf16.msrb.mxu2 %v6427_v41 }
 0x2ca   : > { %v7059_v44 = vld [vmem:[%s7695_s24 + $0x934] sm:$0xf0] }
 0x2cb   : > { %v6138_v47 = vld [vmem:[%s7695_s24 + $0xb18] sm:$0xf]  ;;  %v5883_v30 = vor.u32 %v7059_v44, %v5882_v46  ;;  %4174 = vmatpush.bf16.msrb.mxu3 %v6683_v25  ;;  %v3910_v25 = vpop.f32.mrf.mxu2 }
 0x2cc   : > { %v7123_v48 = vld [vmem:[%s7695_s24 + $0xb34] sm:$0xf0]  ;;  %v6991_v25 = vld [vmem:[%s7695_s24 + $0x71c] sm:$0xf] }
 0x2cd   : > { %v6394_v49 = vld [vmem:[%s7695_s24 + $0xd18] sm:$0xf]  ;;  %v6139_v26 = vor.u32 %v7123_v48, %v6138_v47  ;;  %4136 = vmatpush.bf16.msrb.mxu0 %v5883_v30  ;;  %v6823_v30 = vld [vmem:[%s7695_s24 + $0x1dc] sm:$0xf] }
 0x2ce   : > { %v7187_v50 = vld [vmem:[%s7695_s24 + $0xd34] sm:$0xf0] }
 0x2cf   : > { %v6650_v51 = vld [vmem:[%s7695_s24 + $0xf18] sm:$0xf]  ;;  %v6395_v55 = vor.u32 %v7187_v50, %v6394_v49  ;;  %4149 = vmatpush.bf16.msrb.mxu1 %v6139_v26  ;;  %v4956_v26 = vld [vmem:[%s7695_s24 + $0x1f8] sm:$0xf0] }
 0x2d0   : > { %v7251_v52 = vld [vmem:[%s7695_s24 + $0xf34] sm:$0xf0] }
 0x2d1   : > { %v5850_v56 = vld [vmem:[%s7695_s24 + $0x8d8] sm:$0xf]  ;;  %v6651_v31 = vor.u32 %v7251_v52, %v6650_v51  ;;  %4162 = vmatpush.bf16.msrb.mxu2 %v6395_v55  ;;  %v3923_v52 = vpop.f32.mrf.mxu3  ;;  %v6887_v55 = vld [vmem:[%s7695_s24 + $0x3dc] sm:$0xf] }
 0x2d2   : > { %v7051_v57 = vld [vmem:[%s7695_s24 + $0x8f4] sm:$0xf0]  ;;  %v6791_v52 = vld [vmem:[%s7695_s24 + $0xdc] sm:$0xf] }
 0x2d3   : > { %v6106_v59 = vld [vmem:[%s7695_s24 + $0xad8] sm:$0xf]  ;;  %v5851_v3 = vor.u32 %v7051_v57, %v5850_v56  ;;  %4175 = vmatpush.bf16.msrb.mxu3 %v6651_v31  ;;  %v5212_v57 = vld [vmem:[%s7695_s24 + $0x3f8] sm:$0xf0] }
 0x2d4   : > { %v7115_v61 = vld [vmem:[%s7695_s24 + $0xaf4] sm:$0xf0]  ;;  %v5468_v31 = vld [vmem:[%s7695_s24 + $0x5f8] sm:$0xf0] }
 0x2d5   : > { %v6362_v62 = vld [vmem:[%s7695_s24 + $0xcd8] sm:$0xf]  ;;  %v6107_v4 = vor.u32 %v7115_v61, %v6106_v59  ;;  %4137 = vmatpush.bf16.msrb.mxu0 %v5851_v3  ;;  %v6951_v59 = vld [vmem:[%s7695_s24 + $0x5dc] sm:$0xf]  ;;  %v4959_v3 = vor.u32 %v6823_v30, %v4956_v26 }
 0x2d6   : > { %v7179_v63 = vld [vmem:[%s7695_s24 + $0xcf4] sm:$0xf0]  ;;  %v4828_v30 = vld [vmem:[%s7695_s24 + $0xf8] sm:$0xf0] }
 0x2d7   : > { %v6618_v0 = vld [vmem:[%s7695_s24 + $0xed8] sm:$0xf]  ;;  %v6363_v6 = vor.u32 %v7179_v63, %v6362_v62  ;;  %4150 = vmatpush.bf16.msrb.mxu1 %v6107_v4  ;;  %v7015_v63 = vld [vmem:[%s7695_s24 + $0x7dc] sm:$0xf]  ;;  %v5215_v4 = vor.u32 %v6887_v55, %v5212_v57 }
 0x2d8   : > { %v7243_v35 = vld [vmem:[%s7695_s24 + $0xef4] sm:$0xf0]  ;;  %v6855_v26 = vld [vmem:[%s7695_s24 + $0x2dc] sm:$0xf] }
 0x2d9   : > { %v5818_v8 = vld [vmem:[%s7695_s24 + $0x898] sm:$0xf]  ;;  %v6619_v13 = vor.u32 %v7243_v35, %v6618_v0  ;;  %4163 = vmatpush.bf16.msrb.mxu2 %v6363_v6  ;;  %v5724_v0 = vld [vmem:[%s7695_s24 + $0x7f8] sm:$0xf0]  ;;  %v5471_v6 = vor.u32 %v6951_v59, %v5468_v31 }
 0x2da   : > { %v7043_v58 = vld [vmem:[%s7695_s24 + $0x8b4] sm:$0xf0]  ;;  %v5084_v59 = vld [vmem:[%s7695_s24 + $0x2f8] sm:$0xf0] }
 0x2db   : > { %v6074_v11 = vld [vmem:[%s7695_s24 + $0xa98] sm:$0xf]  ;;  %v5819_v24 = vor.u32 %v7043_v58, %v5818_v8  ;;  %4176 = vmatpush.bf16.msrb.mxu3 %v6619_v13  ;;  %v3896_v8 = vadd.f32 %v8705_v53, %v8700_v54  ;;  %v6815_v58 = vld [vmem:[%s7695_s24 + $0x19c] sm:$0xf] }
 0x2dc   : > { %v7107_v14 = vld [vmem:[%s7695_s24 + $0xab4] sm:$0xf0]  ;;  %v6879_v13 = vld [vmem:[%s7695_s24 + $0x39c] sm:$0xf] }
 0x2dd   : > { %v6330_v16 = vld [vmem:[%s7695_s24 + $0xc98] sm:$0xf]  ;;  %v6075_v28 = vor.u32 %v7107_v14, %v6074_v11  ;;  %4138 = vmatpush.bf16.msrb.mxu0 %v5819_v24  ;;  %v4924_v11 = vld [vmem:[%s7695_s24 + $0x1b8] sm:$0xf0]  ;;  %v5727_v14 = vor.u32 %v7015_v63, %v5724_v0 }
 0x2de   : > { %v7171_v17 = vld [vmem:[%s7695_s24 + $0xcb4] sm:$0xf0]  ;;  %v5692_v24 = vld [vmem:[%s7695_s24 + $0x7b8] sm:$0xf0]  ;;  %v4927_v54 = vor.u32 %v6815_v58, %v4924_v11  ;;  %v3960_v11 = vpop.f32.mrf.mxu2 }
 0x2df   : > { %v6586_v20 = vld [vmem:[%s7695_s24 + $0xe98] sm:$0xf]  ;;  %v6331_v29 = vor.u32 %v7171_v17, %v6330_v16  ;;  %4151 = vmatpush.bf16.msrb.mxu1 %v6075_v28  ;;  %v5180_v16 = vld [vmem:[%s7695_s24 + $0x3b8] sm:$0xf0]  ;;  %v3909_v28 = vadd.f32 %v8715_v12, %v3896_v8 }
 0x2e0   : > { %v7235_v23 = vld [vmem:[%s7695_s24 + $0xeb4] sm:$0xf0]  ;;  %v6943_v17 = vld [vmem:[%s7695_s24 + $0x59c] sm:$0xf]  ;;  %v5183_v53 = vor.u32 %v6879_v13, %v5180_v16 }
 0x2e1   : > { %v5786_v60 = vld [vmem:[%s7695_s24 + $0x858] sm:$0xf]  ;;  %v6587_v34 = vor.u32 %v7235_v23, %v6586_v20  ;;  %4164 = vmatpush.bf16.msrb.mxu2 %v6331_v29  ;;  %v5436_v20 = vld [vmem:[%s7695_s24 + $0x5b8] sm:$0xf0] }
 0x2e2   : > { %v7035_v1 = vld [vmem:[%s7695_s24 + $0x874] sm:$0xf0]  ;;  %v7007_v23 = vld [vmem:[%s7695_s24 + $0x79c] sm:$0xf]  ;;  %v5439_v27 = vor.u32 %v6943_v17, %v5436_v20 }
 0x2e3   : > { %v6042_v32 = vld [vmem:[%s7695_s24 + $0xa58] sm:$0xf]  ;;  %v5787_v10 = vor.u32 %v7035_v1, %v5786_v60  ;;  %4177 = vmatpush.bf16.msrb.mxu3 %v6587_v34  ;;  %v6807_v29 = vld [vmem:[%s7695_s24 + $0x15c] sm:$0xf] }
 0x2e4   : > { %v7099_v2 = vld [vmem:[%s7695_s24 + $0xa74] sm:$0xf0]  ;;  %v4892_v60 = vld [vmem:[%s7695_s24 + $0x178] sm:$0xf0] }
 0x2e5   : > { %v6298_v9 = vld [vmem:[%s7695_s24 + $0xc58] sm:$0xf]  ;;  %v6043_v40 = vor.u32 %v7099_v2, %v6042_v32  ;;  %4139 = vmatpush.bf16.msrb.mxu0 %v5787_v10  ;;  %v6871_v1 = vld [vmem:[%s7695_s24 + $0x35c] sm:$0xf]  ;;  %v5695_v32 = vor.u32 %v7007_v23, %v5692_v24  ;;  %v3973_v23 = vpop.f32.mrf.mxu3 }
 0x2e6   : > { %v7163_v36 = vld [vmem:[%s7695_s24 + $0xc74] sm:$0xf0]  ;;  %v6935_v34 = vld [vmem:[%s7695_s24 + $0x55c] sm:$0xf] }
 0x2e7   : > { %v6554_v37 = vld [vmem:[%s7695_s24 + $0xe58] sm:$0xf]  ;;  %v6299_v41 = vor.u32 %v7163_v36, %v6298_v9  ;;  %4152 = vmatpush.bf16.msrb.mxu1 %v6043_v40  ;;  %v5404_v2 = vld [vmem:[%s7695_s24 + $0x578] sm:$0xf0]  ;;  %v4895_v36 = vor.u32 %v6807_v29, %v4892_v60 }
 0x2e8   : > { %v7227_v38 = vld [vmem:[%s7695_s24 + $0xe74] sm:$0xf0]  ;;  %v6999_v9 = vld [vmem:[%s7695_s24 + $0x75c] sm:$0xf]  ;;  %v5407_v10 = vor.u32 %v6935_v34, %v5404_v2 }
 0x2e9   : > { %v5754_v15 = vld [vmem:[%s7695_s24 + $0x818] sm:$0xf]  ;;  %v6555_v48 = vor.u32 %v7227_v38, %v6554_v37  ;;  %4165 = vmatpush.bf16.msrb.mxu2 %v6299_v41  ;;  %v5660_v12 = vld [vmem:[%s7695_s24 + $0x778] sm:$0xf0]  ;;  %v3922_v37 = vadd.f32 %v8720_v19, %v3909_v28  ;;  %v5151_v38 = vor.u32 %v6871_v1, %v5148_v33 }
 0x2ea   : > { %v7027_v18 = vld [vmem:[%s7695_s24 + $0x834] sm:$0xf0]  ;;  %v6863_v40 = vld [vmem:[%s7695_s24 + $0x31c] sm:$0xf]  ;;  %v5663_v41 = vor.u32 %v6999_v9, %v5660_v12 }
 0x2eb   : > { %v6010_v46 = vld [vmem:[%s7695_s24 + $0xa18] sm:$0xf]  ;;  %v5755_v56 = vor.u32 %v7027_v18, %v5754_v15  ;;  %4178 = vmatpush.bf16.msrb.mxu3 %v6555_v48  ;;  %v6799_v15 = vld [vmem:[%s7695_s24 + $0x11c] sm:$0xf] }
 0x2ec   : > { %v7091_v44 = vld [vmem:[%s7695_s24 + $0xa34] sm:$0xf0]  ;;  %v4860_v18 = vld [vmem:[%s7695_s24 + $0x138] sm:$0xf0] }
 0x2ed   : > { %v6266_v47 = vld [vmem:[%s7695_s24 + $0xc18] sm:$0xf]  ;;  %v6011_v61 = vor.u32 %v7091_v44, %v6010_v46  ;;  %4140 = vmatpush.bf16.msrb.mxu0 %v5755_v56  ;;  %v5116_v46 = vld [vmem:[%s7695_s24 + $0x338] sm:$0xf0]  ;;  %v4863_v19 = vor.u32 %v6799_v15, %v4860_v18  ;;  %v3947_v56 = vpop.f32.mrf.mxu1 }
 0x2ee   : > { %v7155_v49 = vld [vmem:[%s7695_s24 + $0xc34] sm:$0xf0]  ;;  %v6927_v44 = vld [vmem:[%s7695_s24 + $0x51c] sm:$0xf] }
 0x2ef   : > { %v6522_v50 = vld [vmem:[%s7695_s24 + $0xe18] sm:$0xf]  ;;  %v6267_v62 = vor.u32 %v7155_v49, %v6266_v47  ;;  %4153 = vmatpush.bf16.msrb.mxu1 %v6011_v61  ;;  %v5372_v47 = vld [vmem:[%s7695_s24 + $0x538] sm:$0xf0]  ;;  %v3934_v49 = vpop.f32.mrf.mxu0 }
 0x2f0   : > { %v7219_v51 = vld [vmem:[%s7695_s24 + $0xe34] sm:$0xf0]  ;;  %4141 = vmatmul.bf16.vlgmr.msrb.gmra.mxu0 %v7884_v42  ;;  %v5628_v48 = vld [vmem:[%s7695_s24 + $0x738] sm:$0xf0]  ;;  %v3935_v55 = vadd.f32 %v3934_v49, %v3922_v37 }
 0x2f1   : > { %v6523_v35 = vor.u32 %v7219_v51, %v6522_v50  ;;  %4166 = vmatpush.bf16.msrb.mxu2 %v6267_v62  ;;  %4185 = vmatpush.bf16.msra.mxu0 %v4959_v3  ;;  %v5119_v50 = vor.u32 %v6863_v40, %v5116_v46  ;;  %v5375_v51 = vor.u32 %v6927_v44, %v5372_v47  ;;  %v6919_v31 = vld [vmem:[%s7695_s24 + $0x4dc] sm:$0xf] }
 0x2f2   : > { %4154 = vmatmul.bf16.vlgmr.msrb.gmra.mxu1 %v7888_v45  ;;  %v5631_v57 = vor.u32 %v6991_v25, %v5628_v48  ;;  %v5340_v61 = vld [vmem:[%s7695_s24 + $0x4f8] sm:$0xf0]  ;;  %v3948_v0 = vadd.f32 %v3947_v56, %v3935_v55  ;;  %v5087_v3 = vor.u32 %v6855_v26, %v5084_v59 }
 0x2f3   : > { %4179 = vmatpush.bf16.msrb.mxu3 %v6523_v35  ;;  %4198 = vmatpush.bf16.msra.mxu1 %v5215_v4  ;;  %v6983_v62 = vld [vmem:[%s7695_s24 + $0x6dc] sm:$0xf]  ;;  %v4831_v35 = vor.u32 %v6791_v52, %v4828_v30  ;;  %v5343_v4 = vor.u32 %v6919_v31, %v5340_v61  ;;  %v3975_v30 = vpop.f32.mrf.mxu3 }
 0x2f4   : > { %4167 = vmatmul.bf16.vlgmr.msrb.gmra.mxu2 %v7880_v39  ;;  %v5596_v63 = vld [vmem:[%s7695_s24 + $0x6f8] sm:$0xf0]  ;;  %v3961_v20 = vadd.f32 %v3960_v11, %v3948_v0 }
 0x2f5   : > { %4211 = vmatpush.bf16.msra.mxu2 %v5471_v6  ;;  %4186 = vmatpush.bf16.msra.mxu0 %v4927_v54  ;;  %v6783_v6 = vld [vmem:[%s7695_s24 + $0x9c] sm:$0xf]  ;;  %v5599_v13 = vor.u32 %v6983_v62, %v5596_v63  ;;  %v3949_v2 = vpop.f32.mrf.mxu1 }
 0x2f6   : > { %4180 = vmatmul.bf16.vlgmr.msrb.gmra.mxu3 %v7886_v43  ;;  %v4796_v8 = vld [vmem:[%s7695_s24 + $0xb8] sm:$0xf0]  ;;  %v3974_v28 = vadd.f32 %v3973_v23, %v3961_v20 }
 0x2f7   : > { %4224 = vmatpush.bf16.msra.mxu3 %v5727_v14  ;;  %4199 = vmatpush.bf16.msra.mxu1 %v5183_v53  ;;  %v6847_v58 = vld [vmem:[%s7695_s24 + $0x29c] sm:$0xf]  ;;  %v349_v53 = vld [vmem:[#allocation2 + $0x8] sm:$0xff]  ;;  %v3936_v29 = vpop.f32.mrf.mxu0 }
 0x2f8   : > { %v5052_v14 = vld [vmem:[%s7695_s24 + $0x2b8] sm:$0xf0]  ;;  %v4293_v12 = vadd.f32 %v3974_v28, %v349_v53 }
 0x2f9   : > { %4212 = vmatpush.bf16.msra.mxu2 %v5439_v27  ;;  %4187 = vmatpush.bf16.msra.mxu0 %v4895_v36  ;;  %v6911_v16 = vld [vmem:[%s7695_s24 + $0x49c] sm:$0xf]  ;;  %v4799_v27 = vor.u32 %v6783_v6, %v4796_v8  ;;  %v5055_v60 = vor.u32 %v6847_v58, %v5052_v14 }
 0x2fa   : > { %v5308_v17 = vld [vmem:[%s7695_s24 + $0x4b8] sm:$0xf0]  ;;  %4301 = vst [vmem:[#allocation2 + $0x8] sm:$0xff] %v4293_v12 }
 0x2fb   : > { %4225 = vmatpush.bf16.msra.mxu3 %v5695_v32  ;;  %4200 = vmatpush.bf16.msra.mxu1 %v5151_v38  ;;  %v6975_v24 = vld [vmem:[%s7695_s24 + $0x69c] sm:$0xf]  ;;  %v5311_v1 = vor.u32 %v6911_v16, %v5308_v17 }
 0x2fc   : > { %v5564_v54 = vld [vmem:[%s7695_s24 + $0x6b8] sm:$0xf0] }
 0x2fd   : > { %4213 = vmatpush.bf16.msra.mxu2 %v5407_v10  ;;  %4188 = vmatpush.bf16.msra.mxu0 %v4863_v19  ;;  %v6775_v32 = vld [vmem:[%s7695_s24 + $0x5c] sm:$0xf]  ;;  %v5567_v9 = vor.u32 %v6975_v24, %v5564_v54  ;;  %v3962_v19 = vpop.f32.mrf.mxu2 }
 0x2fe   : > { %v4764_v33 = vld [vmem:[%s7695_s24 + $0x78] sm:$0xf0] }
 0x2ff   : > { %4226 = vmatpush.bf16.msra.mxu3 %v5663_v41  ;;  %4201 = vmatpush.bf16.msra.mxu1 %v5119_v50  ;;  %v6839_v34 = vld [vmem:[%s7695_s24 + $0x25c] sm:$0xf]  ;;  %v4767_v18 = vor.u32 %v6775_v32, %v4764_v33 }
 0x300   : > { %v5020_v36 = vld [vmem:[%s7695_s24 + $0x278] sm:$0xf0] }
 0x301   : > { %4214 = vmatpush.bf16.msra.mxu2 %v5375_v51  ;;  %4189 = vmatpush.bf16.msra.mxu0 %v4831_v35  ;;  %v6903_v37 = vld [vmem:[%s7695_s24 + $0x45c] sm:$0xf]  ;;  %v5023_v46 = vor.u32 %v6839_v34, %v5020_v36 }
 0x302   : > { %v5276_v38 = vld [vmem:[%s7695_s24 + $0x478] sm:$0xf0] }
 0x303   : > { %4227 = vmatpush.bf16.msra.mxu3 %v5631_v57  ;;  %4202 = vmatpush.bf16.msra.mxu1 %v5087_v3  ;;  %v6967_v10 = vld [vmem:[%s7695_s24 + $0x65c] sm:$0xf]  ;;  %v5279_v44 = vor.u32 %v6903_v37, %v5276_v38 }
 0x304   : > { %v5532_v15 = vld [vmem:[%s7695_s24 + $0x678] sm:$0xf0] }
 0x305   : > { %4215 = vmatpush.bf16.msra.mxu2 %v5343_v4  ;;  %4190 = vmatpush.bf16.msra.mxu0 %v4799_v27  ;;  %v6767_v40 = vld [vmem:[%s7695_s24 + $0x1c] sm:$0xf]  ;;  %v5535_v49 = vor.u32 %v6967_v10, %v5532_v15 }
 0x306   : > { %v4732_v41 = vld [vmem:[%s7695_s24 + $0x38] sm:$0xf0] }
 0x307   : > { %4228 = vmatpush.bf16.msra.mxu3 %v5599_v13  ;;  %4203 = vmatpush.bf16.msra.mxu1 %v5055_v60  ;;  %v6831_v47 = vld [vmem:[%s7695_s24 + $0x21c] sm:$0xf]  ;;  %v4735_v57 = vor.u32 %v6767_v40, %v4732_v41 }
 0x308   : > { %v4988_v25 = vld [vmem:[%s7695_s24 + $0x238] sm:$0xf0] }
 0x309   : > { %4216 = vmatpush.bf16.msra.mxu2 %v5311_v1  ;;  %v6895_v48 = vld [vmem:[%s7695_s24 + $0x41c] sm:$0xf]  ;;  %4191 = vmatpush.bf16.msra.mxu0 %v4767_v18  ;;  %v4991_v62 = vor.u32 %v6831_v47, %v4988_v25 }
 0x30a   : > { %v5244_v50 = vld [vmem:[%s7695_s24 + $0x438] sm:$0xf0] }
 0x30b   : > { %4229 = vmatpush.bf16.msra.mxu3 %v5567_v9  ;;  %v6959_v51 = vld [vmem:[%s7695_s24 + $0x61c] sm:$0xf]  ;;  %4204 = vmatpush.bf16.msra.mxu1 %v5023_v46  ;;  %v5247_v63 = vor.u32 %v6895_v48, %v5244_v50  ;;  %v8848_v46 = vpop.f32.mrf.mxu0 }
 0x30c   : > { %v5500_v52 = vld [vmem:[%s7695_s24 + $0x638] sm:$0xf0] }
 0x30d   : > { %v7079_v26 = vld [vmem:[%s7695_s24 + $0x9dc] sm:$0xf]  ;;  %4217 = vmatpush.bf16.msra.mxu2 %v5279_v44  ;;  %v5503_v3 = vor.u32 %v6959_v51, %v5500_v52  ;;  %4192 = vmatpush.bf16.msra.mxu0 %v4735_v57 }
 0x30e   : > { %v5980_v55 = vld [vmem:[%s7695_s24 + $0x9f8] sm:$0xf0] }
 0x30f   : > { %v7143_v56 = vld [vmem:[%s7695_s24 + $0xbdc] sm:$0xf]  ;;  %4230 = vmatpush.bf16.msra.mxu3 %v5535_v49  ;;  %v5983_v4 = vor.u32 %v7079_v26, %v5980_v55  ;;  %4205 = vmatpush.bf16.msra.mxu1 %v4991_v62  ;;  %v8853_v49 = vpop.f32.mrf.mxu1 }
 0x310   : > { %v6236_v59 = vld [vmem:[%s7695_s24 + $0xbf8] sm:$0xf0]  ;;  %4193 = vmatmul.bf16.vlgmr.msra.gmra.mxu0 %v7825_v21 }
 0x311   : > { %v7207_v31 = vld [vmem:[%s7695_s24 + $0xddc] sm:$0xf]  ;;  %v6239_v6 = vor.u32 %v7143_v56, %v6236_v59  ;;  %4218 = vmatpush.bf16.msra.mxu2 %v5247_v63  ;;  %4237 = vmatpush.bf16.msrb.mxu0 %v5983_v4  ;;  %v4012_v63 = vpop.f32.mrf.mxu2 }
 0x312   : > { %v6492_v61 = vld [vmem:[%s7695_s24 + $0xdf8] sm:$0xf0]  ;;  %4206 = vmatmul.bf16.vlgmr.msra.gmra.mxu1 %v7828_v22 }
 0x313   : > { %v7271_v0 = vld [vmem:[%s7695_s24 + $0xfdc] sm:$0xf]  ;;  %v6495_v8 = vor.u32 %v7207_v31, %v6492_v61  ;;  %4231 = vmatpush.bf16.msra.mxu3 %v5503_v3  ;;  %4250 = vmatpush.bf16.msrb.mxu1 %v6239_v6  ;;  %v4025_v6 = vpop.f32.mrf.mxu3 }
 0x314   : > { %v6748_v35 = vld [vmem:[%s7695_s24 + $0xff8] sm:$0xf0]  ;;  %4219 = vmatmul.bf16.vlgmr.msra.gmra.mxu2 %v7811_v5 }
 0x315   : > { %v7071_v58 = vld [vmem:[%s7695_s24 + $0x99c] sm:$0xf]  ;;  %v6751_v14 = vor.u32 %v7271_v0, %v6748_v35  ;;  %4263 = vmatpush.bf16.msrb.mxu2 %v6495_v8 }
 0x316   : > { %v5948_v11 = vld [vmem:[%s7695_s24 + $0x9b8] sm:$0xf0]  ;;  %4232 = vmatmul.bf16.vlgmr.msra.gmra.mxu3 %v7814_v7 }
 0x317   : > { %v7135_v13 = vld [vmem:[%s7695_s24 + $0xb9c] sm:$0xf]  ;;  %v5951_v54 = vor.u32 %v7071_v58, %v5948_v11  ;;  %4276 = vmatpush.bf16.msrb.mxu3 %v6751_v14 }
 0x318   : > { %v6204_v16 = vld [vmem:[%s7695_s24 + $0xbb8] sm:$0xf0] }
 0x319   : > { %v7199_v17 = vld [vmem:[%s7695_s24 + $0xd9c] sm:$0xf]  ;;  %v6207_v53 = vor.u32 %v7135_v13, %v6204_v16  ;;  %4238 = vmatpush.bf16.msrb.mxu0 %v5951_v54  ;;  %v3988_v13 = vpop.f32.mrf.mxu0 }
 0x31a   : > { %v6460_v20 = vld [vmem:[%s7695_s24 + $0xdb8] sm:$0xf0] }
 0x31b   : > { %v7263_v23 = vld [vmem:[%s7695_s24 + $0xf9c] sm:$0xf]  ;;  %v6463_v27 = vor.u32 %v7199_v17, %v6460_v20  ;;  %4251 = vmatpush.bf16.msrb.mxu1 %v6207_v53 }
 0x31c   : > { %v6716_v24 = vld [vmem:[%s7695_s24 + $0xfb8] sm:$0xf0] }
 0x31d   : > { %v7063_v28 = vld [vmem:[%s7695_s24 + $0x95c] sm:$0xf]  ;;  %v6719_v1 = vor.u32 %v7263_v23, %v6716_v24  ;;  %4264 = vmatpush.bf16.msrb.mxu2 %v6463_v27  ;;  %v4001_v24 = vpop.f32.mrf.mxu1 }
 0x31e   : > { %v5916_v29 = vld [vmem:[%s7695_s24 + $0x978] sm:$0xf0] }
 0x31f   : > { %v7127_v60 = vld [vmem:[%s7695_s24 + $0xb5c] sm:$0xf]  ;;  %v5919_v12 = vor.u32 %v7063_v28, %v5916_v29  ;;  %4277 = vmatpush.bf16.msrb.mxu3 %v6719_v1 }
 0x320   : > { %v6172_v32 = vld [vmem:[%s7695_s24 + $0xb78] sm:$0xf0] }
 0x321   : > { %v7191_v33 = vld [vmem:[%s7695_s24 + $0xd5c] sm:$0xf]  ;;  %v6175_v5 = vor.u32 %v7127_v60, %v6172_v32  ;;  %4239 = vmatpush.bf16.msrb.mxu0 %v5919_v12  ;;  %v4014_v12 = vpop.f32.mrf.mxu2 }
 0x322   : > { %v6428_v34 = vld [vmem:[%s7695_s24 + $0xd78] sm:$0xf0] }
 0x323   : > { %v7255_v2 = vld [vmem:[%s7695_s24 + $0xf5c] sm:$0xf]  ;;  %v6431_v36 = vor.u32 %v7191_v33, %v6428_v34  ;;  %4252 = vmatpush.bf16.msrb.mxu1 %v6175_v5 }
 0x324   : > { %v6684_v9 = vld [vmem:[%s7695_s24 + $0xf78] sm:$0xf0] }
 0x325   : > { %v7055_v37 = vld [vmem:[%s7695_s24 + $0x91c] sm:$0xf]  ;;  %v6687_v10 = vor.u32 %v7255_v2, %v6684_v9  ;;  %4265 = vmatpush.bf16.msrb.mxu2 %v6431_v36 }
 0x326   : > { %v5884_v38 = vld [vmem:[%s7695_s24 + $0x938] sm:$0xf0] }
 0x327   : > { %v7119_v7 = vld [vmem:[%s7695_s24 + $0xb1c] sm:$0xf]  ;;  %v5887_v22 = vor.u32 %v7055_v37, %v5884_v38  ;;  %4278 = vmatpush.bf16.msrb.mxu3 %v6687_v10 }
 0x328   : > { %v6140_v15 = vld [vmem:[%s7695_s24 + $0xb38] sm:$0xf0] }
 0x329   : > { %v7183_v21 = vld [vmem:[%s7695_s24 + $0xd1c] sm:$0xf]  ;;  %v6143_v44 = vor.u32 %v7119_v7, %v6140_v15  ;;  %4240 = vmatpush.bf16.msrb.mxu0 %v5887_v22  ;;  %v4027_v7 = vpop.f32.mrf.mxu3  ;;  %v4000_v22 = vadd.f32 %v8853_v49, %v8848_v46 }
 0x32a   : > { %v6396_v18 = vld [vmem:[%s7695_s24 + $0xd38] sm:$0xf0] }
 0x32b   : > { %v7247_v40 = vld [vmem:[%s7695_s24 + $0xf1c] sm:$0xf]  ;;  %v6399_v47 = vor.u32 %v7183_v21, %v6396_v18  ;;  %4253 = vmatpush.bf16.msrb.mxu1 %v6143_v44  ;;  %v4013_v44 = vadd.f32 %v4012_v63, %v4000_v22 }
 0x32c   : > { %v6652_v41 = vld [vmem:[%s7695_s24 + $0xf38] sm:$0xf0] }
 0x32d   : > { %v7047_v25 = vld [vmem:[%s7695_s24 + $0x8dc] sm:$0xf]  ;;  %v6655_v50 = vor.u32 %v7247_v40, %v6652_v41  ;;  %4266 = vmatpush.bf16.msrb.mxu2 %v6399_v47  ;;  %v4026_v47 = vadd.f32 %v4025_v6, %v4013_v44 }
 0x32e   : > { %v5852_v48 = vld [vmem:[%s7695_s24 + $0x8f8] sm:$0xf0] }
 0x32f   : > { %v7111_v19 = vld [vmem:[%s7695_s24 + $0xadc] sm:$0xf]  ;;  %v5855_v56 = vor.u32 %v7047_v25, %v5852_v48  ;;  %4279 = vmatpush.bf16.msrb.mxu3 %v6655_v50  ;;  %v4038_v25 = vpop.f32.mrf.mxu0 }
 0x330   : > { %v6108_v51 = vld [vmem:[%s7695_s24 + $0xaf8] sm:$0xf0]  ;;  %v4039_v48 = vadd.f32 %v4038_v25, %v4026_v47 }
 0x331   : > { %v7175_v52 = vld [vmem:[%s7695_s24 + $0xcdc] sm:$0xf]  ;;  %v6111_v57 = vor.u32 %v7111_v19, %v6108_v51  ;;  %4241 = vmatpush.bf16.msrb.mxu0 %v5855_v56  ;;  %v4051_v19 = vpop.f32.mrf.mxu1  ;;  %v4064_v51 = vpop.f32.mrf.mxu2 }
 0x332   : > { %v6364_v30 = vld [vmem:[%s7695_s24 + $0xcf8] sm:$0xf0]  ;;  %v4052_v50 = vadd.f32 %v4051_v19, %v4039_v48  ;;  %v4077_v49 = vpop.f32.mrf.mxu3 }
 0x333   : > { %v7239_v26 = vld [vmem:[%s7695_s24 + $0xedc] sm:$0xf]  ;;  %v6367_v59 = vor.u32 %v7175_v52, %v6364_v30  ;;  %4254 = vmatpush.bf16.msrb.mxu1 %v6111_v57  ;;  %v350_v52 = vld [vmem:[#allocation2 + $0x20] sm:$0xff] }
 0x334   : > { %v6620_v55 = vld [vmem:[%s7695_s24 + $0xef8] sm:$0xf0]  ;;  %v4065_v46 = vadd.f32 %v4064_v51, %v4052_v50 }
 0x335   : > { %v7039_v31 = vld [vmem:[%s7695_s24 + $0x89c] sm:$0xf]  ;;  %v6623_v0 = vor.u32 %v7239_v26, %v6620_v55  ;;  %4267 = vmatpush.bf16.msrb.mxu2 %v6367_v59 }
 0x336   : > { %v5820_v61 = vld [vmem:[%s7695_s24 + $0x8b8] sm:$0xf0]  ;;  %v4078_v30 = vadd.f32 %v4077_v49, %v4065_v46 }
 0x337   : > { %v7103_v62 = vld [vmem:[%s7695_s24 + $0xa9c] sm:$0xf]  ;;  %v5823_v11 = vor.u32 %v7039_v31, %v5820_v61  ;;  %4280 = vmatpush.bf16.msrb.mxu3 %v6623_v0  ;;  %v4040_v26 = vpop.f32.mrf.mxu0 }
 0x338   : > { %v6076_v35 = vld [vmem:[%s7695_s24 + $0xab8] sm:$0xf0] }
 0x339   : > { %v7167_v3 = vld [vmem:[%s7695_s24 + $0xc9c] sm:$0xf]  ;;  %v6079_v14 = vor.u32 %v7103_v62, %v6076_v35  ;;  %4242 = vmatpush.bf16.msrb.mxu0 %v5823_v11  ;;  %v4053_v55 = vpop.f32.mrf.mxu1  ;;  %v4066_v56 = vpop.f32.mrf.mxu2 }
 0x33a   : > { %v6332_v4 = vld [vmem:[%s7695_s24 + $0xcb8] sm:$0xf0] }
 0x33b   : > { %v7231_v8 = vld [vmem:[%s7695_s24 + $0xe9c] sm:$0xf]  ;;  %v6335_v16 = vor.u32 %v7167_v3, %v6332_v4  ;;  %4255 = vmatpush.bf16.msrb.mxu1 %v6079_v14 }
 0x33c   : > { %v6588_v58 = vld [vmem:[%s7695_s24 + $0xeb8] sm:$0xf0] }
 0x33d   : > { %v7031_v17 = vld [vmem:[%s7695_s24 + $0x85c] sm:$0xf]  ;;  %v6591_v54 = vor.u32 %v7231_v8, %v6588_v58  ;;  %4268 = vmatpush.bf16.msrb.mxu2 %v6335_v16  ;;  %v351_v16 = vld [vmem:[#allocation2 + $0x28] sm:$0xff] }
 0x33e   : > { %v5788_v20 = vld [vmem:[%s7695_s24 + $0x878] sm:$0xf0] }
 0x33f   : > { %v7095_v23 = vld [vmem:[%s7695_s24 + $0xa5c] sm:$0xf]  ;;  %v5791_v1 = vor.u32 %v7031_v17, %v5788_v20  ;;  %4281 = vmatpush.bf16.msrb.mxu3 %v6591_v54  ;;  %v4090_v57 = vpop.f32.mrf.mxu0 }
 0x340   : > { %v6044_v53 = vld [vmem:[%s7695_s24 + $0xa78] sm:$0xf0] }
 0x341   : > { %v7159_v27 = vld [vmem:[%s7695_s24 + $0xc5c] sm:$0xf]  ;;  %v6047_v32 = vor.u32 %v7095_v23, %v6044_v53  ;;  %4243 = vmatpush.bf16.msrb.mxu0 %v5791_v1  ;;  %v4116_v59 = vpop.f32.mrf.mxu2 }
 0x342   : > { %v6300_v28 = vld [vmem:[%s7695_s24 + $0xc78] sm:$0xf0] }
 0x343   : > { %v7223_v29 = vld [vmem:[%s7695_s24 + $0xe5c] sm:$0xf]  ;;  %v6303_v33 = vor.u32 %v7159_v27, %v6300_v28  ;;  %4256 = vmatpush.bf16.msrb.mxu1 %v6047_v32 }
 0x344   : > { %v6556_v60 = vld [vmem:[%s7695_s24 + $0xe78] sm:$0xf0] }
 0x345   : > { %v7023_v34 = vld [vmem:[%s7695_s24 + $0x81c] sm:$0xf]  ;;  %v6559_v5 = vor.u32 %v7223_v29, %v6556_v60  ;;  %4269 = vmatpush.bf16.msrb.mxu2 %v6303_v33 }
 0x346   : > { %v5756_v2 = vld [vmem:[%s7695_s24 + $0x838] sm:$0xf0] }
 0x347   : > { %v7087_v9 = vld [vmem:[%s7695_s24 + $0xa1c] sm:$0xf]  ;;  %v5759_v21 = vor.u32 %v7023_v34, %v5756_v2  ;;  %4282 = vmatpush.bf16.msrb.mxu3 %v6559_v5  ;;  %v4092_v31 = vpop.f32.mrf.mxu0 }
 0x348   : > { %v6012_v36 = vld [vmem:[%s7695_s24 + $0xa38] sm:$0xf0] }
 0x349   : > { %v7151_v37 = vld [vmem:[%s7695_s24 + $0xc1c] sm:$0xf]  ;;  %v6015_v18 = vor.u32 %v7087_v9, %v6012_v36  ;;  %4244 = vmatpush.bf16.msrb.mxu0 %v5759_v21  ;;  %v4118_v62 = vpop.f32.mrf.mxu2 }
 0x34a   : > { %v6268_v38 = vld [vmem:[%s7695_s24 + $0xc38] sm:$0xf0] }
 0x34b   : > { %v7215_v10 = vld [vmem:[%s7695_s24 + $0xe1c] sm:$0xf]  ;;  %v6271_v40 = vor.u32 %v7151_v37, %v6268_v38  ;;  %4257 = vmatpush.bf16.msrb.mxu1 %v6015_v18 }
 0x34c   : > { %v6524_v15 = vld [vmem:[%s7695_s24 + $0xe38] sm:$0xf0]  ;;  %4245 = vmatmul.bf16.vlgmr.msrb.gmra.mxu0 %v7884_v42  ;;  %v4294_v42 = vadd.f32 %v4078_v30, %v350_v52 }
 0x34d   : > { %v6527_v41 = vor.u32 %v7215_v10, %v6524_v15  ;;  %4270 = vmatpush.bf16.msrb.mxu2 %v6271_v40  ;;  %v352_v18 = vld [vmem:[#allocation2 + $0x38] sm:$0xff] }
 0x34e   : > { %4258 = vmatmul.bf16.vlgmr.msrb.gmra.mxu1 %v7888_v45  ;;  %4302 = vst [vmem:[#allocation2 + $0x20] sm:$0xff] %v4294_v42  ;;  %v4079_v45 = vpop.f32.mrf.mxu3 }
 0x34f   : > { %4283 = vmatpush.bf16.msrb.mxu3 %v6527_v41 }
 0x350   : > { %4271 = vmatmul.bf16.vlgmr.msrb.gmra.mxu2 %v7880_v39  ;;  %v4103_v39 = vpop.f32.mrf.mxu1 }
 0x351   : > { %v4104_v0 = vadd.f32 %v4103_v39, %v4090_v57 }
 0x352   : > { %4284 = vmatmul.bf16.vlgmr.msrb.gmra.mxu3 %v7886_v43 }
 0x353   : > { %v4117_v35 = vadd.f32 %v4116_v59, %v4104_v0 }
 0x356   : > { %v4129_v43 = vpop.f32.mrf.mxu3 }
 0x357   : > { %v4130_v3 = vadd.f32 %v4129_v43, %v4117_v35 }
 0x358   : > { %v4105_v61 = vpop.f32.mrf.mxu1 }
 0x35e   : > { %v4131_v63 = vpop.f32.mrf.mxu3 }
 0x36d   : > { %v4142_v4 = vpop.f32.mrf.mxu0 }
 0x36e   : > { %v4143_v6 = vadd.f32 %v4142_v4, %v4130_v3 }
 0x36f   : > { %v4155_v8 = vpop.f32.mrf.mxu1 }
 0x370   : > { %v4156_v58 = vadd.f32 %v4155_v8, %v4143_v6 }
 0x375   : > { %v4144_v20 = vpop.f32.mrf.mxu0 }
 0x377   : > { %v4168_v11 = vpop.f32.mrf.mxu2  ;;  %v4157_v23 = vpop.f32.mrf.mxu1 }
 0x378   : > { %v4169_v13 = vadd.f32 %v4168_v11, %v4156_v58 }
 0x379   : > { %v4181_v14 = vpop.f32.mrf.mxu3 }
 0x37a   : > { %v4182_v17 = vadd.f32 %v4181_v14, %v4169_v13 }
 0x37c   : > { %v4295_v24 = vadd.f32 %v4182_v17, %v351_v16 }
 0x37e   : > { %4303 = vst [vmem:[#allocation2 + $0x28] sm:$0xff] %v4295_v24 }
 0x37f   : > { %v4170_v54 = vpop.f32.mrf.mxu2 }
 0x381   : > { %v4183_v53 = vpop.f32.mrf.mxu3 }
 0x38d   : > { %v4194_v27 = vpop.f32.mrf.mxu0 }
 0x38f   : > { %v4207_v28 = vpop.f32.mrf.mxu1 }
 0x390   : > { %v4208_v2 = vadd.f32 %v4207_v28, %v4194_v27 }
 0x395   : > { %v4196_v1 = vpop.f32.mrf.mxu0 }
 0x397   : > { %v4220_v29 = vpop.f32.mrf.mxu2  ;;  %v4209_v32 = vpop.f32.mrf.mxu1 }
 0x398   : > { %v4221_v9 = vadd.f32 %v4220_v29, %v4208_v2 }
 0x399   : > { %v4233_v60 = vpop.f32.mrf.mxu3 }
 0x39a   : > { %v4234_v12 = vadd.f32 %v4233_v60, %v4221_v9 }
 0x39f   : > { %v4222_v33 = vpop.f32.mrf.mxu2 }
 0x3a1   : > { %v4235_v34 = vpop.f32.mrf.mxu3 }
 0x3c9   : > { %v4246_v5 = vpop.f32.mrf.mxu0 }
 0x3ca   : > { %v4247_v37 = vadd.f32 %v4246_v5, %v4234_v12 }
 0x3cb   : > { %v4259_v36 = vpop.f32.mrf.mxu1 }
 0x3cc   : > { %v4260_v38 = vadd.f32 %v4259_v36, %v4247_v37 }
 0x3d1   : > { %v4248_v21 = vpop.f32.mrf.mxu0 }
 0x3d3   : > { %v4272_v7 = vpop.f32.mrf.mxu2  ;;  %v4261_v40 = vpop.f32.mrf.mxu1 }
 0x3d4   : > { %v4273_v10 = vadd.f32 %v4272_v7, %v4260_v38 }
 0x3d5   : > { %v4285_v15 = vpop.f32.mrf.mxu3 }
 0x3d6   : > { %v4286_v41 = vadd.f32 %v4285_v15, %v4273_v10 }
 0x3d8   : > { %v4296_v22 = vadd.f32 %v4286_v41, %v352_v18 }
 0x3d9   : > { %4308 = sbr.rel (%p6752_p9) target bundleno = 1143 (0x477), region = 52 }
 0x3da   : > { %4304 = vst [vmem:[#allocation2 + $0x38] sm:$0xff] %v4296_v22 }
 0x3db   : > { %v4274_v44 = vpop.f32.mrf.mxu2 }
 0x3dd   : > { %v4287_v47 = vpop.f32.mrf.mxu3 }
 0x3de   : > { %v4311_v25 = vld [vmem:[#allocation2 + $0x18] sm:$0xff]  ;;  %v4317_v48 = vld [vmem:[%s266_s8] sm:$0xff]  ;;  %v4312_v19 = vld [vmem:[#allocation2 + $0x10] sm:$0xff]  ;;  %vm4352_vm0 = vcmask 64512   ;;  %vm4530_vm1 = vcmask 1041408   ;;  %vm4532_vm2 = vcmask 1045508  }
 0x3df   : > { %v4321_v50 = vperm.slane %v4317_v48, 2  ;;  %v4322_v51 = vperm.slane %v4317_v48, 3  ;;  %v4315_v46 = vld [vmem:[#allocation2 + $0x28] sm:$0xff]  ;;  %v4325_v49 = vperm.slane %v4317_v48, 6  ;;  %v4326_v30 = vperm.slane %v4317_v48, 7  ;;  %v4310_v26 = vld [vmem:[#allocation2] sm:$0xff] }
 0x3e0   : > { %v4320_v55 = vperm.slane %v4317_v48, 1  ;;  %v4314_v42 = vld [vmem:[#allocation2 + $0x20] sm:$0xff]  ;;  %v4324_v56 = vperm.slane %v4317_v48, 5  ;;  %v4309_v59 = vld [vmem:[#allocation2 + $0x30] sm:$0xff]  ;;  %v4319_v43 = vperm.slane %v4317_v48, 0  ;;  %v4313_v31 = vld [vmem:[#allocation2 + $0x8] sm:$0xff] }
 0x3e1   : > { %v4316_v52 = vld [vmem:[#allocation2 + $0x38] sm:$0xff]  ;;  %v4337_v45 = vadd.f32 %v4321_v50, %v4311_v25  ;;  %v4338_v57 = vadd.f32 %v4322_v51, %v4312_v19  ;;  %v4341_v39 = vadd.f32 %v4325_v49, %v4315_v46  ;;  %v4323_v0 = vperm.slane %v4317_v48, 4  ;;  %v4351_v4 = vld [vmem:[%s8946_s3] sm:$0x3] }
 0x3e2   : > { %v4342_v61 = vadd.f32 %v4326_v30, %v4316_v52  ;;  %v4336_v62 = vadd.f32 %v4320_v55, %v4310_v26  ;;  %v4340_v63 = vadd.f32 %v4324_v56, %v4314_v42  ;;  %v4335_v8 = vadd.f32 %v4319_v43, %v4309_v59 }
 0x3e3   : > { %v4345_v35 = vmax.f32 %v4337_v45, 0.0  ;;  %v4346_v3 = vmax.f32 %v4338_v57, 0.0  ;;  %v4349_v6 = vmax.f32 %v4341_v39, 0.0  ;;  %v4339_v13 = vadd.f32 %v4323_v0, %v4313_v31 }
 0x3e4   : > { %v4350_v58 = vmax.f32 %v4342_v61, 0.0  ;;  %v4344_v11 = vmax.f32 %v4336_v62, 0.0  ;;  %v4343_v14 = vmax.f32 %v4335_v8, 0.0  ;;  %v4348_v16 = vmax.f32 %v4340_v63, 0.0 }
 0x3e5   : > { %4411 = vmatpush.msra.mxu2 %v4345_v35  ;;  %4431 = vmatpush.msra.mxu3 %v4346_v3  ;;  %v4347_v17 = vmax.f32 %v4339_v13, 0.0  ;;  %vm4534_vm3 = vcmask 1043456  }
 0x3e6   : > { %6755 = vmatmul.msk.f32.vlgmr.msra.gmra.mxu2 %vm4352_vm0, %v4351_v4  ;;  %6756 = vmatmul.msk.f32.vlgmr.msra.gmra.mxu3 %vm4352_vm0, %v4351_v4 }
 0x3e7   : > { %4491 = vmatpush.msrb.mxu2 %v4349_v6  ;;  %4511 = vmatpush.msrb.mxu3 %v4350_v58 }
 0x3e8   : > { %4391 = vmatpush.msra.mxu1 %v4344_v11  ;;  %4371 = vmatpush.msra.mxu0 %v4343_v14 }
 0x3e9   : > { %6754 = vmatmul.msk.f32.vlgmr.msra.gmra.mxu1 %vm4352_vm0, %v4351_v4  ;;  %6753 = vmatmul.msk.f32.vlgmr.msra.gmra.mxu0 %vm4352_vm0, %v4351_v4 }
 0x3ea   : > { %4471 = vmatpush.msrb.mxu1 %v4348_v16  ;;  %4451 = vmatpush.msrb.mxu0 %v4347_v17 }
 0x3ee   : > { %6759 = vmatmul.msk.f32.vlgmr.msrb.gmra.mxu2 %vm4352_vm0, %v4351_v4  ;;  %6760 = vmatmul.msk.f32.vlgmr.msrb.gmra.mxu3 %vm4352_vm0, %v4351_v4 }
 0x3f1   : > { %6758 = vmatmul.msk.f32.vlgmr.msrb.gmra.mxu1 %vm4352_vm0, %v4351_v4  ;;  %6757 = vmatmul.msk.f32.vlgmr.msrb.gmra.mxu0 %vm4352_vm0, %v4351_v4 }
 0x466   : > { %v4393_v20 = vpop.f32.mrf.mxu1  ;;  %v4373_v23 = vpop.f32.mrf.mxu0 }
 0x467   : > { %v4524_v24 = vrot.slane %v4393_v20, 6 }
 0x469   : > { %v4413_v54 = vpop.f32.mrf.mxu2  ;;  %v4433_v53 = vpop.f32.mrf.mxu3  ;;  %v4531_v29 = vsel %vm4530_vm1, %v4373_v23, %v4524_v24 }
 0x46a   : > { %v4525_v27 = vrot.slane %v4413_v54, 4  ;;  %v4526_v28 = vrot.slane %v4433_v53, 2 }
 0x46c   : > { %v4533_v60 = vsel %vm4532_vm2, %v4525_v27, %v4526_v28 }
 0x46d   : > { %v4535_v1 = vsel %vm4534_vm3, %v4531_v29, %v4533_v60 }
 0x46e   : > { %4541 = vst [vmem:[%s7719_s5] sm:$0xff] %v4535_v1  ;;  %v4473_v32 = vpop.f32.mrf.mxu1  ;;  %v4453_v34 = vpop.f32.mrf.mxu0 }
 0x46f   : > { %v4527_v33 = vrot.slane %v4473_v32, 6 }
 0x471   : > { %v4493_v2 = vpop.f32.mrf.mxu2  ;;  %v4513_v9 = vpop.f32.mrf.mxu3  ;;  %v4536_v36 = vsel %vm4530_vm1, %v4453_v34, %v4527_v33 }
 0x472   : > { %v4528_v12 = vrot.slane %v4493_v2, 4  ;;  %v4529_v5 = vrot.slane %v4513_v9, 2 }
 0x474   : > { %v4537_v37 = vsel %vm4532_vm2, %v4528_v12, %v4529_v5 }
 0x475   : > { %v4538_v38 = vsel %vm4534_vm3, %v4536_v36, %v4537_v37 }
 0x476   : > { %4542 = vst [vmem:[%s7719_s5 + $0x8] sm:$0xff] %v4538_v38 }
 0x477 PF: > { %s20_s25 = sadd.s32 1, %s7534_s25   ;;  %s8959_s24 = smov %s7676_s18 }
 0x478   : > { %p17_p10 = scmp.ge.s32.totalorder %s20_s25, 8   ;;  %s8960_s22 = sld [smem:[#allocation9_spill]] }
 0x479   : > { %s8961_s12 = sld [smem:[#allocation10_spill]]  ;;  %s8963_s15 = smov %s7498_s16 }
 0x47a   : > { %s8962_s28 = sld [smem:[#allocation11_spill]]  ;;  %s8964_s16 = smov %s7502_s17 }
 0x47b   : > { %s8965_s17 = smov %s7671_s6  ;;  %s8966_s18 = smov %s7510_s19 }
 0x47c   : > { %s8967_s19 = smov %s7514_s20  ;;  %s8968_s20 = smov %s8959_s24 }
 0x47d   : > { %s8969_s21 = smov %s7526_s23  ;;  %19 = sbr.rel (!%p17_p10) target bundleno = 11 (0xb), region = 100 }
 0x47f   : > { %s8970_s23 = smov %s8961_s12 }
 0x480   : > { %s8971_s24 = smov %s8962_s28 }
 0x482   :  { %4573 = vsyncpa [#allocation4], 1 }
 0x483   :  { %4575 = vsyncpa [#allocation4 + $0x1], 1 }
 0x484   :  { %4576 = vsyncpa [#allocation6], 1 }
 0x485   :  { %4578 = vsyncpa [#allocation6 + $0x1], 1 }

</bundles_post_ra>
